<compile_context>
chip_gen: v7x
topology: tpu7x:2x2x1
jax: 0.10.0
libtpu: 0.0.40
codegen_flags: <defaults>
</compile_context>

<pallas_src>
import jax
import jax.numpy as jnp
import numpy as np
from jax.experimental import pallas as pl
from jax.experimental.pallas import tpu as pltpu

NUM_RES_BLOCKS = 8


def _round_up(x, m):
    return (x + m - 1) // m * m


def patch_encoder_kernel(x_ref, wpre_ref, bpre_ref,
                         w1s_ref, b1s_ref, w2s_ref, b2s_ref,
                         wpost_ref, bpost_ref, out_ref):
    # x_ref: (tm, in_dim_pad) bf16 token tile.  Weights bf16, biases f32,
    # every matmul accumulates in f32; residual stream h stays f32.
    h = jnp.dot(x_ref[...], wpre_ref[...], preferred_element_type=jnp.float32)
    h = h + bpre_ref[...]                                     # pre: Linear only
    for i in range(NUM_RES_BLOCKS):                            # 8 residual MLP blocks
        t = jnp.maximum(h, 0.0).astype(jnp.bfloat16)
        t = jnp.dot(t, w1s_ref[i], preferred_element_type=jnp.float32) + b1s_ref[i]
        t = jnp.maximum(t, 0.0).astype(jnp.bfloat16)
        t = jnp.dot(t, w2s_ref[i], preferred_element_type=jnp.float32) + b2s_ref[i]
        h = h + t
    h = jnp.maximum(h, 0.0).astype(jnp.bfloat16)               # post: ReLU
    h = jnp.dot(h, wpost_ref[...], preferred_element_type=jnp.float32) + bpost_ref[...]
    out_ref[...] = jnp.maximum(h, 0.0).astype(out_ref.dtype)   # post: ReLU


def _unfold_tokens(x, stride, in_dim_pad):
    """F.unfold(kernel=stride, stride=stride) + permute(0,2,1), flattened over
    batch, zero-padded on the feature (contraction) dim to in_dim_pad."""
    B, C, H, W = x.shape
    oh, ow = H // stride, W // stride
    t = x.reshape(B, C, oh, stride, ow, stride)
    t = t.transpose(0, 2, 4, 1, 3, 5)            # (B, oh, ow, C, kh, kw)
    tok = t.reshape(B * oh * ow, C * stride * stride)
    k_pad = in_dim_pad - tok.shape[1]
    if k_pad:
        tok = jnp.pad(tok, ((0, 0), (0, k_pad)))
    return tok, (B, oh, ow)


def prepare_params(params):
    """One-time (outside the kernel) prep: pad w_pre's contraction dim to a
    multiple of 128 and cast weights to bf16.  Biases stay f32."""
    in_dim = params["w_pre"].shape[0]
    in_dim_pad = _round_up(in_dim, 128)
    w_pre = jnp.pad(params["w_pre"], ((0, in_dim_pad - in_dim), (0, 0)))
    return {
        "w_pre": w_pre.astype(jnp.bfloat16),
        "b_pre": params["b_pre"].astype(jnp.float32),
        "w1s": params["w1s"].astype(jnp.bfloat16),
        "b1s": params["b1s"].astype(jnp.float32),
        "w2s": params["w2s"].astype(jnp.bfloat16),
        "b2s": params["b2s"].astype(jnp.float32),
        "w_post": params["w_post"].astype(jnp.bfloat16),
        "b_post": params["b_post"].astype(jnp.float32),
    }


def patch_encoder_forward(x, kparams, *, stride=8, tm=None):
    in_dim_pad = kparams["w_pre"].shape[0]
    out_ch = kparams["w_post"].shape[1]
    tokens, (B, oh, ow) = _unfold_tokens(x, stride, in_dim_pad)
    N = tokens.shape[0]

    if tm is None:
        tm = min(512, _round_up(N, 8))      # big M tiles keep the MXU full
    n_pad = _round_up(N, tm)
    if n_pad != N:
        tokens = jnp.pad(tokens, ((0, n_pad - N), (0, 0)))   # padded tail tile
    tokens = tokens.astype(jnp.bfloat16)

    # Weights / biases: whole-array VMEM-resident, fetched once, no
    # double-buffering (only ~1.3 MB of bf16 weights total).
    resident = pl.BlockSpec(memory_space=pltpu.MemorySpace.VMEM)

    out = pl.pallas_call(
        patch_encoder_kernel,
        out_shape=jax.ShapeDtypeStruct((n_pad, out_ch), jnp.float32),
        grid_spec=pltpu.PrefetchScalarGridSpec(
            num_scalar_prefetch=0,
            grid=(n_pad // tm,),
            in_specs=[
                pl.BlockSpec((tm, in_dim_pad), lambda i: (i, 0)),  # token tile
                resident, resident,     # w_pre, b_pre
                resident, resident,     # w1s,  b1s
                resident, resident,     # w2s,  b2s
                resident, resident,     # w_post, b_post
            ],
            out_specs=pl.BlockSpec((tm, out_ch), lambda i: (i, 0)),
        ),
        compiler_params=pltpu.CompilerParams(
            dimension_semantics=("parallel",),   # independent token tiles
        ),
    )(tokens, kparams["w_pre"], kparams["b_pre"],
      kparams["w1s"], kparams["b1s"], kparams["w2s"], kparams["b2s"],
      kparams["w_post"], kparams["b_post"])

    out = out[:N]
    # F.fold with 1x1 kernel / stride 1 == reshape to [B, out_ch, oh, ow]
    return out.reshape(B, oh, ow, out_ch).transpose(0, 3, 1, 2)


def reference_forward(x, kparams, *, stride=8):
    """Pure-JAX reference mirroring the kernel's numerics (bf16 matmul
    operands, f32 accumulation, f32 residual stream)."""
    in_dim_pad = kparams["w_pre"].shape[0]
    out_ch = kparams["w_post"].shape[1]
    tokens, (B, oh, ow) = _unfold_tokens(x, stride, in_dim_pad)
    h = jnp.dot(tokens.astype(jnp.bfloat16), kparams["w_pre"],
                preferred_element_type=jnp.float32) + kparams["b_pre"]
    for i in range(NUM_RES_BLOCKS):
        t = jnp.maximum(h, 0.0).astype(jnp.bfloat16)
        t = jnp.dot(t, kparams["w1s"][i],
                    preferred_element_type=jnp.float32) + kparams["b1s"][i]
        t = jnp.maximum(t, 0.0).astype(jnp.bfloat16)
        t = jnp.dot(t, kparams["w2s"][i],
                    preferred_element_type=jnp.float32) + kparams["b2s"][i]
        h = h + t
    h = jnp.maximum(h, 0.0).astype(jnp.bfloat16)
    h = jnp.dot(h, kparams["w_post"],
                preferred_element_type=jnp.float32) + kparams["b_post"]
    h = jnp.maximum(h, 0.0)
    return h.reshape(B, oh, ow, out_ch).transpose(0, 3, 1, 2)


def init_params(key, *, in_ch=3, res_ch=256, out_ch=256, stride=8):
    in_dim = in_ch * stride * stride
    hidden = res_ch // 2
    ks = jax.random.split(key, 10)

    def lin_w(k, fan_in, fan_out):
        return (jax.random.normal(k, (fan_in, fan_out), jnp.float32)
                / np.sqrt(fan_in)).astype(jnp.float32)

    def lin_b(k, shape):
        return 0.01 * jax.random.normal(k, shape, jnp.float32)

    return {
        "w_pre": lin_w(ks[0], in_dim, res_ch),
        "b_pre": lin_b(ks[1], (1, res_ch)),
        "w1s": jnp.stack([lin_w(k, res_ch, hidden)
                          for k in jax.random.split(ks[2], NUM_RES_BLOCKS)]),
        "b1s": jnp.stack([lin_b(k, (1, hidden))
                          for k in jax.random.split(ks[3], NUM_RES_BLOCKS)]),
        "w2s": jnp.stack([lin_w(k, hidden, res_ch)
                          for k in jax.random.split(ks[4], NUM_RES_BLOCKS)]),
        "b2s": jnp.stack([lin_b(k, (1, res_ch))
                          for k in jax.random.split(ks[5], NUM_RES_BLOCKS)]),
        "w_post": lin_w(ks[6], res_ch, out_ch),
        "b_post": lin_b(ks[7], (1, out_ch)),
    }


if __name__ == "__main__":
    key = jax.random.PRNGKey(0)
    kp, kx = jax.random.split(key)

    stride = 8
    params = init_params(kp, in_ch=3, res_ch=256, out_ch=256, stride=stride)
    kparams = prepare_params(params)          # bf16 cast + K-pad, done once

    # x: [B, C, H, W] (NCHW like the PyTorch input).  N = 2*12*12 = 288 patch
    # tokens; tm=128 exercises a multi-step grid with a zero-padded tail tile
    # (the production default is tm = min(512, N)).
    x = jax.random.normal(kx, (2, 3, 96, 96), jnp.float32)

    out = patch_encoder_forward(x, kparams, stride=stride, tm=128)
    out = jax.block_until_ready(out)

    assert out.shape == (2, 256, 96 // stride, 96 // stride), out.shape
    ref = reference_forward(x, kparams, stride=stride)
    np.testing.assert_allclose(np.asarray(out), np.asarray(ref),
                               rtol=2e-2, atol=2e-2)
    print("KERNEL_OK")
</pallas_src>

<mosaic_0001>
module attributes {stable_mosaic.version = 11 : i64} {
  func.func @patch_encoder_kernel(%arg0: i32, %arg1: memref<128x256xbf16, #tpu.memory_space<vmem>>, %arg2: memref<256x256xbf16, #tpu.memory_space<vmem>>, %arg3: memref<1x256xf32, #tpu.memory_space<vmem>>, %arg4: memref<8x256x128xbf16, #tpu.memory_space<vmem>>, %arg5: memref<8x1x128xf32, #tpu.memory_space<vmem>>, %arg6: memref<8x128x256xbf16, #tpu.memory_space<vmem>>, %arg7: memref<8x1x256xf32, #tpu.memory_space<vmem>>, %arg8: memref<256x256xbf16, #tpu.memory_space<vmem>>, %arg9: memref<1x256xf32, #tpu.memory_space<vmem>>, %arg10: memref<128x256xf32, #tpu.memory_space<vmem>>) attributes {dimension_semantics = [#tpu.dimension_semantics<parallel>], iteration_bounds = array<i64: 3>, scalar_prefetch = 0 : i64, scratch_operands = 0 : i64, tpu.core_type = #tpu.core_type<tc>, window_params = [{transform_indices = @transform_0, window_bounds = array<i64: 128, 256>}, {pipeline_mode = #tpu.pipeline_mode<synchronous>, transform_indices = @transform_1, window_bounds = array<i64: 256, 256>}, {pipeline_mode = #tpu.pipeline_mode<synchronous>, transform_indices = @transform_2, window_bounds = array<i64: 1, 256>}, {pipeline_mode = #tpu.pipeline_mode<synchronous>, transform_indices = @transform_3, window_bounds = array<i64: 8, 256, 128>}, {pipeline_mode = #tpu.pipeline_mode<synchronous>, transform_indices = @transform_4, window_bounds = array<i64: 8, 1, 128>}, {pipeline_mode = #tpu.pipeline_mode<synchronous>, transform_indices = @transform_5, window_bounds = array<i64: 8, 128, 256>}, {pipeline_mode = #tpu.pipeline_mode<synchronous>, transform_indices = @transform_6, window_bounds = array<i64: 8, 1, 256>}, {pipeline_mode = #tpu.pipeline_mode<synchronous>, transform_indices = @transform_7, window_bounds = array<i64: 256, 256>}, {pipeline_mode = #tpu.pipeline_mode<synchronous>, transform_indices = @transform_8, window_bounds = array<i64: 1, 256>}, {transform_indices = @transform_9, window_bounds = array<i64: 128, 256>}]} {
    %c0 = arith.constant 0 : index
    %c0_0 = arith.constant 0 : index
    %0 = vector.load %arg1[%c0, %c0_0] : memref<128x256xbf16, #tpu.memory_space<vmem>>, vector<128x256xbf16>
    %c0_1 = arith.constant 0 : index
    %c0_2 = arith.constant 0 : index
    %1 = vector.load %arg2[%c0_1, %c0_2] : memref<256x256xbf16, #tpu.memory_space<vmem>>, vector<256x256xbf16>
    %cst = arith.constant dense<0.000000e+00> : vector<128x256xf32>
    %2 = tpu.matmul %0, %1, %cst {dimension_numbers = #tpu.dot_dimension_numbers<[1], [0], [0], [1], [0, 0, 1, 1], [], []>} : vector<128x256xbf16>, vector<256x256xbf16>, vector<128x256xf32> -> vector<128x256xf32>
    %c0_3 = arith.constant 0 : index
    %c0_4 = arith.constant 0 : index
    %3 = vector.load %arg3[%c0_3, %c0_4] : memref<1x256xf32, #tpu.memory_space<vmem>>, vector<1x256xf32>
    %4 = vector.broadcast %3 : vector<1x256xf32> to vector<128x256xf32>
    %5 = arith.addf %2, %4 : vector<128x256xf32>
    %cst_5 = arith.constant 0.000000e+00 : f32
    %6 = vector.broadcast %cst_5 : f32 to vector<128x256xf32>
    %7 = arith.maximumf %5, %6 : vector<128x256xf32>
    %8 = arith.truncf %7 : vector<128x256xf32> to vector<128x256xbf16>
    %c0_6 = arith.constant 0 : index
    %c0_7 = arith.constant 0 : index
    %c0_8 = arith.constant 0 : index
    %9 = vector.load %arg4[%c0_6, %c0_7, %c0_8] : memref<8x256x128xbf16, #tpu.memory_space<vmem>>, vector<1x256x128xbf16>
    %10 = vector.shape_cast %9 : vector<1x256x128xbf16> to vector<256x128xbf16>
    %cst_9 = arith.constant dense<0.000000e+00> : vector<128x128xf32>
    %11 = tpu.matmul %8, %10, %cst_9 {dimension_numbers = #tpu.dot_dimension_numbers<[1], [0], [0], [1], [0, 0, 1, 1], [], []>} : vector<128x256xbf16>, vector<256x128xbf16>, vector<128x128xf32> -> vector<128x128xf32>
    %c0_10 = arith.constant 0 : index
    %c0_11 = arith.constant 0 : index
    %c0_12 = arith.constant 0 : index
    %12 = vector.load %arg5[%c0_10, %c0_11, %c0_12] : memref<8x1x128xf32, #tpu.memory_space<vmem>>, vector<1x1x128xf32>
    %13 = vector.shape_cast %12 : vector<1x1x128xf32> to vector<1x128xf32>
    %14 = vector.broadcast %13 : vector<1x128xf32> to vector<128x128xf32>
    %15 = arith.addf %11, %14 : vector<128x128xf32>
    %cst_13 = arith.constant 0.000000e+00 : f32
    %16 = vector.broadcast %cst_13 : f32 to vector<128x128xf32>
    %17 = arith.maximumf %15, %16 : vector<128x128xf32>
    %18 = arith.truncf %17 : vector<128x128xf32> to vector<128x128xbf16>
    %c0_14 = arith.constant 0 : index
    %c0_15 = arith.constant 0 : index
    %c0_16 = arith.constant 0 : index
    %19 = vector.load %arg6[%c0_14, %c0_15, %c0_16] : memref<8x128x256xbf16, #tpu.memory_space<vmem>>, vector<1x128x256xbf16>
    %20 = vector.shape_cast %19 : vector<1x128x256xbf16> to vector<128x256xbf16>
    %cst_17 = arith.constant dense<0.000000e+00> : vector<128x256xf32>
    %21 = tpu.matmul %18, %20, %cst_17 {dimension_numbers = #tpu.dot_dimension_numbers<[1], [0], [0], [1], [0, 0, 1, 1], [], []>} : vector<128x128xbf16>, vector<128x256xbf16>, vector<128x256xf32> -> vector<128x256xf32>
    %c0_18 = arith.constant 0 : index
    %c0_19 = arith.constant 0 : index
    %c0_20 = arith.constant 0 : index
    %22 = vector.load %arg7[%c0_18, %c0_19, %c0_20] : memref<8x1x256xf32, #tpu.memory_space<vmem>>, vector<1x1x256xf32>
    %23 = vector.shape_cast %22 : vector<1x1x256xf32> to vector<1x256xf32>
    %24 = vector.broadcast %23 : vector<1x256xf32> to vector<128x256xf32>
    %25 = arith.addf %21, %24 : vector<128x256xf32>
    %26 = arith.addf %5, %25 : vector<128x256xf32>
    %cst_21 = arith.constant 0.000000e+00 : f32
    %27 = vector.broadcast %cst_21 : f32 to vector<128x256xf32>
    %28 = arith.maximumf %26, %27 : vector<128x256xf32>
    %29 = arith.truncf %28 : vector<128x256xf32> to vector<128x256xbf16>
    %c1 = arith.constant 1 : index
    %c0_22 = arith.constant 0 : index
    %c0_23 = arith.constant 0 : index
    %30 = vector.load %arg4[%c1, %c0_22, %c0_23] : memref<8x256x128xbf16, #tpu.memory_space<vmem>>, vector<1x256x128xbf16>
    %31 = vector.shape_cast %30 : vector<1x256x128xbf16> to vector<256x128xbf16>
    %cst_24 = arith.constant dense<0.000000e+00> : vector<128x128xf32>
    %32 = tpu.matmul %29, %31, %cst_24 {dimension_numbers = #tpu.dot_dimension_numbers<[1], [0], [0], [1], [0, 0, 1, 1], [], []>} : vector<128x256xbf16>, vector<256x128xbf16>, vector<128x128xf32> -> vector<128x128xf32>
    %c1_25 = arith.constant 1 : index
    %c0_26 = arith.constant 0 : index
    %c0_27 = arith.constant 0 : index
    %33 = vector.load %arg5[%c1_25, %c0_26, %c0_27] : memref<8x1x128xf32, #tpu.memory_space<vmem>>, vector<1x1x128xf32>
    %34 = vector.shape_cast %33 : vector<1x1x128xf32> to vector<1x128xf32>
    %35 = vector.broadcast %34 : vector<1x128xf32> to vector<128x128xf32>
    %36 = arith.addf %32, %35 : vector<128x128xf32>
    %cst_28 = arith.constant 0.000000e+00 : f32
    %37 = vector.broadcast %cst_28 : f32 to vector<128x128xf32>
    %38 = arith.maximumf %36, %37 : vector<128x128xf32>
    %39 = arith.truncf %38 : vector<128x128xf32> to vector<128x128xbf16>
    %c1_29 = arith.constant 1 : index
    %c0_30 = arith.constant 0 : index
    %c0_31 = arith.constant 0 : index
    %40 = vector.load %arg6[%c1_29, %c0_30, %c0_31] : memref<8x128x256xbf16, #tpu.memory_space<vmem>>, vector<1x128x256xbf16>
    %41 = vector.shape_cast %40 : vector<1x128x256xbf16> to vector<128x256xbf16>
    %cst_32 = arith.constant dense<0.000000e+00> : vector<128x256xf32>
    %42 = tpu.matmul %39, %41, %cst_32 {dimension_numbers = #tpu.dot_dimension_numbers<[1], [0], [0], [1], [0, 0, 1, 1], [], []>} : vector<128x128xbf16>, vector<128x256xbf16>, vector<128x256xf32> -> vector<128x256xf32>
    %c1_33 = arith.constant 1 : index
    %c0_34 = arith.constant 0 : index
    %c0_35 = arith.constant 0 : index
    %43 = vector.load %arg7[%c1_33, %c0_34, %c0_35] : memref<8x1x256xf32, #tpu.memory_space<vmem>>, vector<1x1x256xf32>
    %44 = vector.shape_cast %43 : vector<1x1x256xf32> to vector<1x256xf32>
    %45 = vector.broadcast %44 : vector<1x256xf32> to vector<128x256xf32>
    %46 = arith.addf %42, %45 : vector<128x256xf32>
    %47 = arith.addf %26, %46 : vector<128x256xf32>
    %cst_36 = arith.constant 0.000000e+00 : f32
    %48 = vector.broadcast %cst_36 : f32 to vector<128x256xf32>
    %49 = arith.maximumf %47, %48 : vector<128x256xf32>
    %50 = arith.truncf %49 : vector<128x256xf32> to vector<128x256xbf16>
    %c2 = arith.constant 2 : index
    %c0_37 = arith.constant 0 : index
    %c0_38 = arith.constant 0 : index
    %51 = vector.load %arg4[%c2, %c0_37, %c0_38] : memref<8x256x128xbf16, #tpu.memory_space<vmem>>, vector<1x256x128xbf16>
    %52 = vector.shape_cast %51 : vector<1x256x128xbf16> to vector<256x128xbf16>
    %cst_39 = arith.constant dense<0.000000e+00> : vector<128x128xf32>
    %53 = tpu.matmul %50, %52, %cst_39 {dimension_numbers = #tpu.dot_dimension_numbers<[1], [0], [0], [1], [0, 0, 1, 1], [], []>} : vector<128x256xbf16>, vector<256x128xbf16>, vector<128x128xf32> -> vector<128x128xf32>
    %c2_40 = arith.constant 2 : index
    %c0_41 = arith.constant 0 : index
    %c0_42 = arith.constant 0 : index
    %54 = vector.load %arg5[%c2_40, %c0_41, %c0_42] : memref<8x1x128xf32, #tpu.memory_space<vmem>>, vector<1x1x128xf32>
    %55 = vector.shape_cast %54 : vector<1x1x128xf32> to vector<1x128xf32>
    %56 = vector.broadcast %55 : vector<1x128xf32> to vector<128x128xf32>
    %57 = arith.addf %53, %56 : vector<128x128xf32>
    %cst_43 = arith.constant 0.000000e+00 : f32
    %58 = vector.broadcast %cst_43 : f32 to vector<128x128xf32>
    %59 = arith.maximumf %57, %58 : vector<128x128xf32>
    %60 = arith.truncf %59 : vector<128x128xf32> to vector<128x128xbf16>
    %c2_44 = arith.constant 2 : index
    %c0_45 = arith.constant 0 : index
    %c0_46 = arith.constant 0 : index
    %61 = vector.load %arg6[%c2_44, %c0_45, %c0_46] : memref<8x128x256xbf16, #tpu.memory_space<vmem>>, vector<1x128x256xbf16>
    %62 = vector.shape_cast %61 : vector<1x128x256xbf16> to vector<128x256xbf16>
    %cst_47 = arith.constant dense<0.000000e+00> : vector<128x256xf32>
    %63 = tpu.matmul %60, %62, %cst_47 {dimension_numbers = #tpu.dot_dimension_numbers<[1], [0], [0], [1], [0, 0, 1, 1], [], []>} : vector<128x128xbf16>, vector<128x256xbf16>, vector<128x256xf32> -> vector<128x256xf32>
    %c2_48 = arith.constant 2 : index
    %c0_49 = arith.constant 0 : index
    %c0_50 = arith.constant 0 : index
    %64 = vector.load %arg7[%c2_48, %c0_49, %c0_50] : memref<8x1x256xf32, #tpu.memory_space<vmem>>, vector<1x1x256xf32>
    %65 = vector.shape_cast %64 : vector<1x1x256xf32> to vector<1x256xf32>
    %66 = vector.broadcast %65 : vector<1x256xf32> to vector<128x256xf32>
    %67 = arith.addf %63, %66 : vector<128x256xf32>
    %68 = arith.addf %47, %67 : vector<128x256xf32>
    %cst_51 = arith.constant 0.000000e+00 : f32
    %69 = vector.broadcast %cst_51 : f32 to vector<128x256xf32>
    %70 = arith.maximumf %68, %69 : vector<128x256xf32>
    %71 = arith.truncf %70 : vector<128x256xf32> to vector<128x256xbf16>
    %c3 = arith.constant 3 : index
    %c0_52 = arith.constant 0 : index
    %c0_53 = arith.constant 0 : index
    %72 = vector.load %arg4[%c3, %c0_52, %c0_53] : memref<8x256x128xbf16, #tpu.memory_space<vmem>>, vector<1x256x128xbf16>
    %73 = vector.shape_cast %72 : vector<1x256x128xbf16> to vector<256x128xbf16>
    %cst_54 = arith.constant dense<0.000000e+00> : vector<128x128xf32>
    %74 = tpu.matmul %71, %73, %cst_54 {dimension_numbers = #tpu.dot_dimension_numbers<[1], [0], [0], [1], [0, 0, 1, 1], [], []>} : vector<128x256xbf16>, vector<256x128xbf16>, vector<128x128xf32> -> vector<128x128xf32>
    %c3_55 = arith.constant 3 : index
    %c0_56 = arith.constant 0 : index
    %c0_57 = arith.constant 0 : index
    %75 = vector.load %arg5[%c3_55, %c0_56, %c0_57] : memref<8x1x128xf32, #tpu.memory_space<vmem>>, vector<1x1x128xf32>
    %76 = vector.shape_cast %75 : vector<1x1x128xf32> to vector<1x128xf32>
    %77 = vector.broadcast %76 : vector<1x128xf32> to vector<128x128xf32>
    %78 = arith.addf %74, %77 : vector<128x128xf32>
    %cst_58 = arith.constant 0.000000e+00 : f32
    %79 = vector.broadcast %cst_58 : f32 to vector<128x128xf32>
    %80 = arith.maximumf %78, %79 : vector<128x128xf32>
    %81 = arith.truncf %80 : vector<128x128xf32> to vector<128x128xbf16>
    %c3_59 = arith.constant 3 : index
    %c0_60 = arith.constant 0 : index
    %c0_61 = arith.constant 0 : index
    %82 = vector.load %arg6[%c3_59, %c0_60, %c0_61] : memref<8x128x256xbf16, #tpu.memory_space<vmem>>, vector<1x128x256xbf16>
    %83 = vector.shape_cast %82 : vector<1x128x256xbf16> to vector<128x256xbf16>
    %cst_62 = arith.constant dense<0.000000e+00> : vector<128x256xf32>
    %84 = tpu.matmul %81, %83, %cst_62 {dimension_numbers = #tpu.dot_dimension_numbers<[1], [0], [0], [1], [0, 0, 1, 1], [], []>} : vector<128x128xbf16>, vector<128x256xbf16>, vector<128x256xf32> -> vector<128x256xf32>
    %c3_63 = arith.constant 3 : index
    %c0_64 = arith.constant 0 : index
    %c0_65 = arith.constant 0 : index
    %85 = vector.load %arg7[%c3_63, %c0_64, %c0_65] : memref<8x1x256xf32, #tpu.memory_space<vmem>>, vector<1x1x256xf32>
    %86 = vector.shape_cast %85 : vector<1x1x256xf32> to vector<1x256xf32>
    %87 = vector.broadcast %86 : vector<1x256xf32> to vector<128x256xf32>
    %88 = arith.addf %84, %87 : vector<128x256xf32>
    %89 = arith.addf %68, %88 : vector<128x256xf32>
    %cst_66 = arith.constant 0.000000e+00 : f32
    %90 = vector.broadcast %cst_66 : f32 to vector<128x256xf32>
    %91 = arith.maximumf %89, %90 : vector<128x256xf32>
    %92 = arith.truncf %91 : vector<128x256xf32> to vector<128x256xbf16>
    %c4 = arith.constant 4 : index
    %c0_67 = arith.constant 0 : index
    %c0_68 = arith.constant 0 : index
    %93 = vector.load %arg4[%c4, %c0_67, %c0_68] : memref<8x256x128xbf16, #tpu.memory_space<vmem>>, vector<1x256x128xbf16>
    %94 = vector.shape_cast %93 : vector<1x256x128xbf16> to vector<256x128xbf16>
    %cst_69 = arith.constant dense<0.000000e+00> : vector<128x128xf32>
    %95 = tpu.matmul %92, %94, %cst_69 {dimension_numbers = #tpu.dot_dimension_numbers<[1], [0], [0], [1], [0, 0, 1, 1], [], []>} : vector<128x256xbf16>, vector<256x128xbf16>, vector<128x128xf32> -> vector<128x128xf32>
    %c4_70 = arith.constant 4 : index
    %c0_71 = arith.constant 0 : index
    %c0_72 = arith.constant 0 : index
    %96 = vector.load %arg5[%c4_70, %c0_71, %c0_72] : memref<8x1x128xf32, #tpu.memory_space<vmem>>, vector<1x1x128xf32>
    %97 = vector.shape_cast %96 : vector<1x1x128xf32> to vector<1x128xf32>
    %98 = vector.broadcast %97 : vector<1x128xf32> to vector<128x128xf32>
    %99 = arith.addf %95, %98 : vector<128x128xf32>
    %cst_73 = arith.constant 0.000000e+00 : f32
    %100 = vector.broadcast %cst_73 : f32 to vector<128x128xf32>
    %101 = arith.maximumf %99, %100 : vector<128x128xf32>
    %102 = arith.truncf %101 : vector<128x128xf32> to vector<128x128xbf16>
    %c4_74 = arith.constant 4 : index
    %c0_75 = arith.constant 0 : index
    %c0_76 = arith.constant 0 : index
    %103 = vector.load %arg6[%c4_74, %c0_75, %c0_76] : memref<8x128x256xbf16, #tpu.memory_space<vmem>>, vector<1x128x256xbf16>
    %104 = vector.shape_cast %103 : vector<1x128x256xbf16> to vector<128x256xbf16>
    %cst_77 = arith.constant dense<0.000000e+00> : vector<128x256xf32>
    %105 = tpu.matmul %102, %104, %cst_77 {dimension_numbers = #tpu.dot_dimension_numbers<[1], [0], [0], [1], [0, 0, 1, 1], [], []>} : vector<128x128xbf16>, vector<128x256xbf16>, vector<128x256xf32> -> vector<128x256xf32>
    %c4_78 = arith.constant 4 : index
    %c0_79 = arith.constant 0 : index
    %c0_80 = arith.constant 0 : index
    %106 = vector.load %arg7[%c4_78, %c0_79, %c0_80] : memref<8x1x256xf32, #tpu.memory_space<vmem>>, vector<1x1x256xf32>
    %107 = vector.shape_cast %106 : vector<1x1x256xf32> to vector<1x256xf32>
    %108 = vector.broadcast %107 : vector<1x256xf32> to vector<128x256xf32>
    %109 = arith.addf %105, %108 : vector<128x256xf32>
    %110 = arith.addf %89, %109 : vector<128x256xf32>
    %cst_81 = arith.constant 0.000000e+00 : f32
    %111 = vector.broadcast %cst_81 : f32 to vector<128x256xf32>
    %112 = arith.maximumf %110, %111 : vector<128x256xf32>
    %113 = arith.truncf %112 : vector<128x256xf32> to vector<128x256xbf16>
    %c5 = arith.constant 5 : index
    %c0_82 = arith.constant 0 : index
    %c0_83 = arith.constant 0 : index
    %114 = vector.load %arg4[%c5, %c0_82, %c0_83] : memref<8x256x128xbf16, #tpu.memory_space<vmem>>, vector<1x256x128xbf16>
    %115 = vector.shape_cast %114 : vector<1x256x128xbf16> to vector<256x128xbf16>
    %cst_84 = arith.constant dense<0.000000e+00> : vector<128x128xf32>
    %116 = tpu.matmul %113, %115, %cst_84 {dimension_numbers = #tpu.dot_dimension_numbers<[1], [0], [0], [1], [0, 0, 1, 1], [], []>} : vector<128x256xbf16>, vector<256x128xbf16>, vector<128x128xf32> -> vector<128x128xf32>
    %c5_85 = arith.constant 5 : index
    %c0_86 = arith.constant 0 : index
    %c0_87 = arith.constant 0 : index
    %117 = vector.load %arg5[%c5_85, %c0_86, %c0_87] : memref<8x1x128xf32, #tpu.memory_space<vmem>>, vector<1x1x128xf32>
    %118 = vector.shape_cast %117 : vector<1x1x128xf32> to vector<1x128xf32>
    %119 = vector.broadcast %118 : vector<1x128xf32> to vector<128x128xf32>
    %120 = arith.addf %116, %119 : vector<128x128xf32>
    %cst_88 = arith.constant 0.000000e+00 : f32
    %121 = vector.broadcast %cst_88 : f32 to vector<128x128xf32>
    %122 = arith.maximumf %120, %121 : vector<128x128xf32>
    %123 = arith.truncf %122 : vector<128x128xf32> to vector<128x128xbf16>
    %c5_89 = arith.constant 5 : index
    %c0_90 = arith.constant 0 : index
    %c0_91 = arith.constant 0 : index
    %124 = vector.load %arg6[%c5_89, %c0_90, %c0_91] : memref<8x128x256xbf16, #tpu.memory_space<vmem>>, vector<1x128x256xbf16>
    %125 = vector.shape_cast %124 : vector<1x128x256xbf16> to vector<128x256xbf16>
    %cst_92 = arith.constant dense<0.000000e+00> : vector<128x256xf32>
    %126 = tpu.matmul %123, %125, %cst_92 {dimension_numbers = #tpu.dot_dimension_numbers<[1], [0], [0], [1], [0, 0, 1, 1], [], []>} : vector<128x128xbf16>, vector<128x256xbf16>, vector<128x256xf32> -> vector<128x256xf32>
    %c5_93 = arith.constant 5 : index
    %c0_94 = arith.constant 0 : index
    %c0_95 = arith.constant 0 : index
    %127 = vector.load %arg7[%c5_93, %c0_94, %c0_95] : memref<8x1x256xf32, #tpu.memory_space<vmem>>, vector<1x1x256xf32>
    %128 = vector.shape_cast %127 : vector<1x1x256xf32> to vector<1x256xf32>
    %129 = vector.broadcast %128 : vector<1x256xf32> to vector<128x256xf32>
    %130 = arith.addf %126, %129 : vector<128x256xf32>
    %131 = arith.addf %110, %130 : vector<128x256xf32>
    %cst_96 = arith.constant 0.000000e+00 : f32
    %132 = vector.broadcast %cst_96 : f32 to vector<128x256xf32>
    %133 = arith.maximumf %131, %132 : vector<128x256xf32>
    %134 = arith.truncf %133 : vector<128x256xf32> to vector<128x256xbf16>
    %c6 = arith.constant 6 : index
    %c0_97 = arith.constant 0 : index
    %c0_98 = arith.constant 0 : index
    %135 = vector.load %arg4[%c6, %c0_97, %c0_98] : memref<8x256x128xbf16, #tpu.memory_space<vmem>>, vector<1x256x128xbf16>
    %136 = vector.shape_cast %135 : vector<1x256x128xbf16> to vector<256x128xbf16>
    %cst_99 = arith.constant dense<0.000000e+00> : vector<128x128xf32>
    %137 = tpu.matmul %134, %136, %cst_99 {dimension_numbers = #tpu.dot_dimension_numbers<[1], [0], [0], [1], [0, 0, 1, 1], [], []>} : vector<128x256xbf16>, vector<256x128xbf16>, vector<128x128xf32> -> vector<128x128xf32>
    %c6_100 = arith.constant 6 : index
    %c0_101 = arith.constant 0 : index
    %c0_102 = arith.constant 0 : index
    %138 = vector.load %arg5[%c6_100, %c0_101, %c0_102] : memref<8x1x128xf32, #tpu.memory_space<vmem>>, vector<1x1x128xf32>
    %139 = vector.shape_cast %138 : vector<1x1x128xf32> to vector<1x128xf32>
    %140 = vector.broadcast %139 : vector<1x128xf32> to vector<128x128xf32>
    %141 = arith.addf %137, %140 : vector<128x128xf32>
    %cst_103 = arith.constant 0.000000e+00 : f32
    %142 = vector.broadcast %cst_103 : f32 to vector<128x128xf32>
    %143 = arith.maximumf %141, %142 : vector<128x128xf32>
    %144 = arith.truncf %143 : vector<128x128xf32> to vector<128x128xbf16>
    %c6_104 = arith.constant 6 : index
    %c0_105 = arith.constant 0 : index
    %c0_106 = arith.constant 0 : index
    %145 = vector.load %arg6[%c6_104, %c0_105, %c0_106] : memref<8x128x256xbf16, #tpu.memory_space<vmem>>, vector<1x128x256xbf16>
    %146 = vector.shape_cast %145 : vector<1x128x256xbf16> to vector<128x256xbf16>
    %cst_107 = arith.constant dense<0.000000e+00> : vector<128x256xf32>
    %147 = tpu.matmul %144, %146, %cst_107 {dimension_numbers = #tpu.dot_dimension_numbers<[1], [0], [0], [1], [0, 0, 1, 1], [], []>} : vector<128x128xbf16>, vector<128x256xbf16>, vector<128x256xf32> -> vector<128x256xf32>
    %c6_108 = arith.constant 6 : index
    %c0_109 = arith.constant 0 : index
    %c0_110 = arith.constant 0 : index
    %148 = vector.load %arg7[%c6_108, %c0_109, %c0_110] : memref<8x1x256xf32, #tpu.memory_space<vmem>>, vector<1x1x256xf32>
    %149 = vector.shape_cast %148 : vector<1x1x256xf32> to vector<1x256xf32>
    %150 = vector.broadcast %149 : vector<1x256xf32> to vector<128x256xf32>
    %151 = arith.addf %147, %150 : vector<128x256xf32>
    %152 = arith.addf %131, %151 : vector<128x256xf32>
    %cst_111 = arith.constant 0.000000e+00 : f32
    %153 = vector.broadcast %cst_111 : f32 to vector<128x256xf32>
    %154 = arith.maximumf %152, %153 : vector<128x256xf32>
    %155 = arith.truncf %154 : vector<128x256xf32> to vector<128x256xbf16>
    %c7 = arith.constant 7 : index
    %c0_112 = arith.constant 0 : index
    %c0_113 = arith.constant 0 : index
    %156 = vector.load %arg4[%c7, %c0_112, %c0_113] : memref<8x256x128xbf16, #tpu.memory_space<vmem>>, vector<1x256x128xbf16>
    %157 = vector.shape_cast %156 : vector<1x256x128xbf16> to vector<256x128xbf16>
    %cst_114 = arith.constant dense<0.000000e+00> : vector<128x128xf32>
    %158 = tpu.matmul %155, %157, %cst_114 {dimension_numbers = #tpu.dot_dimension_numbers<[1], [0], [0], [1], [0, 0, 1, 1], [], []>} : vector<128x256xbf16>, vector<256x128xbf16>, vector<128x128xf32> -> vector<128x128xf32>
    %c7_115 = arith.constant 7 : index
    %c0_116 = arith.constant 0 : index
    %c0_117 = arith.constant 0 : index
    %159 = vector.load %arg5[%c7_115, %c0_116, %c0_117] : memref<8x1x128xf32, #tpu.memory_space<vmem>>, vector<1x1x128xf32>
    %160 = vector.shape_cast %159 : vector<1x1x128xf32> to vector<1x128xf32>
    %161 = vector.broadcast %160 : vector<1x128xf32> to vector<128x128xf32>
    %162 = arith.addf %158, %161 : vector<128x128xf32>
    %cst_118 = arith.constant 0.000000e+00 : f32
    %163 = vector.broadcast %cst_118 : f32 to vector<128x128xf32>
    %164 = arith.maximumf %162, %163 : vector<128x128xf32>
    %165 = arith.truncf %164 : vector<128x128xf32> to vector<128x128xbf16>
    %c7_119 = arith.constant 7 : index
    %c0_120 = arith.constant 0 : index
    %c0_121 = arith.constant 0 : index
    %166 = vector.load %arg6[%c7_119, %c0_120, %c0_121] : memref<8x128x256xbf16, #tpu.memory_space<vmem>>, vector<1x128x256xbf16>
    %167 = vector.shape_cast %166 : vector<1x128x256xbf16> to vector<128x256xbf16>
    %cst_122 = arith.constant dense<0.000000e+00> : vector<128x256xf32>
    %168 = tpu.matmul %165, %167, %cst_122 {dimension_numbers = #tpu.dot_dimension_numbers<[1], [0], [0], [1], [0, 0, 1, 1], [], []>} : vector<128x128xbf16>, vector<128x256xbf16>, vector<128x256xf32> -> vector<128x256xf32>
    %c7_123 = arith.constant 7 : index
    %c0_124 = arith.constant 0 : index
    %c0_125 = arith.constant 0 : index
    %169 = vector.load %arg7[%c7_123, %c0_124, %c0_125] : memref<8x1x256xf32, #tpu.memory_space<vmem>>, vector<1x1x256xf32>
    %170 = vector.shape_cast %169 : vector<1x1x256xf32> to vector<1x256xf32>
    %171 = vector.broadcast %170 : vector<1x256xf32> to vector<128x256xf32>
    %172 = arith.addf %168, %171 : vector<128x256xf32>
    %173 = arith.addf %152, %172 : vector<128x256xf32>
    %cst_126 = arith.constant 0.000000e+00 : f32
    %174 = vector.broadcast %cst_126 : f32 to vector<128x256xf32>
    %175 = arith.maximumf %173, %174 : vector<128x256xf32>
    %176 = arith.truncf %175 : vector<128x256xf32> to vector<128x256xbf16>
    %c0_127 = arith.constant 0 : index
    %c0_128 = arith.constant 0 : index
    %177 = vector.load %arg8[%c0_127, %c0_128] : memref<256x256xbf16, #tpu.memory_space<vmem>>, vector<256x256xbf16>
    %cst_129 = arith.constant dense<0.000000e+00> : vector<128x256xf32>
    %178 = tpu.matmul %176, %177, %cst_129 {dimension_numbers = #tpu.dot_dimension_numbers<[1], [0], [0], [1], [0, 0, 1, 1], [], []>} : vector<128x256xbf16>, vector<256x256xbf16>, vector<128x256xf32> -> vector<128x256xf32>
    %c0_130 = arith.constant 0 : index
    %c0_131 = arith.constant 0 : index
    %179 = vector.load %arg9[%c0_130, %c0_131] : memref<1x256xf32, #tpu.memory_space<vmem>>, vector<1x256xf32>
    %180 = vector.broadcast %179 : vector<1x256xf32> to vector<128x256xf32>
    %181 = arith.addf %178, %180 : vector<128x256xf32>
    %cst_132 = arith.constant 0.000000e+00 : f32
    %182 = vector.broadcast %cst_132 : f32 to vector<128x256xf32>
    %183 = arith.maximumf %181, %182 : vector<128x256xf32>
    %c0_133 = arith.constant 0 : index
    %c0_134 = arith.constant 0 : index
    %184 = vector.load %arg10[%c0_133, %c0_134] : memref<128x256xf32, #tpu.memory_space<vmem>>, vector<128x256xf32>
    tpu.vector_store %arg10[%c0_133, %c0_134], %183 {strides = array<i32>} : memref<128x256xf32, #tpu.memory_space<vmem>>, vector<128x256xf32>,
    return
  }
  func.func @transform_0(%arg0: i32) -> (i32, i32) {
    %c0_i32 = arith.constant 0 : i32
    %c0_i32_0 = arith.constant 0 : i32
    return %arg0, %c0_i32 : i32, i32
  }
  func.func @transform_1(%arg0: i32) -> (i32, i32) {
    %c0_i32 = arith.constant 0 : i32
    %c0_i32_0 = arith.constant 0 : i32
    %c0_i32_1 = arith.constant 0 : i32
    return %c0_i32, %c0_i32_0 : i32, i32
  }
  func.func @transform_2(%arg0: i32) -> (i32, i32) {
    %c0_i32 = arith.constant 0 : i32
    %c0_i32_0 = arith.constant 0 : i32
    %c0_i32_1 = arith.constant 0 : i32
    return %c0_i32, %c0_i32_0 : i32, i32
  }
  func.func @transform_3(%arg0: i32) -> (i32, i32, i32) {
    %c0_i32 = arith.constant 0 : i32
    %c0_i32_0 = arith.constant 0 : i32
    %c0_i32_1 = arith.constant 0 : i32
    %c0_i32_2 = arith.constant 0 : i32
    return %c0_i32, %c0_i32_0, %c0_i32_1 : i32, i32, i32
  }
  func.func @transform_4(%arg0: i32) -> (i32, i32, i32) {
    %c0_i32 = arith.constant 0 : i32
    %c0_i32_0 = arith.constant 0 : i32
    %c0_i32_1 = arith.constant 0 : i32
    %c0_i32_2 = arith.constant 0 : i32
    return %c0_i32, %c0_i32_0, %c0_i32_1 : i32, i32, i32
  }
  func.func @transform_5(%arg0: i32) -> (i32, i32, i32) {
    %c0_i32 = arith.constant 0 : i32
    %c0_i32_0 = arith.constant 0 : i32
    %c0_i32_1 = arith.constant 0 : i32
    %c0_i32_2 = arith.constant 0 : i32
    return %c0_i32, %c0_i32_0, %c0_i32_1 : i32, i32, i32
  }
  func.func @transform_6(%arg0: i32) -> (i32, i32, i32) {
    %c0_i32 = arith.constant 0 : i32
    %c0_i32_0 = arith.constant 0 : i32
    %c0_i32_1 = arith.constant 0 : i32
    %c0_i32_2 = arith.constant 0 : i32
    return %c0_i32, %c0_i32_0, %c0_i32_1 : i32, i32, i32
  }
  func.func @transform_7(%arg0: i32) -> (i32, i32) {
    %c0_i32 = arith.constant 0 : i32
    %c0_i32_0 = arith.constant 0 : i32
    %c0_i32_1 = arith.constant 0 : i32
    return %c0_i32, %c0_i32_0 : i32, i32
  }
  func.func @transform_8(%arg0: i32) -> (i32, i32) {
    %c0_i32 = arith.constant 0 : i32
    %c0_i32_0 = arith.constant 0 : i32
    %c0_i32_1 = arith.constant 0 : i32
    return %c0_i32, %c0_i32_0 : i32, i32
  }
  func.func @transform_9(%arg0: i32) -> (i32, i32) {
    %c0_i32 = arith.constant 0 : i32
    %c0_i32_0 = arith.constant 0 : i32
    return %arg0, %c0_i32 : i32, i32
  }
}

</mosaic_0001>

<bundles_post_ra>
// kernel: tpu_custom_call.1
= control target key start
LH: loop header
LB: loop body
LE: loop exit
PB: predicated region body
PF: predicated region fallthrough
CT: control target
= control target key end

     0   :  { %s9784_s0 = inlined_call_operand.hbm [shape: bf16[384,256], index: 0, kind: input, shape index: {}]   ;;  %s9785_s1 = inlined_call_operand.hbm [shape: bf16[256,256], index: 1, kind: input, shape index: {}]   ;;  %s9786_s2 = inlined_call_operand.vmem [shape: f32[1,256], index: 2, kind: input, shape index: {}]   ;;  %s9787_s3 = inlined_call_operand.hbm [shape: bf16[8,256,128], index: 3, kind: input, shape index: {}]   ;;  %s9788_s4 = inlined_call_operand.hbm [shape: f32[8,1,128], index: 4, kind: input, shape index: {}]   ;;  %s9789_s5 = inlined_call_operand.hbm [shape: bf16[8,128,256], index: 5, kind: input, shape index: {}]   ;;  %s9790_s6 = inlined_call_operand.vmem [shape: f32[8,1,256], index: 6, kind: input, shape index: {}]   ;;  %s9791_s7 = inlined_call_operand.hbm [shape: bf16[256,256], index: 7, kind: input, shape index: {}]   ;;  %s9792_s8 = inlined_call_operand.vmem [shape: f32[1,256], index: 8, kind: input, shape index: {}]   ;;  %s9793_s9 = inlined_call_operand.hbm [shape: f32[384,256], index: 9, kind: output, shape index: {}]  }
   0x1   :  { %9818 = sst [smem:[#allocation33_spill]] %s9785_s1 }
   0x2   :  { %9819 = sst [smem:[#allocation34_spill]] %s9788_s4 }
   0x3   :  { %9820 = sst [smem:[#allocation35_spill]] %s9793_s9 }
   0x4   :  { %14 = vsyncpa [#allocation3], 0 }
   0x5   :  { %16 = vsyncpa [#allocation3 + $0x1], 0 }
   0x6   :  { %17 = vsyncpa [#allocation6], 0 }
   0x7   :  { %18 = vsyncpa [#allocation9], 0 }
   0x8   :  { %19 = vsyncpa [#allocation12], 0 }
   0x9   :  { %20 = vsyncpa [#allocation4], 0 }
   0xa   :  { %22 = vsyncpa [#allocation4 + $0x1], 0  ;;  %s7677_s30 = smov 0   ;;  %s7679_s10 = smov 0  }
   0xb   :  { %s7681_s11 = smov 0   ;;  %s7683_s12 = smov 0  }
   0xc LB: > { %s7611_s13 = smov [#allocation5]   ;;  %s7698_s15 = sadd.s32 4294967295, %s7609_s12   ;;  %s7609_s12 = sphi %s7683_s12, %s9875_s12   ;;  %s7605_s11 = sphi %s7681_s11, %s9874_s11   ;;  %s7601_s10 = sphi %s7679_s10, %s9873_s10   ;;  %s7597_s30 = sphi %s7677_s30, %s9872_s30  }
   0xd   : > { %s265_s14 = sshll.u32 %s7611_s13, 4  ;;  %p5891_p0 = scmp.ge.s32.totalorder %s7609_s12, 1  ;;  %s7703_s14 = int_to_ptr.vmem [resolvable:$true] %s265_s14 }
   0xe   : > { %p9797_p1 = scmp.eq.s32.totalorder %s7698_s15, 0  ;;  %p253_p2 = scmp.lt.s32.totalorder %s7609_s12, 4 }
   0xf   : > { %s7612_s17 = smov [#allocation8]   ;;  %s7613_s20 = smov [#allocation7]  }
  0x10   : > { %p7705_p3 = pnand %p5891_p0, %p253_p2  ;;  %s294_s18 = sshll.u32 %s7612_s17, 4  ;;  %s7717_s18 = int_to_ptr.vmem [resolvable:$true] %s294_s18 }
  0x11   : > { %s7719_s21 = sshll.u32 %s7613_s20, 4  ;;  %s9823_s1 = sld [smem:[#allocation33_spill]]  ;;  %s282_s21 = int_to_ptr.vmem [resolvable:$true] %s7719_s21 }
  0x12   : > { %s9821_s16 = scalar_select %p7705_p3, 1, 0 }
  0x13   : > { %p6839_p4 = pneg %p7705_p3 }
  0x15   : > { %p7713_p5 = pnand %p6839_p4, %p9797_p1 }
  0x17   : > { %s7361_s24 = scalar_lea.hbm %s9823_s1, 4096  ;;  %p7729_p7 = pneg %p7713_p5 }
  0x18   : > { %p7362_p6 = scmp.ne.s32.totalorder %s9823_s1, %s7361_s24  ;;  %p7368_p10 = scmp.lt.u32.totalorder %s7361_s24, %s9823_s1 }
  0x1a   : > { %p7364_p8 = pnand %p7729_p7, %p7362_p6 }
  0x1c   : > { %p7365_p9 = pneg %p7364_p8 }
  0x1e   : > { %p7370_p11 = pnand %p7368_p10, %p7365_p9 }
  0x20   : > { %7373 = shalt.err (!%p7370_p11)
}
  0x21   : > { %s7374_s13 = scalar_lea.vmem %s7703_s14, 4096  ;;  %p7382_p2 = scmp.lt.s32.totalorder %s7703_s14, %s7703_s14 }
  0x22   : > { %p7375_p12 = scmp.ne.s32.totalorder %s7703_s14, %s7374_s13  ;;  %p7383_p4 = scmp.lt.s32.totalorder %s7374_s13, %s7374_s13 }
  0x24   : > { %p7377_p13 = pnand %p7375_p12, %p7729_p7  ;;  %p7384_p6 = por %p7383_p4, %p7382_p2 }
  0x26   : > { %p7378_p0 = pneg %p7377_p13 }
  0x28   : > { %p7385_p8 = pnand %p7384_p6, %p7378_p0 }
  0x2a   : > { %7388 = shalt.err (!%p7385_p8)
}
  0x2b   : > { %s9795_s17 = smov 128   ;;  %s9799_s20 = smov 8  }
  0x2c   : > { %6842 = dma.hbm_to_vmem [thread:$0]  (!%p7713_p5), %s9823_s1, 4096, %s7703_s14, [#allocation6], %s9795_s17, %s9795_s17, %s9799_s20  }
  0x2d   : > { %s9825_s4 = sld [smem:[#allocation34_spill]] }
  0x33   : > { %s7389_s26 = scalar_lea.hbm %s9825_s4, 128 }
  0x34   : > { %p7390_p9 = scmp.ne.s32.totalorder %s9825_s4, %s7389_s26  ;;  %p7396_p12 = scmp.lt.u32.totalorder %s7389_s26, %s9825_s4 }
  0x36   : > { %p7392_p10 = pnand %p7390_p9, %p7729_p7 }
  0x38   : > { %p7393_p11 = pneg %p7392_p10 }
  0x3a   : > { %p7398_p13 = pnand %p7396_p12, %p7393_p11 }
  0x3c   : > { %7401 = shalt.err (!%p7398_p13)
}
  0x3d   : > { %s7402_s14 = scalar_lea.vmem %s7717_s18, 128  ;;  %p7410_p6 = scmp.lt.s32.totalorder %s7717_s18, %s7717_s18 }
  0x3e   : > { %p7403_p0 = scmp.ne.s32.totalorder %s7717_s18, %s7402_s14  ;;  %p7411_p8 = scmp.lt.s32.totalorder %s7402_s14, %s7402_s14 }
  0x40   : > { %p7405_p2 = pnand %p7403_p0, %p7729_p7  ;;  %p7412_p9 = por %p7411_p8, %p7410_p6 }
  0x42   : > { %p7406_p4 = pneg %p7405_p2 }
  0x44   : > { %p7413_p10 = pnand %p7412_p9, %p7406_p4 }
  0x46   : > { %7416 = shalt.err (!%p7413_p10)
}
  0x47   : > { %s7616_s22 = smov 16   ;;  %s7617_s9 = smov 1  }
  0x48   : > { %6848 = dma.hbm_to_vmem [thread:$0]  (!%p7713_p5), %s9825_s4, 128, %s7717_s18, [#allocation9], %s7616_s22, %s7616_s22, %s7617_s9  }
  0x49   : > { %s7417_s28 = scalar_lea.hbm %s9787_s3, 16384 }
  0x4a   : > { %p7418_p11 = scmp.ne.s32.totalorder %s9787_s3, %s7417_s28  ;;  %p7424_p0 = scmp.lt.u32.totalorder %s7417_s28, %s9787_s3 }
  0x4c   : > { %p7420_p12 = pnand %p7418_p11, %p7729_p7 }
  0x4e   : > { %p7421_p13 = pneg %p7420_p12 }
  0x50   : > { %p7426_p2 = pnand %p7424_p0, %p7421_p13 }
  0x52   : > { %7429 = shalt.err (!%p7426_p2)
}
  0x53   : > { %s7430_s23 = scalar_lea.vmem %s282_s21, 16384  ;;  %p7438_p9 = scmp.lt.s32.totalorder %s282_s21, %s282_s21 }
  0x54   : > { %p7431_p4 = scmp.ne.s32.totalorder %s282_s21, %s7430_s23  ;;  %p7439_p10 = scmp.lt.s32.totalorder %s7430_s23, %s7430_s23 }
  0x56   : > { %p7433_p6 = pnand %p7431_p4, %p7729_p7  ;;  %p7440_p1 = por %p7439_p10, %p7438_p9 }
  0x58   : > { %p7434_p8 = pneg %p7433_p6 }
  0x5a   : > { %p7441_p3 = pnand %p7440_p1, %p7434_p8 }
  0x5c   : > { %7444 = shalt.err (!%p7441_p3)
}
  0x5d   : > { %s7618_s18 = smov 64   ;;  %s7619_s22 = smov 4  }
  0x5e   : > { %6845 = dma.hbm_to_vmem [thread:$0]  (!%p7713_p5), %s9787_s3, 16384, %s282_s21, [#allocation6], %s7618_s18, %s7618_s18, %s7619_s22  }
  0x5f   : > { %s7620_s24 = smov [#allocation10]   ;;  %s7621_s26 = smov [#allocation11]  }
  0x60   : > { %s307_s25 = sshll.u32 %s7620_s24, 4  ;;  %s323_s28 = sshll.u32 %s7621_s26, 4  ;;  %s308_s25 = int_to_ptr.vmem [resolvable:$true] %s307_s25  ;;  %s324_s28 = int_to_ptr.vmem [resolvable:$true] %s323_s28 }
  0x61   : > { %s7445_s14 = scalar_lea.hbm %s9789_s5, 16384 }
  0x62   : > { %p7446_p1 = scmp.ne.s32.totalorder %s9789_s5, %s7445_s14  ;;  %p7452_p12 = scmp.lt.u32.totalorder %s7445_s14, %s9789_s5 }
  0x64   : > { %p7448_p3 = pnand %p7446_p1, %p7729_p7 }
  0x66   : > { %p7449_p11 = pneg %p7448_p3 }
  0x68   : > { %p7454_p13 = pnand %p7452_p12, %p7449_p11 }
  0x6a   : > { %7457 = shalt.err (!%p7454_p13)
}
  0x6b   : > { %s7458_s21 = scalar_lea.vmem %s308_s25, 16384  ;;  %p7466_p6 = scmp.lt.s32.totalorder %s308_s25, %s308_s25 }
  0x6c   : > { %p7459_p0 = scmp.ne.s32.totalorder %s308_s25, %s7458_s21  ;;  %p7467_p8 = scmp.lt.s32.totalorder %s7458_s21, %s7458_s21 }
  0x6e   : > { %p7461_p2 = pnand %p7459_p0, %p7729_p7  ;;  %p7468_p9 = por %p7467_p8, %p7466_p6 }
  0x70   : > { %p7462_p4 = pneg %p7461_p2 }
  0x72   : > { %p7469_p10 = pnand %p7468_p9, %p7462_p4 }
  0x74   : > { %7472 = shalt.err (!%p7469_p10)
}
  0x75   : > { %s9826_s20 = smov 8   ;;  %s9827_s18 = smov 128  }
  0x76   : > { %6851 = dma.hbm_to_vmem [thread:$0]  (!%p7713_p5), %s9789_s5, 16384, %s308_s25, [#allocation9], %s9827_s18, %s9827_s18, %s9826_s20  }
  0x77   : > { %s7473_s9 = scalar_lea.hbm %s9791_s7, 4096 }
  0x78   : > { %p7474_p1 = scmp.ne.s32.totalorder %s9791_s7, %s7473_s9  ;;  %p7480_p12 = scmp.lt.u32.totalorder %s7473_s9, %s9791_s7 }
  0x7a   : > { %p7476_p3 = pnand %p7474_p1, %p7729_p7 }
  0x7c   : > { %p7477_p11 = pneg %p7476_p3 }
  0x7e   : > { %p7482_p13 = pnand %p7480_p12, %p7477_p11 }
  0x80   : > { %7485 = shalt.err (!%p7482_p13)
}
  0x81   : > { %s7486_s14 = scalar_lea.vmem %s324_s28, 4096  ;;  %p7494_p6 = scmp.lt.s32.totalorder %s324_s28, %s324_s28 }
  0x82   : > { %p7487_p0 = scmp.ne.s32.totalorder %s324_s28, %s7486_s14  ;;  %p7495_p8 = scmp.lt.s32.totalorder %s7486_s14, %s7486_s14 }
  0x84   : > { %p7489_p2 = pnand %p7487_p0, %p7729_p7  ;;  %p7496_p9 = por %p7495_p8, %p7494_p6 }
  0x86   : > { %p7490_p4 = pneg %p7489_p2 }
  0x88   : > { %p7497_p10 = pnand %p7496_p9, %p7490_p4 }
  0x8a   : > { %7500 = shalt.err (!%p7497_p10)
}
  0x8b   : > { %6854 = dma.hbm_to_vmem [thread:$0]  (!%p7713_p5), %s9791_s7, 4096, %s324_s28, [#allocation12], %s9827_s18, %s9827_s18, %s9826_s20  }
  0x8c   : > { %s5890_s19 = sadd.s32 4294967294, %s7609_s12   ;;  %s7839_s27 = sadd.s32 1, %s7609_s12  }
  0x8d   : > { %s35_s21 = sadd.s32 1, %s7605_s11  ;;  %s32_s1 = ssub.s32 %s7609_s12, %s7839_s27 }
  0x8e   : > { %p42_p7 = scmp.ne.s32.totalorder %s7605_s11, %s7601_s10  ;;  %p33_p1 = scmp.eq.s32.totalorder %s32_s1, 0 }
  0x8f   : > { %p43_p3 = scmp.eq.s32.totalorder %s7609_s12, 0  ;;  %p48_p11 = scmp.ne.s32.totalorder %s7601_s10, %s7597_s30 }
  0x90   : > { %p240_p12 = scmp.eq.s32.totalorder %s7698_s15, 2  ;;  %p9828_p0 = scmp.eq.s32.totalorder %s7698_s15, 0 }
  0x91   : > { %s7851_s4 = scalar_select %p33_p1, %s7605_s11, %s35_s21  }
  0x92   : > { %p44_p13 = por %p43_p3, %p42_p7  ;;  %p7855_p2 = por %p9828_p0, %p48_p11 }
  0x93   : > { %p7859_p5 = por %p240_p12, %p42_p7  ;;  %p246_p4 = scmp.eq.s32.totalorder %s5890_s19, 2 }
  0x94   : > { %p6868_p6 = scmp.lt.s32.totalorder %s7609_s12, 3  ;;  %s340_s17 = sand.u32 1, %s7605_s11  }
  0x95   : > { %s9830_s28 = scalar_select %p7859_p5, 1, 0 }
  0x96   : > { %p7865_p8 = por %p246_p4, %p48_p11  ;;  %s5898_s24 = sshll.u32 %s340_s17, 7 }
  0x97   : > { %s6268_s26 = sshll.u32 %s7609_s12, 11  ;;  %s344_s25 = scalar_lea.vmem [#allocation2], %s5898_s24 }
  0x98   : > { %s9831_s9 = scalar_select %p7865_p8, 1, 0 }
  0x99   : > { %s7873_s14 = scalar_lea.hbm %s9784_s0, %s6268_s26  ;;  %s352_s23 = sshll.u32 %s344_s25, 4  ;;  %s7879_s23 = int_to_ptr.vmem [resolvable:$true] %s352_s23 }
  0x9a   : > { %p7875_p9 = pnand %p6868_p6, %p44_p13  ;;  %s7881_s21 = scalar_lea.sflag [#allocation3], %s340_s17 }
  0x9b   : > { %s7501_s1 = scalar_lea.hbm %s7873_s14, 2048  ;;  %s7506_s29 = scalar_lea.hbm %s9784_s0, 6144 }
  0x9c   : > { %p7502_p10 = scmp.ne.s32.totalorder %s7873_s14, %s7501_s1  ;;  %p7503_p7 = pneg %p7875_p9 }
  0x9d   : > { %p7507_p11 = scmp.lt.u32.totalorder %s7873_s14, %s9784_s0  ;;  %p7508_p12 = scmp.lt.u32.totalorder %s7506_s29, %s7501_s1 }
  0x9e   : > { %p7504_p1 = pnand %p7503_p7, %p7502_p10  ;;  %p7510_p0 = scmp.lt.u32.totalorder %s7501_s1, %s7873_s14 }
  0x9f   : > { %p7509_p13 = por %p7508_p12, %p7507_p11 }
  0xa0   : > { %p7505_p3 = pneg %p7504_p1 }
  0xa1   : > { %p7511_p4 = por %p7510_p0, %p7509_p13 }
  0xa3   : > { %p7512_p6 = pnand %p7511_p4, %p7505_p3 }
  0xa5   : > { %7515 = shalt.err (!%p7512_p6)
}
  0xa6   : > { %s7516_s17 = scalar_lea.vmem %s7879_s23, 2048  ;;  %s7622_s24 = smov [#allocation2]  }
  0xa7   : > { %p7517_p10 = scmp.ne.s32.totalorder %s7879_s23, %s7516_s17  ;;  %s7521_s26 = sshll.u32 %s7622_s24, 4  ;;  %s7522_s26 = int_to_ptr.vmem [resolvable:$false] %s7521_s26 }
  0xa8   : > { %s7523_s13 = scalar_lea.vmem %s7522_s26, 4096  ;;  %p7524_p5 = scmp.lt.s32.totalorder %s7879_s23, %s7522_s26 }
  0xa9   : > { %p7519_p1 = pnand %p7517_p10, %p7503_p7  ;;  %p7525_p11 = scmp.lt.s32.totalorder %s7523_s13, %s7516_s17 }
  0xab   : > { %p7520_p8 = pneg %p7519_p1  ;;  %p7526_p12 = por %p7525_p11, %p7524_p5 }
  0xad   : > { %p7527_p13 = pnand %p7526_p12, %p7520_p8 }
  0xaf   : > { %7530 = shalt.err (!%p7527_p13)
}
  0xb0   : > { %6858 = dma.hbm_to_vmem [thread:$0]  (!%p7875_p9), %s7873_s14, 2048, %s7879_s23, %s7881_s21, %s9827_s18, %s9827_s18, %s9826_s20  }
  0xb1   : > { %p9833_p7 = scmp.ne.s32.totalorder %s9821_s16, 0 }
  0xb3   : > { %364 = sbr.rel (%p9833_p7) target bundleno = 4353 (0x1101), region = 56 }
  0xba   : > { %s7915_s1 = sand.u32 1, %s7601_s10  }
  0xbb   : > { %s5903_s29 = sshll.u32 %s7915_s1, 7  ;;  %s367_s25 = scalar_lea.sflag [#allocation3], %s7915_s1 }
  0xbc   : > { %s7919_s17 = scalar_lea.vmem [#allocation2], %s5903_s29 }
  0xbd   : > { %7576 = dma.done.wait (%p7855_p2), %s367_s25, 2048  }
  0xbe   : > { %7578 = vsyncadd (%p7855_p2), %s367_s25, 4294965248  ;;  %p9834_p5 = scmp.eq.s32.totalorder %s7698_s15, 0 }
  0xc0   : > { %7580 = dma.done.wait (%p9834_p5), [#allocation6], 20480   ;;  %p9835_p8 = pmov %p9834_p5 }
  0xc1   : > { %p9836_p9 = pmov %p9834_p5 }
  0xc2   : > { %7582 = vsyncadd (%p9835_p8), [#allocation6], 4294946816 }
  0xc3   : > { %7584 = dma.done.wait (%p9836_p9), [#allocation9], 16512   ;;  %p9837_p3 = pmov %p9834_p5 }
  0xc5   : > { %7586 = vsyncadd (%p9837_p3), [#allocation9], 4294950784  ;;  %p9838_p0 = pmov %p9837_p3 }
  0xc7   : > { %7588 = dma.done.wait (%p9838_p0), [#allocation12], 4096   ;;  %p9839_p4 = pmov %p9838_p0 }
  0xc8   : > { %v6921_v0 = vld [vmem:[#allocation5 + $0x4] ss:$8 sps:$4 sm:$0xff]   ;;  %v6923_v1 = vld [vmem:[#allocation5] ss:$8 sps:$4 sm:$0xff]   ;;  %v6924_v2 = vld [vmem:[#allocation5 + $0x14] ss:$8 sps:$4 sm:$0xff]  }
  0xc9   : > { %7590 = vsyncadd (%p9839_p4), [#allocation12], 4294963200  ;;  %728 = vmatprep.subr.bf16.mxu0 %v6921_v0  ;;  %v6926_v3 = vld [vmem:[#allocation5 + $0x10] ss:$8 sps:$4 sm:$0xff]   ;;  %v6927_v4 = vld [vmem:[#allocation5 + $0x24] ss:$8 sps:$4 sm:$0xff]  }
  0xca   : > { %729 = vmatpush1.bf16.msra.mxu0 %v6923_v1  ;;  %v6929_v5 = vld [vmem:[#allocation5 + $0x20] ss:$8 sps:$4 sm:$0xff]   ;;  %v6930_v6 = vld [vmem:[#allocation5 + $0x34] ss:$8 sps:$4 sm:$0xff]   ;;  %v6932_v7 = vld [vmem:[#allocation5 + $0x30] ss:$8 sps:$4 sm:$0xff]   ;;  %v478_v1 = vlaneseq }
  0xcb   : > { %730 = vmatprep.subr.bf16.mxu0 %v6924_v2  ;;  %v6933_v8 = vld [vmem:[#allocation5 + $0x44] ss:$8 sps:$4 sm:$0xff]   ;;  %v6935_v9 = vld [vmem:[#allocation5 + $0x40] ss:$8 sps:$4 sm:$0xff]   ;;  %v6936_v10 = vld [vmem:[#allocation5 + $0x54] ss:$8 sps:$4 sm:$0xff]  }
  0xcc   : > { %v6938_v11 = vld [vmem:[#allocation5 + $0x50] ss:$8 sps:$4 sm:$0xff]   ;;  %v6939_v12 = vld [vmem:[#allocation5 + $0x64] ss:$8 sps:$4 sm:$0xff]   ;;  %v6941_v14 = vld [vmem:[#allocation5 + $0x60] ss:$8 sps:$4 sm:$0xff]  }
  0xcd   : > { %v6971_v13 = vld [vmem:[%s7919_s17 + $0x4] ss:$8 sps:$4 sm:$0xff]   ;;  %v6942_v15 = vld [vmem:[#allocation5 + $0x74] ss:$8 sps:$4 sm:$0xff]   ;;  %v6944_v16 = vld [vmem:[#allocation5 + $0x70] ss:$8 sps:$4 sm:$0xff]  }
  0xce   : > { %731 = vmatpush1.bf16.msra.mxu0 %v6926_v3  ;;  %760 = vmatprep.mubr.bf16.mxu0 %v6971_v13  ;;  %v6945_v17 = vld [vmem:[#allocation5 + $0x84] ss:$8 sps:$4 sm:$0xff]   ;;  %v6947_v18 = vld [vmem:[#allocation5 + $0x80] ss:$8 sps:$4 sm:$0xff]   ;;  %v6948_v19 = vld [vmem:[#allocation5 + $0x94] ss:$8 sps:$4 sm:$0xff]  }
  0xcf   : > { %732 = vmatprep.subr.bf16.mxu0 %v6927_v4  ;;  %v6993_v20 = vld [vmem:[#allocation7 + $0x40] sm:$0xff]   ;;  %v6950_v21 = vld [vmem:[#allocation5 + $0x90] ss:$8 sps:$4 sm:$0xff]   ;;  %v6995_v24 = vld [vmem:[#allocation7 + $0x48] sm:$0xff]   ;;  %v479_v2 = vshrl.u32 %v478_v1, 7  ;;  %s5909_s19 = sshll.u32 %s7915_s1, 8 }
  0xd0   : > { %v6994_v22 = vld [vmem:[#allocation7] sm:$0xff]   ;;  %6271 = vmatprep.subr.bf16.mxu1 %v6993_v20  ;;  %v6996_v25 = vld [vmem:[#allocation7 + $0x8] sm:$0xff]   ;;  %v6997_v26 = vld [vmem:[#allocation7 + $0x50] sm:$0xff]   ;;  %s9672_s21 = scalar_lea.vmem [#allocation13], %s5909_s19  ;;  %s6270_s24 = sshll.u32 %s7698_s15, 12 }
  0xd1   : > { %v6951_v23 = vld [vmem:[#allocation5 + $0xa4] ss:$8 sps:$4 sm:$0xff]   ;;  %6272 = vmatpush3.bf16.msra.mxu1 %v6994_v22  ;;  %v6953_v27 = vld [vmem:[#allocation5 + $0xa0] ss:$8 sps:$4 sm:$0xff]   ;;  %v6954_v28 = vld [vmem:[#allocation5 + $0xb4] ss:$8 sps:$4 sm:$0xff]  }
  0xd2   : > { %733 = vmatpush1.bf16.msra.mxu0 %v6929_v5  ;;  %6273 = vmatprep.subr.bf16.mxu1 %v6995_v24  ;;  %v6998_v29 = vld [vmem:[#allocation7 + $0x10] sm:$0xff]   ;;  %v6999_v30 = vld [vmem:[#allocation7 + $0x58] sm:$0xff]   ;;  %v6957_v32 = vld [vmem:[#allocation5 + $0xc4] ss:$8 sps:$4 sm:$0xff]   ;;  %v7953_v3 = vsub.s32 1, %v479_v2  ;;  %v7958_v5 = vsub.s32 0, %v479_v2 }
  0xd3   : > { %734 = vmatprep.subr.bf16.mxu0 %v6930_v6  ;;  %v6956_v31 = vld [vmem:[#allocation5 + $0xb0] ss:$8 sps:$4 sm:$0xff]   ;;  %v7001_v34 = vld [vmem:[#allocation7 + $0x60] sm:$0xff]   ;;  %v6960_v37 = vld [vmem:[#allocation5 + $0xd4] ss:$8 sps:$4 sm:$0xff]   ;;  %s5769_s26 = sshll.u32 %s9672_s21, 4  ;;  %s9738_s26 = int_to_ptr.vmem [resolvable:$true] %s5769_s26 }
  0xd4   : > { %v7000_v33 = vld [vmem:[#allocation7 + $0x18] sm:$0xff]   ;;  %v6959_v35 = vld [vmem:[#allocation5 + $0xc0] ss:$8 sps:$4 sm:$0xff]   ;;  %v6963_v40 = vld [vmem:[#allocation5 + $0xe4] ss:$8 sps:$4 sm:$0xff]   ;;  %s9869_s25 = sld [smem:[#allocation35_spill]] }
  0xd5   : > { %6274 = vmatpush3.bf16.msra.mxu1 %v6996_v25  ;;  %v7002_v36 = vld [vmem:[#allocation7 + $0x20] sm:$0xff]   ;;  %v7003_v38 = vld [vmem:[#allocation7 + $0x68] sm:$0xff]   ;;  %v6962_v39 = vld [vmem:[#allocation5 + $0xd0] ss:$8 sps:$4 sm:$0xff]   ;;  %s5755_s15 = scalar_lea.sflag [#allocation4], %s7915_s1  ;;  %s7531_s16 = scalar_lea.vmem %s9738_s26, 4096 }
  0xd6   : > { %735 = vmatpush1.bf16.msra.mxu0 %v6932_v7  ;;  %6275 = vmatprep.subr.bf16.mxu1 %v6997_v26  ;;  %v6965_v41 = vld [vmem:[#allocation5 + $0xe0] ss:$8 sps:$4 sm:$0xff]   ;;  %v6966_v42 = vld [vmem:[#allocation5 + $0xf4] ss:$8 sps:$4 sm:$0xff]   ;;  %v6968_v43 = vld [vmem:[#allocation5 + $0xf0] ss:$8 sps:$4 sm:$0xff]   ;;  %p7532_p2 = scmp.ne.s32.totalorder %s9738_s26, %s7531_s16 }
  0xd7   : > { %736 = vmatprep.subr.bf16.mxu0 %v6933_v8  ;;  %v6969_v44 = vld [vmem:[%s7919_s17] ss:$8 sps:$4 sm:$0xff]   ;;  %v6972_v45 = vld [vmem:[%s7919_s17 + $0x14] ss:$8 sps:$4 sm:$0xff]   ;;  %v6974_v46 = vld [vmem:[%s7919_s17 + $0x10] ss:$8 sps:$4 sm:$0xff]  }
  0xd8   : > { %v6975_v47 = vld [vmem:[%s7919_s17 + $0x24] ss:$8 sps:$4 sm:$0xff]   ;;  %v6977_v48 = vld [vmem:[%s7919_s17 + $0x20] ss:$8 sps:$4 sm:$0xff]   ;;  %v6978_v49 = vld [vmem:[%s7919_s17 + $0x34] ss:$8 sps:$4 sm:$0xff]  }
  0xd9   : > { %6276 = vmatpush3.bf16.msra.mxu1 %v6998_v29  ;;  %v6980_v50 = vld [vmem:[%s7919_s17 + $0x30] ss:$8 sps:$4 sm:$0xff]   ;;  %v6981_v51 = vld [vmem:[%s7919_s17 + $0x44] ss:$8 sps:$4 sm:$0xff]   ;;  %v6983_v52 = vld [vmem:[%s7919_s17 + $0x40] ss:$8 sps:$4 sm:$0xff]  }
  0xda   : > { %737 = vmatpush1.bf16.msra.mxu0 %v6935_v9  ;;  %6277 = vmatprep.subr.bf16.mxu1 %v6999_v30  ;;  %v6984_v53 = vld [vmem:[%s7919_s17 + $0x54] ss:$8 sps:$4 sm:$0xff]   ;;  %v6986_v54 = vld [vmem:[%s7919_s17 + $0x50] ss:$8 sps:$4 sm:$0xff]   ;;  %v6987_v55 = vld [vmem:[%s7919_s17 + $0x64] ss:$8 sps:$4 sm:$0xff]  }
  0xdb   : > { %738 = vmatprep.subr.bf16.mxu0 %v6936_v10  ;;  %v6989_v56 = vld [vmem:[%s7919_s17 + $0x60] ss:$8 sps:$4 sm:$0xff]   ;;  %v6990_v57 = vld [vmem:[%s7919_s17 + $0x74] ss:$8 sps:$4 sm:$0xff]   ;;  %v6992_v58 = vld [vmem:[%s7919_s17 + $0x70] ss:$8 sps:$4 sm:$0xff]   ;;  %s9736_s17 = scalar_lea.hbm %s9869_s25, %s6270_s24 }
  0xdc   : > { %v7004_v59 = vld [vmem:[#allocation7 + $0x28] sm:$0xff]   ;;  %v7005_v60 = vld [vmem:[#allocation7 + $0x70] sm:$0xff]   ;;  %v7007_v62 = vld [vmem:[#allocation7 + $0x78] sm:$0xff]   ;;  %p9870_p6 = scmp.ne.s32.totalorder %s9830_s28, 0  ;;  %s7624_s20 = smov [#allocation13]  }
  0xdd   : > { %6278 = vmatpush3.bf16.msra.mxu1 %v7000_v33  ;;  %v7006_v61 = vld [vmem:[#allocation7 + $0x30] sm:$0xff]   ;;  %v7008_v63 = vld [vmem:[#allocation7 + $0x38] sm:$0xff]   ;;  %v476_v4 = vld [vmem:[%s9786_s2] sm:$0x3]  ;;  %s7535_s18 = sshll.u32 %s7624_s20, 4  ;;  %s7536_s18 = int_to_ptr.vmem [resolvable:$false] %s7535_s18 }
  0xde   : > { %739 = vmatpush1.bf16.msra.mxu0 %v6938_v11  ;;  %6279 = vmatprep.subr.bf16.mxu1 %v7001_v34  ;;  %v7011_v0 = vld [vmem:[#allocation10 + $0x4] ss:$8 sps:$4 sm:$0xff]   ;;  %v7961_v6 = vrot.slane %v476_v4, %v7953_v3  ;;  %v7964_v7 = vrot.slane %v476_v4, %v7958_v5  ;;  %v7009_v22 = vld [vmem:[#allocation10] ss:$8 sps:$4 sm:$0xff]   ;;  %v7014_v25 = vld [vmem:[#allocation10 + $0x14] ss:$8 sps:$4 sm:$0xff]   ;;  %p7533_p10 = pnand %p7532_p2, %p9870_p6  ;;  %p7538_p11 = scmp.lt.s32.totalorder %s9738_s26, %s7536_s18 }
  0xdf   : > { %740 = vmatprep.subr.bf16.mxu0 %v6939_v12  ;;  %v7017_v34 = vld [vmem:[#allocation10 + $0x24] ss:$8 sps:$4 sm:$0xff]   ;;  %s7537_s22 = scalar_lea.vmem %s7536_s18, 8192 }
  0xe0   : > { %p7534_p1 = pneg %p7533_p10  ;;  %p7539_p12 = scmp.lt.s32.totalorder %s7537_s22, %s7531_s16 }
  0xe1   : > { %6280 = vmatpush3.bf16.msra.mxu1 %v7002_v36 }
  0xe2   : > { %741 = vmatpush1.bf16.msra.mxu0 %v6941_v14  ;;  %6281 = vmatprep.subr.bf16.mxu1 %v7003_v38  ;;  %p7540_p13 = por %p7539_p12, %p7538_p11 }
  0xe3   : > { %742 = vmatprep.subr.bf16.mxu0 %v6942_v15 }
  0xe4   : > { %p7541_p7 = pnand %p7540_p13, %p7534_p1 }
  0xe5   : > { %6282 = vmatpush3.bf16.msra.mxu1 %v7004_v59 }
  0xe6   : > { %743 = vmatpush1.bf16.msra.mxu0 %v6944_v16  ;;  %6283 = vmatprep.subr.bf16.mxu1 %v7005_v60 }
  0xe7   : > { %744 = vmatprep.subr.bf16.mxu0 %v6945_v17 }
  0xe9   : > { %6284 = vmatpush3.bf16.msra.mxu1 %v7006_v61  ;;  %v7026_v61 = vld [vmem:[#allocation10 + $0x54] ss:$8 sps:$4 sm:$0xff]  }
  0xea   : > { %745 = vmatpush1.bf16.msra.mxu0 %v6947_v18  ;;  %6285 = vmatprep.subr.bf16.mxu1 %v7007_v62 }
  0xeb   : > { %746 = vmatprep.subr.bf16.mxu0 %v6948_v19 }
  0xed   : > { %6286 = vmatpush3.bf16.msra.mxu1 %v7008_v63 }
  0xee   : > { %747 = vmatpush1.bf16.msra.mxu0 %v6950_v21  ;;  %1253 = vmatprep.subr.bf16.mxu1 %v7011_v0 }
  0xef   : > { %748 = vmatprep.subr.bf16.mxu0 %v6951_v23 }
  0xf2   : > { %749 = vmatpush1.bf16.msra.mxu0 %v6953_v27 }
  0xf3   : > { %750 = vmatprep.subr.bf16.mxu0 %v6954_v28 }
  0xf6   : > { %751 = vmatpush1.bf16.msra.mxu0 %v6956_v31 }
  0xf7   : > { %752 = vmatprep.subr.bf16.mxu0 %v6957_v32  ;;  %v7012_v32 = vld [vmem:[#allocation10 + $0x10] ss:$8 sps:$4 sm:$0xff]  }
  0xfa   : > { %753 = vmatpush1.bf16.msra.mxu0 %v6959_v35 }
  0xfb   : > { %754 = vmatprep.subr.bf16.mxu0 %v6960_v37 }
  0xfe   : > { %755 = vmatpush1.bf16.msra.mxu0 %v6962_v39 }
  0xff   : > { %756 = vmatprep.subr.bf16.mxu0 %v6963_v40  ;;  %v7015_v40 = vld [vmem:[#allocation10 + $0x20] ss:$8 sps:$4 sm:$0xff]  }
 0x102   : > { %757 = vmatpush1.bf16.msra.mxu0 %v6965_v41 }
 0x103   : > { %758 = vmatprep.subr.bf16.mxu0 %v6966_v42 }
 0x106   : > { %759 = vmatpush1.bf16.msra.mxu0 %v6968_v43  ;;  %v7020_v43 = vld [vmem:[#allocation10 + $0x34] ss:$8 sps:$4 sm:$0xff]  }
 0x109   : > { %761 = vmatmul.mubr.bf16.vlgmr.msra.gmra.mrb[0].mxu0 %v6969_v44 }
 0x10a   : > { %770 = vmatprep.mubr.bf16.mxu0 %v6972_v45 }
 0x111   : > { %771 = vmatmul.mubr.bf16.gmra.mrb[4].mxu0 %v6974_v46 }
 0x112   : > { %780 = vmatprep.mubr.bf16.mxu0 %v6975_v47 }
 0x119   : > { %781 = vmatmul.mubr.bf16.gmra.mrb[8].mxu0 %v6977_v48 }
 0x11a   : > { %790 = vmatprep.mubr.bf16.mxu0 %v6978_v49 }
 0x121   : > { %791 = vmatmul.mubr.bf16.gmra.mrb[12].mxu0 %v6980_v50  ;;  %v7018_v50 = vld [vmem:[#allocation10 + $0x30] ss:$8 sps:$4 sm:$0xff]  }
 0x122   : > { %800 = vmatprep.mubr.bf16.mxu0 %v6981_v51 }
 0x129   : > { %801 = vmatmul.mubr.bf16.gmra.mrb[16].mxu0 %v6983_v52  ;;  %v7023_v52 = vld [vmem:[#allocation10 + $0x44] ss:$8 sps:$4 sm:$0xff]  }
 0x12a   : > { %810 = vmatprep.mubr.bf16.mxu0 %v6984_v53 }
 0x131   : > { %811 = vmatmul.mubr.bf16.gmra.mrb[20].mxu0 %v6986_v54 }
 0x132   : > { %820 = vmatprep.mubr.bf16.mxu0 %v6987_v55 }
 0x139   : > { %821 = vmatmul.mubr.bf16.gmra.mrb[24].mxu0 %v6989_v56 }
 0x13a   : > { %830 = vmatprep.mubr.bf16.mxu0 %v6990_v57 }
 0x141   : > { %831 = vmatmul.mubr.bf16.gmra.mrb[28].mxu0 %v6992_v58  ;;  %v7021_v58 = vld [vmem:[#allocation10 + $0x40] ss:$8 sps:$4 sm:$0xff]  }
 0x1dc   : > { %v762_v8 = vpop.f32.mrb[0].mxu0 }
 0x1dd   : > { %v764_v9 = vpop.f32.mrb[1].mxu0  ;;  %v7970_v12 = vadd.f32 %v762_v8, %v7964_v7  ;;  %v7024_v8 = vld [vmem:[#allocation10 + $0x50] ss:$8 sps:$4 sm:$0xff]  }
 0x1de   : > { %v7967_v10 = vadd.f32 %v764_v9, %v7961_v6  ;;  %v766_v11 = vpop.f32.mrb[2].mxu0 }
 0x1df   : > { %v7973_v13 = vadd.f32 %v766_v11, %v7964_v7  ;;  %v768_v14 = vpop.f32.mrb[3].mxu0  ;;  %v841_v19 = vmax.f32 %v7970_v12, 0.0  ;;  %v7029_v11 = vld [vmem:[#allocation10 + $0x64] ss:$8 sps:$4 sm:$0xff]  }
 0x1e0   : > { %v7976_v15 = vadd.f32 %v768_v14, %v7961_v6  ;;  %v842_v17 = vmax.f32 %v7967_v10, 0.0 }
 0x1e1   : > { %v843_v16 = vmax.f32 %v7973_v13, 0.0 }
 0x1e2   : > { %v844_v18 = vmax.f32 %v7976_v15, 0.0 }
 0x1e3   : > { %v873_v24 = vpack.c.bf16 %v843_v16, %v841_v19 }
 0x1e4   : > { %v772_v20 = vpop.f32.mrb[4].mxu0  ;;  %v874_v21 = vpack.c.bf16 %v844_v18, %v842_v17 }
 0x1e5   : > { %v774_v23 = vpop.f32.mrb[5].mxu0  ;;  %v7986_v28 = vadd.f32 %v772_v20, %v7964_v7  ;;  %v7027_v20 = vld [vmem:[#allocation10 + $0x60] ss:$8 sps:$4 sm:$0xff]  }
 0x1e6   : > { %v7983_v26 = vadd.f32 %v774_v23, %v7961_v6  ;;  %v776_v27 = vpop.f32.mrb[6].mxu0  ;;  %1056 = vmatprep.mubr.bf16.mxu1 %v874_v21 }
 0x1e7   : > { %v7989_v29 = vadd.f32 %v776_v27, %v7964_v7  ;;  %v778_v30 = vpop.f32.mrb[7].mxu0  ;;  %1057 = vmatmul.mubr.bf16.vlgmr.msra.gmra.mrb[0].mxu1 %v873_v24  ;;  %v845_v37 = vmax.f32 %v7986_v28, 0.0 }
 0x1e8   : > { %v7992_v31 = vadd.f32 %v778_v30, %v7961_v6  ;;  %1254 = vmatpush1.bf16.msra.mxu1 %v7009_v22  ;;  %v846_v35 = vmax.f32 %v7983_v26, 0.0 }
 0x1e9   : > { %v847_v33 = vmax.f32 %v7989_v29, 0.0  ;;  %1255 = vmatprep.subr.bf16.mxu1 %v7014_v25 }
 0x1ea   : > { %v848_v36 = vmax.f32 %v7992_v31, 0.0 }
 0x1eb   : > { %v875_v42 = vpack.c.bf16 %v847_v33, %v845_v37 }
 0x1ec   : > { %v782_v38 = vpop.f32.mrb[8].mxu0  ;;  %v876_v39 = vpack.c.bf16 %v848_v36, %v846_v35  ;;  %1256 = vmatpush1.bf16.msra.mxu1 %v7012_v32 }
 0x1ed   : > { %v784_v41 = vpop.f32.mrb[9].mxu0  ;;  %1257 = vmatprep.subr.bf16.mxu1 %v7017_v34  ;;  %v8002_v46 = vadd.f32 %v782_v38, %v7964_v7 }
 0x1ee   : > { %v7999_v44 = vadd.f32 %v784_v41, %v7961_v6  ;;  %v786_v45 = vpop.f32.mrb[10].mxu0  ;;  %1064 = vmatprep.mubr.bf16.mxu1 %v876_v39 }
 0x1ef   : > { %v8005_v47 = vadd.f32 %v786_v45, %v7964_v7  ;;  %v788_v48 = vpop.f32.mrb[11].mxu0  ;;  %1065 = vmatmul.mubr.bf16.gmra.mrb[4].mxu1 %v875_v42  ;;  %v849_v55 = vmax.f32 %v8002_v46, 0.0 }
 0x1f0   : > { %v8008_v49 = vadd.f32 %v788_v48, %v7961_v6  ;;  %1258 = vmatpush1.bf16.msra.mxu1 %v7015_v40  ;;  %v850_v53 = vmax.f32 %v7999_v44, 0.0 }
 0x1f1   : > { %v851_v51 = vmax.f32 %v8005_v47, 0.0  ;;  %1259 = vmatprep.subr.bf16.mxu1 %v7020_v43 }
 0x1f2   : > { %v852_v54 = vmax.f32 %v8008_v49, 0.0 }
 0x1f3   : > { %v877_v60 = vpack.c.bf16 %v851_v51, %v849_v55 }
 0x1f4   : > { %v792_v56 = vpop.f32.mrb[12].mxu0  ;;  %v878_v57 = vpack.c.bf16 %v852_v54, %v850_v53  ;;  %1260 = vmatpush1.bf16.msra.mxu1 %v7018_v50 }
 0x1f5   : > { %v794_v59 = vpop.f32.mrb[13].mxu0  ;;  %1261 = vmatprep.subr.bf16.mxu1 %v7023_v52  ;;  %v8018_v0 = vadd.f32 %v792_v56, %v7964_v7 }
 0x1f6   : > { %v8015_v62 = vadd.f32 %v794_v59, %v7961_v6  ;;  %v796_v63 = vpop.f32.mrb[14].mxu0  ;;  %1072 = vmatprep.mubr.bf16.mxu1 %v878_v57 }
 0x1f7   : > { %v8021_v1 = vadd.f32 %v796_v63, %v7964_v7  ;;  %v798_v2 = vpop.f32.mrb[15].mxu0  ;;  %1073 = vmatmul.mubr.bf16.gmra.mrb[8].mxu1 %v877_v60  ;;  %v853_v17 = vmax.f32 %v8018_v0, 0.0 }
 0x1f8   : > { %v8024_v4 = vadd.f32 %v798_v2, %v7961_v6  ;;  %1262 = vmatpush1.bf16.msra.mxu1 %v7021_v58  ;;  %v854_v14 = vmax.f32 %v8015_v62, 0.0 }
 0x1f9   : > { %v855_v9 = vmax.f32 %v8021_v1, 0.0  ;;  %1263 = vmatprep.subr.bf16.mxu1 %v7026_v61 }
 0x1fa   : > { %v856_v16 = vmax.f32 %v8024_v4, 0.0 }
 0x1fb   : > { %v879_v22 = vpack.c.bf16 %v855_v9, %v853_v17 }
 0x1fc   : > { %v802_v18 = vpop.f32.mrb[16].mxu0  ;;  %v880_v19 = vpack.c.bf16 %v856_v16, %v854_v14  ;;  %1264 = vmatpush1.bf16.msra.mxu1 %v7024_v8 }
 0x1fd   : > { %v804_v21 = vpop.f32.mrb[17].mxu0  ;;  %1265 = vmatprep.subr.bf16.mxu1 %v7029_v11  ;;  %v8034_v25 = vadd.f32 %v802_v18, %v7964_v7 }
 0x1fe   : > { %v8031_v23 = vadd.f32 %v804_v21, %v7961_v6  ;;  %v806_v24 = vpop.f32.mrb[18].mxu0  ;;  %1080 = vmatprep.mubr.bf16.mxu1 %v880_v19 }
 0x1ff   : > { %v8037_v27 = vadd.f32 %v806_v24, %v7964_v7  ;;  %v808_v30 = vpop.f32.mrb[19].mxu0  ;;  %1081 = vmatmul.mubr.bf16.gmra.mrb[12].mxu1 %v879_v22  ;;  %v857_v36 = vmax.f32 %v8034_v25, 0.0 }
 0x200   : > { %v8040_v32 = vadd.f32 %v808_v30, %v7961_v6  ;;  %1266 = vmatpush1.bf16.msra.mxu1 %v7027_v20  ;;  %v858_v34 = vmax.f32 %v8031_v23, 0.0 }
 0x201   : > { %v859_v33 = vmax.f32 %v8037_v27, 0.0 }
 0x202   : > { %v860_v35 = vmax.f32 %v8040_v32, 0.0 }
 0x203   : > { %v881_v40 = vpack.c.bf16 %v859_v33, %v857_v36 }
 0x204   : > { %v812_v37 = vpop.f32.mrb[20].mxu0  ;;  %v882_v38 = vpack.c.bf16 %v860_v35, %v858_v34 }
 0x205   : > { %v814_v39 = vpop.f32.mrb[21].mxu0  ;;  %v8050_v43 = vadd.f32 %v812_v37, %v7964_v7 }
 0x206   : > { %v8047_v41 = vadd.f32 %v814_v39, %v7961_v6  ;;  %v816_v42 = vpop.f32.mrb[22].mxu0  ;;  %1088 = vmatprep.mubr.bf16.mxu1 %v882_v38 }
 0x207   : > { %v8053_v45 = vadd.f32 %v816_v42, %v7964_v7  ;;  %v818_v48 = vpop.f32.mrb[23].mxu0  ;;  %1089 = vmatmul.mubr.bf16.gmra.mrb[16].mxu1 %v881_v40  ;;  %v861_v54 = vmax.f32 %v8050_v43, 0.0  ;;  %v7032_v42 = vld [vmem:[#allocation10 + $0x74] ss:$8 sps:$4 sm:$0xff]  }
 0x208   : > { %v8056_v50 = vadd.f32 %v818_v48, %v7961_v6  ;;  %v862_v52 = vmax.f32 %v8047_v41, 0.0  ;;  %1267 = vmatprep.subr.bf16.mxu1 %v7032_v42  ;;  %v9802_v48 = vmov 0  }
 0x209   : > { %v863_v51 = vmax.f32 %v8053_v45, 0.0 }
 0x20a   : > { %v864_v53 = vmax.f32 %v8056_v50, 0.0 }
 0x20b   : > { %v883_v58 = vpack.c.bf16 %v863_v51, %v861_v54  ;;  %v7034_v51 = vld [vmem:[#allocation7 + $0x80] sm:$0xff]   ;;  %v7037_v54 = vld [vmem:[#allocation7 + $0xd0] sm:$0xff]  }
 0x20c   : > { %v822_v55 = vpop.f32.mrb[24].mxu0  ;;  %v884_v56 = vpack.c.bf16 %v864_v53, %v862_v52  ;;  %v7035_v52 = vld [vmem:[#allocation7 + $0xc8] sm:$0xff]  }
 0x20d   : > { %v824_v57 = vpop.f32.mrb[25].mxu0  ;;  %v8066_v61 = vadd.f32 %v822_v55, %v7964_v7  ;;  %v7036_v53 = vld [vmem:[#allocation7 + $0x88] sm:$0xff]   ;;  %v7038_v55 = vld [vmem:[#allocation7 + $0x90] sm:$0xff]  }
 0x20e   : > { %v8063_v59 = vadd.f32 %v824_v57, %v7961_v6  ;;  %v826_v60 = vpop.f32.mrb[26].mxu0  ;;  %1096 = vmatprep.mubr.bf16.mxu1 %v884_v56  ;;  %v7039_v56 = vld [vmem:[#allocation7 + $0xd8] sm:$0xff]  }
 0x20f   : > { %v8069_v63 = vadd.f32 %v826_v60, %v7964_v7  ;;  %v828_v2 = vpop.f32.mrb[27].mxu0  ;;  %1097 = vmatmul.mubr.bf16.gmra.mrb[20].mxu1 %v883_v58  ;;  %v865_v16 = vmax.f32 %v8066_v61, 0.0  ;;  %v7040_v57 = vld [vmem:[#allocation7 + $0x98] sm:$0xff]   ;;  %v7041_v58 = vld [vmem:[#allocation7 + $0xe0] sm:$0xff]  }
 0x210   : > { %v8072_v8 = vadd.f32 %v828_v2, %v7961_v6  ;;  %v866_v11 = vmax.f32 %v8063_v59, 0.0  ;;  %v7042_v60 = vld [vmem:[#allocation7 + $0xa0] sm:$0xff]   ;;  %v7043_v2 = vld [vmem:[#allocation7 + $0xe8] sm:$0xff]  }
 0x211   : > { %v867_v9 = vmax.f32 %v8069_v63, 0.0 }
 0x212   : > { %v868_v14 = vmax.f32 %v8072_v8, 0.0 }
 0x213   : > { %v885_v20 = vpack.c.bf16 %v867_v9, %v865_v16  ;;  %v7044_v9 = vld [vmem:[#allocation7 + $0xa8] sm:$0xff]  }
 0x214   : > { %v832_v17 = vpop.f32.mrb[28].mxu0  ;;  %v886_v18 = vpack.c.bf16 %v868_v14, %v866_v11  ;;  %v7045_v11 = vld [vmem:[#allocation7 + $0xf0] sm:$0xff]  }
 0x215   : > { %v834_v19 = vpop.f32.mrb[29].mxu0  ;;  %v8082_v24 = vadd.f32 %v832_v17, %v7964_v7  ;;  %v7046_v14 = vld [vmem:[#allocation7 + $0xb0] sm:$0xff]   ;;  %v8095_v17 = vld [vmem:[#allocation8] ss:$0 sm:$0xff] }
 0x216   : > { %v8079_v21 = vadd.f32 %v834_v19, %v7961_v6  ;;  %v836_v22 = vpop.f32.mrb[30].mxu0  ;;  %1104 = vmatprep.mubr.bf16.mxu1 %v886_v18 }
 0x217   : > { %v8085_v30 = vadd.f32 %v836_v22, %v7964_v7  ;;  %v838_v33 = vpop.f32.mrb[31].mxu0  ;;  %1105 = vmatmul.mubr.bf16.gmra.mrb[24].mxu1 %v885_v20  ;;  %v869_v38 = vmax.f32 %v8082_v24, 0.0  ;;  %v7030_v7 = vld [vmem:[#allocation10 + $0x70] ss:$8 sps:$4 sm:$0xff]  }
 0x218   : > { %v8088_v34 = vadd.f32 %v838_v33, %v7961_v6  ;;  %v870_v36 = vmax.f32 %v8079_v21, 0.0  ;;  %1268 = vmatpush1.bf16.msra.mxu1 %v7030_v7  ;;  %v7033_v6 = vld [vmem:[#allocation7 + $0xc0] sm:$0xff]  }
 0x219   : > { %v871_v35 = vmax.f32 %v8085_v30, 0.0  ;;  %6335 = vmatprep.subr.bf16.mxu0 %v7033_v6 }
 0x21a   : > { %v872_v37 = vmax.f32 %v8088_v34, 0.0  ;;  %6336 = vmatpush3.bf16.msra.mxu0 %v7034_v51 }
 0x21b   : > { %v887_v40 = vpack.c.bf16 %v871_v35, %v869_v38  ;;  %6337 = vmatprep.subr.bf16.mxu0 %v7035_v52 }
 0x21c   : > { %v888_v39 = vpack.c.bf16 %v872_v37, %v870_v36 }
 0x21e   : > { %1112 = vmatprep.mubr.bf16.mxu1 %v888_v39  ;;  %6338 = vmatpush3.bf16.msra.mxu0 %v7036_v53 }
 0x21f   : > { %1113 = vmatmul.mubr.bf16.gmra.mrb[28].mxu1 %v887_v40  ;;  %6339 = vmatprep.subr.bf16.mxu0 %v7037_v54 }
 0x220   : > { %1285 = vmatprep.mubr.bf16.mxu1 %v9802_v48 }
 0x222   : > { %6340 = vmatpush3.bf16.msra.mxu0 %v7038_v55 }
 0x223   : > { %6341 = vmatprep.subr.bf16.mxu0 %v7039_v56 }
 0x226   : > { %6342 = vmatpush3.bf16.msra.mxu0 %v7040_v57 }
 0x227   : > { %6343 = vmatprep.subr.bf16.mxu0 %v7041_v58 }
 0x22a   : > { %6344 = vmatpush3.bf16.msra.mxu0 %v7042_v60 }
 0x22b   : > { %6345 = vmatprep.subr.bf16.mxu0 %v7043_v2 }
 0x22e   : > { %6346 = vmatpush3.bf16.msra.mxu0 %v7044_v9 }
 0x22f   : > { %6347 = vmatprep.subr.bf16.mxu0 %v7045_v11 }
 0x232   : > { %6348 = vmatpush3.bf16.msra.mxu0 %v7046_v14 }
 0x2ba   : > { %v6287_v16 = vpop.f32.mrb[0].mxu1 }
 0x2bb   : > { %v6288_v18 = vpop.f32.mrb[1].mxu1 }
 0x2bc   : > { %v6289_v19 = vadd.f32 %v6288_v18, %v6287_v16  ;;  %v6290_v20 = vpop.f32.mrb[2].mxu1 }
 0x2bd   : > { %v6291_v22 = vpop.f32.mrb[3].mxu1 }
 0x2be   : > { %v1059_v33 = vadd.f32 %v6289_v19, %v8095_v17  ;;  %v6292_v35 = vadd.f32 %v6291_v22, %v6290_v20 }
 0x2c0   : > { %v1062_v36 = vadd.f32 %v6292_v35, %v8095_v17  ;;  %v1121_v37 = vmax.f32 %v1059_v33, 0.0 }
 0x2c2   : > { %v1122_v38 = vmax.f32 %v1062_v36, 0.0  ;;  %v6293_v39 = vpop.f32.mrb[4].mxu1 }
 0x2c3   : > { %v6294_v40 = vpop.f32.mrb[5].mxu1 }
 0x2c4   : > { %v1137_v42 = vpack.c.bf16 %v1122_v38, %v1121_v37  ;;  %v6295_v7 = vadd.f32 %v6294_v40, %v6293_v39  ;;  %v6296_v6 = vpop.f32.mrb[6].mxu1 }
 0x2c5   : > { %v6297_v51 = vpop.f32.mrb[7].mxu1 }
 0x2c6   : > { %v1067_v52 = vadd.f32 %v6295_v7, %v8095_v17  ;;  %v6298_v53 = vadd.f32 %v6297_v51, %v6296_v6  ;;  %1286 = vmatmul.mubr.bf16.vlgmr.msra.gmra.mrb[32].mxu1 %v1137_v42 }
 0x2c7   : > { %1295 = vmatprep.mubr.bf16.mxu1 %v9802_v48 }
 0x2c8   : > { %v1070_v54 = vadd.f32 %v6298_v53, %v8095_v17  ;;  %v1123_v56 = vmax.f32 %v1067_v52, 0.0 }
 0x2ca   : > { %v6299_v55 = vpop.f32.mrb[8].mxu1  ;;  %v1124_v57 = vmax.f32 %v1070_v54, 0.0 }
 0x2cb   : > { %v6300_v58 = vpop.f32.mrb[9].mxu1 }
 0x2cc   : > { %v6301_v60 = vadd.f32 %v6300_v58, %v6299_v55  ;;  %v6302_v2 = vpop.f32.mrb[10].mxu1  ;;  %v1138_v9 = vpack.c.bf16 %v1124_v57, %v1123_v56 }
 0x2cd   : > { %v6303_v11 = vpop.f32.mrb[11].mxu1 }
 0x2ce   : > { %v1075_v14 = vadd.f32 %v6301_v60, %v8095_v17  ;;  %v6304_v16 = vadd.f32 %v6303_v11, %v6302_v2  ;;  %1296 = vmatmul.mubr.bf16.gmra.mrb[36].mxu1 %v1138_v9 }
 0x2cf   : > { %1305 = vmatprep.mubr.bf16.mxu1 %v9802_v48 }
 0x2d0   : > { %v1078_v18 = vadd.f32 %v6304_v16, %v8095_v17  ;;  %v1125_v20 = vmax.f32 %v1075_v14, 0.0 }
 0x2d2   : > { %v6305_v19 = vpop.f32.mrb[12].mxu1  ;;  %v1126_v22 = vmax.f32 %v1078_v18, 0.0 }
 0x2d3   : > { %v6306_v33 = vpop.f32.mrb[13].mxu1 }
 0x2d4   : > { %v6307_v35 = vadd.f32 %v6306_v33, %v6305_v19  ;;  %v6308_v36 = vpop.f32.mrb[14].mxu1  ;;  %v1139_v37 = vpack.c.bf16 %v1126_v22, %v1125_v20 }
 0x2d5   : > { %v6309_v38 = vpop.f32.mrb[15].mxu1 }
 0x2d6   : > { %v1083_v39 = vadd.f32 %v6307_v35, %v8095_v17  ;;  %v6310_v40 = vadd.f32 %v6309_v38, %v6308_v36  ;;  %1306 = vmatmul.mubr.bf16.gmra.mrb[40].mxu1 %v1139_v37 }
 0x2d7   : > { %1315 = vmatprep.mubr.bf16.mxu1 %v9802_v48 }
 0x2d8   : > { %v1086_v42 = vadd.f32 %v6310_v40, %v8095_v17  ;;  %v1127_v6 = vmax.f32 %v1083_v39, 0.0 }
 0x2da   : > { %v6311_v7 = vpop.f32.mrb[16].mxu1  ;;  %v1128_v51 = vmax.f32 %v1086_v42, 0.0 }
 0x2db   : > { %v6312_v52 = vpop.f32.mrb[17].mxu1 }
 0x2dc   : > { %v6313_v53 = vadd.f32 %v6312_v52, %v6311_v7  ;;  %v6314_v54 = vpop.f32.mrb[18].mxu1  ;;  %v1140_v55 = vpack.c.bf16 %v1128_v51, %v1127_v6 }
 0x2dd   : > { %v6315_v56 = vpop.f32.mrb[19].mxu1 }
 0x2de   : > { %v1091_v57 = vadd.f32 %v6313_v53, %v8095_v17  ;;  %v6316_v58 = vadd.f32 %v6315_v56, %v6314_v54  ;;  %1316 = vmatmul.mubr.bf16.gmra.mrb[44].mxu1 %v1140_v55 }
 0x2df   : > { %1325 = vmatprep.mubr.bf16.mxu1 %v9802_v48 }
 0x2e0   : > { %v1094_v60 = vadd.f32 %v6316_v58, %v8095_v17  ;;  %v1129_v9 = vmax.f32 %v1091_v57, 0.0 }
 0x2e2   : > { %v6317_v2 = vpop.f32.mrb[20].mxu1  ;;  %v1130_v11 = vmax.f32 %v1094_v60, 0.0 }
 0x2e3   : > { %v6318_v14 = vpop.f32.mrb[21].mxu1 }
 0x2e4   : > { %v6319_v16 = vadd.f32 %v6318_v14, %v6317_v2  ;;  %v6320_v18 = vpop.f32.mrb[22].mxu1  ;;  %v1141_v19 = vpack.c.bf16 %v1130_v11, %v1129_v9 }
 0x2e5   : > { %v6321_v20 = vpop.f32.mrb[23].mxu1 }
 0x2e6   : > { %v1099_v22 = vadd.f32 %v6319_v16, %v8095_v17  ;;  %v6322_v33 = vadd.f32 %v6321_v20, %v6320_v18  ;;  %1326 = vmatmul.mubr.bf16.gmra.mrb[48].mxu1 %v1141_v19 }
 0x2e7   : > { %1335 = vmatprep.mubr.bf16.mxu1 %v9802_v48 }
 0x2e8   : > { %v1102_v35 = vadd.f32 %v6322_v33, %v8095_v17  ;;  %v1131_v37 = vmax.f32 %v1099_v22, 0.0  ;;  %v7047_v22 = vld [vmem:[#allocation7 + $0xf8] sm:$0xff]  }
 0x2e9   : > { %v7048_v33 = vld [vmem:[#allocation7 + $0xb8] sm:$0xff]   ;;  %6349 = vmatprep.subr.bf16.mxu0 %v7047_v22 }
 0x2ea   : > { %v6323_v36 = vpop.f32.mrb[24].mxu1  ;;  %v1132_v38 = vmax.f32 %v1102_v35, 0.0  ;;  %6350 = vmatpush3.bf16.msra.mxu0 %v7048_v33  ;;  %v7049_v35 = vld [vmem:[#allocation10 + $0x80] ss:$8 sps:$4 sm:$0xff]  }
 0x2eb   : > { %v6324_v39 = vpop.f32.mrb[25].mxu1 }
 0x2ec   : > { %v6325_v40 = vadd.f32 %v6324_v39, %v6323_v36  ;;  %v6326_v42 = vpop.f32.mrb[26].mxu1  ;;  %v1142_v7 = vpack.c.bf16 %v1132_v38, %v1131_v37  ;;  %v7051_v36 = vld [vmem:[#allocation10 + $0x84] ss:$8 sps:$4 sm:$0xff]   ;;  %v7054_v37 = vld [vmem:[#allocation10 + $0x94] ss:$8 sps:$4 sm:$0xff]  }
 0x2ed   : > { %v6327_v6 = vpop.f32.mrb[27].mxu1  ;;  %1814 = vmatprep.subr.bf16.mxu1 %v7051_v36  ;;  %v7052_v38 = vld [vmem:[#allocation10 + $0x90] ss:$8 sps:$4 sm:$0xff]   ;;  %v7057_v39 = vld [vmem:[#allocation10 + $0xa4] ss:$8 sps:$4 sm:$0xff]  }
 0x2ee   : > { %v1107_v51 = vadd.f32 %v6325_v40, %v8095_v17  ;;  %v6328_v52 = vadd.f32 %v6327_v6, %v6326_v42  ;;  %1336 = vmatmul.mubr.bf16.gmra.mrb[52].mxu1 %v1142_v7  ;;  %v7060_v40 = vld [vmem:[#allocation10 + $0xb4] ss:$8 sps:$4 sm:$0xff]   ;;  %v7058_v42 = vld [vmem:[#allocation10 + $0xb0] ss:$8 sps:$4 sm:$0xff]   ;;  %v7063_v7 = vld [vmem:[#allocation10 + $0xc4] ss:$8 sps:$4 sm:$0xff]  }
 0x2ef   : > { %1345 = vmatprep.mubr.bf16.mxu1 %v9802_v48  ;;  %1815 = vmatpush1.bf16.msra.mxu1 %v7049_v35  ;;  %v7061_v6 = vld [vmem:[#allocation10 + $0xc0] ss:$8 sps:$4 sm:$0xff]  }
 0x2f0   : > { %v1110_v53 = vadd.f32 %v6328_v52, %v8095_v17  ;;  %v1133_v55 = vmax.f32 %v1107_v51, 0.0  ;;  %1816 = vmatprep.subr.bf16.mxu1 %v7054_v37  ;;  %v7066_v51 = vld [vmem:[#allocation10 + $0xd4] ss:$8 sps:$4 sm:$0xff]   ;;  %v7064_v52 = vld [vmem:[#allocation10 + $0xd0] ss:$8 sps:$4 sm:$0xff]  }
 0x2f2   : > { %v6329_v54 = vpop.f32.mrb[28].mxu1  ;;  %v1134_v56 = vmax.f32 %v1110_v53, 0.0  ;;  %v7069_v53 = vld [vmem:[#allocation10 + $0xe4] ss:$8 sps:$4 sm:$0xff]  }
 0x2f3   : > { %v6330_v57 = vpop.f32.mrb[29].mxu1  ;;  %1817 = vmatpush1.bf16.msra.mxu1 %v7052_v38 }
 0x2f4   : > { %v6331_v58 = vadd.f32 %v6330_v57, %v6329_v54  ;;  %v6332_v60 = vpop.f32.mrb[30].mxu1  ;;  %v1143_v2 = vpack.c.bf16 %v1134_v56, %v1133_v55  ;;  %1818 = vmatprep.subr.bf16.mxu1 %v7057_v39  ;;  %v7067_v54 = vld [vmem:[#allocation10 + $0xe0] ss:$8 sps:$4 sm:$0xff]   ;;  %v1161_v55 = vld [vmem:[%s9790_s6] sm:$0x3] }
 0x2f5   : > { %v6333_v9 = vpop.f32.mrb[31].mxu1  ;;  %v8125_v56 = vrot.slane %v1161_v55, %v7958_v5  ;;  %v8128_v57 = vrot.slane %v1161_v55, %v7953_v3 }
 0x2f6   : > { %v1115_v11 = vadd.f32 %v6331_v58, %v8095_v17  ;;  %v6334_v14 = vadd.f32 %v6333_v9, %v6332_v60  ;;  %1346 = vmatmul.mubr.bf16.gmra.mrb[56].mxu1 %v1143_v2 }
 0x2f7   : > { %1355 = vmatprep.mubr.bf16.mxu1 %v9802_v48 }
 0x2f8   : > { %v1118_v16 = vadd.f32 %v6334_v14, %v8095_v17  ;;  %v1135_v18 = vmax.f32 %v1115_v11, 0.0  ;;  %v7055_v17 = vld [vmem:[#allocation10 + $0xa0] ss:$8 sps:$4 sm:$0xff]  }
 0x2f9   : > { %1819 = vmatpush1.bf16.msra.mxu1 %v7055_v17 }
 0x2fa   : > { %v1136_v19 = vmax.f32 %v1118_v16, 0.0  ;;  %1820 = vmatprep.subr.bf16.mxu1 %v7060_v40 }
 0x2fc   : > { %v1144_v20 = vpack.c.bf16 %v1136_v19, %v1135_v18 }
 0x2fd   : > { %1821 = vmatpush1.bf16.msra.mxu1 %v7058_v42 }
 0x2fe   : > { %1356 = vmatmul.mubr.bf16.gmra.mrb[60].mxu1 %v1144_v20  ;;  %1822 = vmatprep.subr.bf16.mxu1 %v7063_v7 }
 0x2ff   : > { %1846 = vmatprep.mubr.bf16.mxu1 %v9802_v48 }
 0x301   : > { %1823 = vmatpush1.bf16.msra.mxu1 %v7061_v6 }
 0x302   : > { %1824 = vmatprep.subr.bf16.mxu1 %v7066_v51 }
 0x305   : > { %1825 = vmatpush1.bf16.msra.mxu1 %v7064_v52 }
 0x306   : > { %1826 = vmatprep.subr.bf16.mxu1 %v7069_v53 }
 0x309   : > { %1827 = vmatpush1.bf16.msra.mxu1 %v7067_v54 }
 0x399   : > { %v1287_v58 = vpop.f32.mrb[32].mxu1 }
 0x39a   : > { %v1288_v60 = vadd.f32 %v1287_v58, %v8125_v56  ;;  %v1289_v2 = vpop.f32.mrb[33].mxu1 }
 0x39b   : > { %v1290_v9 = vadd.f32 %v1289_v2, %v8128_v57  ;;  %v1291_v11 = vpop.f32.mrb[34].mxu1 }
 0x39c   : > { %v1292_v14 = vadd.f32 %v1291_v11, %v8125_v56  ;;  %v1293_v16 = vpop.f32.mrb[35].mxu1  ;;  %v8138_v20 = vadd.f32 %v1288_v60, %v7970_v12 }
 0x39d   : > { %v8134_v18 = vadd.f32 %v1290_v9, %v7967_v10  ;;  %v1294_v19 = vadd.f32 %v1293_v16, %v8128_v57 }
 0x39e   : > { %v8141_v22 = vadd.f32 %v1292_v14, %v7973_v13  ;;  %v1398_v10 = vmax.f32 %v8138_v20, 0.0 }
 0x39f   : > { %v8144_v33 = vadd.f32 %v1294_v19, %v7976_v15  ;;  %v1399_v37 = vmax.f32 %v8134_v18, 0.0 }
 0x3a0   : > { %v1400_v35 = vmax.f32 %v8141_v22, 0.0 }
 0x3a1   : > { %v1297_v36 = vpop.f32.mrb[36].mxu1  ;;  %v1401_v38 = vmax.f32 %v8144_v33, 0.0 }
 0x3a2   : > { %v1298_v39 = vadd.f32 %v1297_v36, %v8125_v56  ;;  %v1299_v17 = vpop.f32.mrb[37].mxu1  ;;  %v1430_v42 = vpack.c.bf16 %v1400_v35, %v1398_v10 }
 0x3a3   : > { %v1300_v12 = vadd.f32 %v1299_v17, %v8128_v57  ;;  %v1301_v40 = vpop.f32.mrb[38].mxu1  ;;  %v1431_v13 = vpack.c.bf16 %v1401_v38, %v1399_v37 }
 0x3a4   : > { %v1302_v15 = vadd.f32 %v1301_v40, %v8125_v56  ;;  %v1303_v7 = vpop.f32.mrb[39].mxu1  ;;  %v8158_v52 = vadd.f32 %v1298_v39, %v7986_v28 }
 0x3a5   : > { %v8154_v6 = vadd.f32 %v1300_v12, %v7983_v26  ;;  %v1304_v51 = vadd.f32 %v1303_v7, %v8128_v57  ;;  %1615 = vmatprep.mubr.bf16.mxu0 %v1431_v13 }
 0x3a6   : > { %v8161_v53 = vadd.f32 %v1302_v15, %v7989_v29  ;;  %1616 = vmatmul.mubr.bf16.vlgmr.msra.gmra.mrb[32].mxu0 %v1430_v42  ;;  %v1402_v28 = vmax.f32 %v8158_v52, 0.0 }
 0x3a7   : > { %v8164_v54 = vadd.f32 %v1304_v51, %v7992_v31  ;;  %v1403_v60 = vmax.f32 %v8154_v6, 0.0 }
 0x3a8   : > { %v1404_v55 = vmax.f32 %v8161_v53, 0.0 }
 0x3a9   : > { %v1307_v58 = vpop.f32.mrb[40].mxu1  ;;  %v1405_v26 = vmax.f32 %v8164_v54, 0.0 }
 0x3aa   : > { %v1308_v2 = vadd.f32 %v1307_v58, %v8125_v56  ;;  %v1309_v9 = vpop.f32.mrb[41].mxu1  ;;  %v1432_v19 = vpack.c.bf16 %v1404_v55, %v1402_v28 }
 0x3ab   : > { %v1310_v11 = vadd.f32 %v1309_v9, %v8128_v57  ;;  %v1311_v29 = vpop.f32.mrb[42].mxu1  ;;  %v1433_v14 = vpack.c.bf16 %v1405_v26, %v1403_v60 }
 0x3ac   : > { %v1312_v16 = vadd.f32 %v1311_v29, %v8125_v56  ;;  %v1313_v31 = vpop.f32.mrb[43].mxu1  ;;  %v8178_v37 = vadd.f32 %v1308_v2, %v8002_v46 }
 0x3ad   : > { %v8174_v35 = vadd.f32 %v1310_v11, %v7999_v44  ;;  %v1314_v36 = vadd.f32 %v1313_v31, %v8128_v57  ;;  %1623 = vmatprep.mubr.bf16.mxu0 %v1433_v14 }
 0x3ae   : > { %v8181_v38 = vadd.f32 %v1312_v16, %v8005_v47  ;;  %1624 = vmatmul.mubr.bf16.gmra.mrb[36].mxu0 %v1432_v19  ;;  %v1406_v40 = vmax.f32 %v8178_v37, 0.0 }
 0x3af   : > { %v8184_v10 = vadd.f32 %v1314_v36, %v8008_v49  ;;  %v1407_v17 = vmax.f32 %v8174_v35, 0.0 }
 0x3b0   : > { %v1408_v39 = vmax.f32 %v8181_v38, 0.0 }
 0x3b1   : > { %v1409_v44 = vmax.f32 %v8184_v10, 0.0  ;;  %v1317_v12 = vpop.f32.mrb[44].mxu1 }
 0x3b2   : > { %v1318_v13 = vadd.f32 %v1317_v12, %v8125_v56  ;;  %v1319_v46 = vpop.f32.mrb[45].mxu1  ;;  %v1434_v51 = vpack.c.bf16 %v1408_v39, %v1406_v40 }
 0x3b3   : > { %v1320_v42 = vadd.f32 %v1319_v46, %v8128_v57  ;;  %v1321_v47 = vpop.f32.mrb[46].mxu1  ;;  %v1435_v15 = vpack.c.bf16 %v1409_v44, %v1407_v17 }
 0x3b4   : > { %v1322_v7 = vadd.f32 %v1321_v47, %v8125_v56  ;;  %v1323_v49 = vpop.f32.mrb[47].mxu1  ;;  %v8198_v60 = vadd.f32 %v1318_v13, %v8018_v0 }
 0x3b5   : > { %v8194_v55 = vadd.f32 %v1320_v42, %v8015_v62  ;;  %v1324_v58 = vadd.f32 %v1323_v49, %v8128_v57  ;;  %1631 = vmatprep.mubr.bf16.mxu0 %v1435_v15 }
 0x3b6   : > { %v8201_v26 = vadd.f32 %v1322_v7, %v8021_v1  ;;  %1632 = vmatmul.mubr.bf16.gmra.mrb[40].mxu0 %v1434_v51  ;;  %v1410_v29 = vmax.f32 %v8198_v60, 0.0 }
 0x3b7   : > { %v8204_v2 = vadd.f32 %v1324_v58, %v8024_v4  ;;  %v1411_v28 = vmax.f32 %v8194_v55, 0.0 }
 0x3b8   : > { %v1412_v9 = vmax.f32 %v8201_v26, 0.0 }
 0x3b9   : > { %v1413_v62 = vmax.f32 %v8204_v2, 0.0  ;;  %v1327_v11 = vpop.f32.mrb[48].mxu1 }
 0x3ba   : > { %v1328_v14 = vadd.f32 %v1327_v11, %v8125_v56  ;;  %v1329_v0 = vpop.f32.mrb[49].mxu1  ;;  %v1436_v36 = vpack.c.bf16 %v1412_v9, %v1410_v29 }
 0x3bb   : > { %v1330_v16 = vadd.f32 %v1329_v0, %v8128_v57  ;;  %v1331_v1 = vpop.f32.mrb[50].mxu1  ;;  %v1437_v31 = vpack.c.bf16 %v1413_v62, %v1411_v28 }
 0x3bc   : > { %v1332_v19 = vadd.f32 %v1331_v1, %v8125_v56  ;;  %v1333_v4 = vpop.f32.mrb[51].mxu1  ;;  %v8218_v44 = vadd.f32 %v1328_v14, %v8034_v25 }
 0x3bd   : > { %v8214_v39 = vadd.f32 %v1330_v16, %v8031_v23  ;;  %v1334_v17 = vadd.f32 %v1333_v4, %v8128_v57  ;;  %1639 = vmatprep.mubr.bf16.mxu0 %v1437_v31 }
 0x3be   : > { %v8221_v12 = vadd.f32 %v1332_v19, %v8037_v27  ;;  %1640 = vmatmul.mubr.bf16.gmra.mrb[44].mxu0 %v1436_v36  ;;  %v1414_v47 = vmax.f32 %v8218_v44, 0.0 }
 0x3bf   : > { %v8224_v40 = vadd.f32 %v1334_v17, %v8040_v32  ;;  %v1415_v46 = vmax.f32 %v8214_v39, 0.0 }
 0x3c0   : > { %v1416_v13 = vmax.f32 %v8221_v12, 0.0 }
 0x3c1   : > { %v1417_v23 = vmax.f32 %v8224_v40, 0.0  ;;  %v1337_v42 = vpop.f32.mrb[52].mxu1 }
 0x3c2   : > { %v1338_v15 = vadd.f32 %v1337_v42, %v8125_v56  ;;  %v1339_v25 = vpop.f32.mrb[53].mxu1  ;;  %v1438_v58 = vpack.c.bf16 %v1416_v13, %v1414_v47 }
 0x3c3   : > { %v1340_v7 = vadd.f32 %v1339_v25, %v8128_v57  ;;  %v1341_v27 = vpop.f32.mrb[54].mxu1  ;;  %v1439_v49 = vpack.c.bf16 %v1417_v23, %v1415_v46 }
 0x3c4   : > { %v1342_v51 = vadd.f32 %v1341_v27, %v8125_v56  ;;  %v1343_v32 = vpop.f32.mrb[55].mxu1  ;;  %v8238_v62 = vadd.f32 %v1338_v15, %v8050_v43 }
 0x3c5   : > { %v8234_v9 = vadd.f32 %v1340_v7, %v8047_v41  ;;  %v1344_v28 = vadd.f32 %v1343_v32, %v8128_v57  ;;  %1647 = vmatprep.mubr.bf16.mxu0 %v1439_v49 }
 0x3c6   : > { %v8241_v11 = vadd.f32 %v1342_v51, %v8053_v45  ;;  %1648 = vmatmul.mubr.bf16.gmra.mrb[48].mxu0 %v1438_v58  ;;  %v1418_v1 = vmax.f32 %v8238_v62, 0.0 }
 0x3c7   : > { %v8244_v29 = vadd.f32 %v1344_v28, %v8056_v50  ;;  %v1419_v0 = vmax.f32 %v8234_v9, 0.0 }
 0x3c8   : > { %v1420_v14 = vmax.f32 %v8241_v11, 0.0 }
 0x3c9   : > { %v1421_v41 = vmax.f32 %v8244_v29, 0.0  ;;  %v1347_v16 = vpop.f32.mrb[56].mxu1 }
 0x3ca   : > { %v1348_v31 = vadd.f32 %v1347_v16, %v8125_v56  ;;  %v1349_v43 = vpop.f32.mrb[57].mxu1  ;;  %v1440_v17 = vpack.c.bf16 %v1420_v14, %v1418_v1 }
 0x3cb   : > { %v1350_v19 = vadd.f32 %v1349_v43, %v8128_v57  ;;  %v1351_v45 = vpop.f32.mrb[58].mxu1  ;;  %v1441_v4 = vpack.c.bf16 %v1421_v41, %v1419_v0 }
 0x3cc   : > { %v1352_v36 = vadd.f32 %v1351_v45, %v8125_v56  ;;  %v1353_v50 = vpop.f32.mrb[59].mxu1  ;;  %v8258_v23 = vadd.f32 %v1348_v31, %v8066_v61  ;;  %v7070_v45 = vld [vmem:[#allocation10 + $0xf0] ss:$8 sps:$4 sm:$0xff]  }
 0x3cd   : > { %v8254_v13 = vadd.f32 %v1350_v19, %v8063_v59  ;;  %v1354_v46 = vadd.f32 %v1353_v50, %v8128_v57  ;;  %1655 = vmatprep.mubr.bf16.mxu0 %v1441_v4  ;;  %v7074_v4 = vld [vmem:[#allocation7 + $0x100] sm:$0xff]   ;;  %v7077_v50 = vld [vmem:[#allocation7 + $0x150] sm:$0xff]  }
 0x3ce   : > { %v8261_v42 = vadd.f32 %v1352_v36, %v8069_v63  ;;  %1656 = vmatmul.mubr.bf16.gmra.mrb[52].mxu0 %v1440_v17  ;;  %v1422_v27 = vmax.f32 %v8258_v23, 0.0  ;;  %v7076_v36 = vld [vmem:[#allocation7 + $0x108] sm:$0xff]   ;;  %v7078_v17 = vld [vmem:[#allocation7 + $0x110] sm:$0xff]  }
 0x3cf   : > { %v8264_v47 = vadd.f32 %v1354_v46, %v8072_v8  ;;  %v1423_v25 = vmax.f32 %v8254_v13, 0.0  ;;  %v7079_v46 = vld [vmem:[#allocation7 + $0x158] sm:$0xff]  }
 0x3d0   : > { %v1424_v15 = vmax.f32 %v8261_v42, 0.0 }
 0x3d1   : > { %v1425_v59 = vmax.f32 %v8264_v47, 0.0  ;;  %v1357_v7 = vpop.f32.mrb[60].mxu1 }
 0x3d2   : > { %v1358_v49 = vadd.f32 %v1357_v7, %v8125_v56  ;;  %v1359_v61 = vpop.f32.mrb[61].mxu1  ;;  %v1442_v28 = vpack.c.bf16 %v1424_v15, %v1422_v27  ;;  %v7080_v15 = vld [vmem:[#allocation7 + $0x118] sm:$0xff]   ;;  %v7083_v7 = vld [vmem:[#allocation7 + $0x168] sm:$0xff]  }
 0x3d3   : > { %v1360_v51 = vadd.f32 %v1359_v61, %v8128_v57  ;;  %v1361_v63 = vpop.f32.mrb[62].mxu1  ;;  %v1443_v32 = vpack.c.bf16 %v1425_v59, %v1423_v25  ;;  %v7081_v25 = vld [vmem:[#allocation7 + $0x160] sm:$0xff]   ;;  %v7084_v27 = vld [vmem:[#allocation7 + $0x128] sm:$0xff]   ;;  %v7086_v61 = vld [vmem:[#allocation7 + $0x130] sm:$0xff]  }
 0x3d4   : > { %v1362_v58 = vadd.f32 %v1361_v63, %v8125_v56  ;;  %v1363_v8 = vpop.f32.mrb[63].mxu1  ;;  %v8278_v41 = vadd.f32 %v1358_v49, %v8082_v24  ;;  %v7072_v24 = vld [vmem:[#allocation10 + $0xf4] ss:$8 sps:$4 sm:$0xff]   ;;  %v7085_v49 = vld [vmem:[#allocation7 + $0x170] sm:$0xff]   ;;  %v8290_v63 = vld [vmem:[#allocation8 + $0x1] ss:$0 sm:$0xff] }
 0x3d5   : > { %v8274_v14 = vadd.f32 %v1360_v51, %v8079_v21  ;;  %v1364_v0 = vadd.f32 %v1363_v8, %v8128_v57  ;;  %1663 = vmatprep.mubr.bf16.mxu0 %v1443_v32  ;;  %1828 = vmatprep.subr.bf16.mxu1 %v7072_v24  ;;  %v7082_v59 = vld [vmem:[#allocation7 + $0x120] sm:$0xff]  }
 0x3d6   : > { %v8281_v16 = vadd.f32 %v1362_v58, %v8085_v30  ;;  %1664 = vmatmul.mubr.bf16.gmra.mrb[56].mxu0 %v1442_v28  ;;  %v1426_v43 = vmax.f32 %v8278_v41, 0.0  ;;  %1829 = vmatpush1.bf16.msra.mxu1 %v7070_v45  ;;  %v7073_v30 = vld [vmem:[#allocation7 + $0x140] sm:$0xff]  }
 0x3d7   : > { %v8284_v1 = vadd.f32 %v1364_v0, %v8088_v34  ;;  %v1427_v31 = vmax.f32 %v8274_v14, 0.0  ;;  %v7075_v34 = vld [vmem:[#allocation7 + $0x148] sm:$0xff]   ;;  %6399 = vmatprep.subr.bf16.mxu0 %v7073_v30 }
 0x3d8   : > { %v1428_v56 = vmax.f32 %v8281_v16, 0.0  ;;  %6400 = vmatpush3.bf16.msra.mxu0 %v7074_v4 }
 0x3d9   : > { %v1429_v21 = vmax.f32 %v8284_v1, 0.0  ;;  %6401 = vmatprep.subr.bf16.mxu0 %v7075_v34 }
 0x3da   : > { %v1444_v19 = vpack.c.bf16 %v1428_v56, %v1426_v43 }
 0x3db   : > { %v1445_v57 = vpack.c.bf16 %v1429_v21, %v1427_v31 }
 0x3dc   : > { %6402 = vmatpush3.bf16.msra.mxu0 %v7076_v36 }
 0x3dd   : > { %1671 = vmatprep.mubr.bf16.mxu0 %v1445_v57  ;;  %6403 = vmatprep.subr.bf16.mxu0 %v7077_v50 }
 0x3de   : > { %1672 = vmatmul.mubr.bf16.gmra.mrb[60].mxu0 %v1444_v19 }
 0x3e0   : > { %6404 = vmatpush3.bf16.msra.mxu0 %v7078_v17 }
 0x3e1   : > { %6405 = vmatprep.subr.bf16.mxu0 %v7079_v46 }
 0x3e4   : > { %6406 = vmatpush3.bf16.msra.mxu0 %v7080_v15 }
 0x3e5   : > { %6407 = vmatprep.subr.bf16.mxu0 %v7081_v25 }
 0x3e8   : > { %6408 = vmatpush3.bf16.msra.mxu0 %v7082_v59 }
 0x3e9   : > { %6409 = vmatprep.subr.bf16.mxu0 %v7083_v7 }
 0x3ec   : > { %6410 = vmatpush3.bf16.msra.mxu0 %v7084_v27 }
 0x3ed   : > { %6411 = vmatprep.subr.bf16.mxu0 %v7085_v49 }
 0x3f0   : > { %6412 = vmatpush3.bf16.msra.mxu0 %v7086_v61 }
 0x479   : > { %v6351_v51 = vpop.f32.mrb[32].mxu0 }
 0x47a   : > { %v6352_v32 = vpop.f32.mrb[33].mxu0 }
 0x47b   : > { %v6353_v58 = vadd.f32 %v6352_v32, %v6351_v51  ;;  %v6354_v8 = vpop.f32.mrb[34].mxu0 }
 0x47c   : > { %v6355_v28 = vpop.f32.mrb[35].mxu0 }
 0x47d   : > { %v1618_v0 = vadd.f32 %v6353_v58, %v8290_v63  ;;  %v6356_v56 = vadd.f32 %v6355_v28, %v6354_v8 }
 0x47f   : > { %v1621_v31 = vadd.f32 %v6356_v56, %v8290_v63  ;;  %v1680_v21 = vmax.f32 %v1618_v0, 0.0 }
 0x481   : > { %v1681_v43 = vmax.f32 %v1621_v31, 0.0  ;;  %v6357_v57 = vpop.f32.mrb[36].mxu0 }
 0x482   : > { %v6358_v19 = vpop.f32.mrb[37].mxu0 }
 0x483   : > { %v1696_v24 = vpack.c.bf16 %v1681_v43, %v1680_v21  ;;  %v6359_v45 = vadd.f32 %v6358_v19, %v6357_v57  ;;  %v6360_v30 = vpop.f32.mrb[38].mxu0 }
 0x484   : > { %v6361_v4 = vpop.f32.mrb[39].mxu0 }
 0x485   : > { %v1626_v34 = vadd.f32 %v6359_v45, %v8290_v63  ;;  %v6362_v36 = vadd.f32 %v6361_v4, %v6360_v30  ;;  %1847 = vmatmul.mubr.bf16.vlgmr.msra.gmra.mrb[64].mxu1 %v1696_v24 }
 0x486   : > { %1856 = vmatprep.mubr.bf16.mxu1 %v9802_v48 }
 0x487   : > { %v1629_v50 = vadd.f32 %v6362_v36, %v8290_v63  ;;  %v1682_v17 = vmax.f32 %v1626_v34, 0.0 }
 0x489   : > { %v1683_v46 = vmax.f32 %v1629_v50, 0.0  ;;  %v6363_v15 = vpop.f32.mrb[40].mxu0 }
 0x48a   : > { %v6364_v25 = vpop.f32.mrb[41].mxu0 }
 0x48b   : > { %v6365_v59 = vadd.f32 %v6364_v25, %v6363_v15  ;;  %v6366_v7 = vpop.f32.mrb[42].mxu0  ;;  %v1697_v27 = vpack.c.bf16 %v1683_v46, %v1682_v17 }
 0x48c   : > { %v6367_v49 = vpop.f32.mrb[43].mxu0 }
 0x48d   : > { %v1634_v61 = vadd.f32 %v6365_v59, %v8290_v63  ;;  %v6368_v51 = vadd.f32 %v6367_v49, %v6366_v7  ;;  %1857 = vmatmul.mubr.bf16.gmra.mrb[68].mxu1 %v1697_v27 }
 0x48e   : > { %1866 = vmatprep.mubr.bf16.mxu1 %v9802_v48 }
 0x48f   : > { %v1637_v32 = vadd.f32 %v6368_v51, %v8290_v63  ;;  %v1684_v58 = vmax.f32 %v1634_v61, 0.0 }
 0x491   : > { %v1685_v8 = vmax.f32 %v1637_v32, 0.0  ;;  %v6369_v28 = vpop.f32.mrb[44].mxu0 }
 0x492   : > { %v6370_v0 = vpop.f32.mrb[45].mxu0 }
 0x493   : > { %v6371_v56 = vadd.f32 %v6370_v0, %v6369_v28  ;;  %v6372_v31 = vpop.f32.mrb[46].mxu0  ;;  %v1698_v21 = vpack.c.bf16 %v1685_v8, %v1684_v58 }
 0x494   : > { %v6373_v43 = vpop.f32.mrb[47].mxu0 }
 0x495   : > { %v1642_v57 = vadd.f32 %v6371_v56, %v8290_v63  ;;  %v6374_v19 = vadd.f32 %v6373_v43, %v6372_v31  ;;  %1867 = vmatmul.mubr.bf16.gmra.mrb[72].mxu1 %v1698_v21 }
 0x496   : > { %1876 = vmatprep.mubr.bf16.mxu1 %v9802_v48 }
 0x497   : > { %v1645_v24 = vadd.f32 %v6374_v19, %v8290_v63  ;;  %v1686_v45 = vmax.f32 %v1642_v57, 0.0 }
 0x499   : > { %v1687_v30 = vmax.f32 %v1645_v24, 0.0  ;;  %v6375_v4 = vpop.f32.mrb[48].mxu0 }
 0x49a   : > { %v6376_v34 = vpop.f32.mrb[49].mxu0 }
 0x49b   : > { %v6377_v36 = vadd.f32 %v6376_v34, %v6375_v4  ;;  %v6378_v50 = vpop.f32.mrb[50].mxu0  ;;  %v1699_v17 = vpack.c.bf16 %v1687_v30, %v1686_v45 }
 0x49c   : > { %v6379_v46 = vpop.f32.mrb[51].mxu0 }
 0x49d   : > { %v1650_v15 = vadd.f32 %v6377_v36, %v8290_v63  ;;  %v6380_v25 = vadd.f32 %v6379_v46, %v6378_v50  ;;  %1877 = vmatmul.mubr.bf16.gmra.mrb[76].mxu1 %v1699_v17 }
 0x49e   : > { %1886 = vmatprep.mubr.bf16.mxu1 %v9802_v48 }
 0x49f   : > { %v1653_v59 = vadd.f32 %v6380_v25, %v8290_v63  ;;  %v1688_v7 = vmax.f32 %v1650_v15, 0.0 }
 0x4a1   : > { %v1689_v27 = vmax.f32 %v1653_v59, 0.0  ;;  %v6381_v49 = vpop.f32.mrb[52].mxu0 }
 0x4a2   : > { %v6382_v61 = vpop.f32.mrb[53].mxu0 }
 0x4a3   : > { %v6383_v51 = vadd.f32 %v6382_v61, %v6381_v49  ;;  %v6384_v32 = vpop.f32.mrb[54].mxu0  ;;  %v1700_v58 = vpack.c.bf16 %v1689_v27, %v1688_v7 }
 0x4a4   : > { %v6385_v8 = vpop.f32.mrb[55].mxu0 }
 0x4a5   : > { %v1658_v28 = vadd.f32 %v6383_v51, %v8290_v63  ;;  %v6386_v0 = vadd.f32 %v6385_v8, %v6384_v32  ;;  %1887 = vmatmul.mubr.bf16.gmra.mrb[80].mxu1 %v1700_v58 }
 0x4a6   : > { %1896 = vmatprep.mubr.bf16.mxu1 %v9802_v48 }
 0x4a7   : > { %v1661_v56 = vadd.f32 %v6386_v0, %v8290_v63  ;;  %v1690_v31 = vmax.f32 %v1658_v28, 0.0  ;;  %v7087_v28 = vld [vmem:[#allocation7 + $0x178] sm:$0xff]  }
 0x4a8   : > { %v7088_v0 = vld [vmem:[#allocation7 + $0x138] sm:$0xff]   ;;  %6413 = vmatprep.subr.bf16.mxu0 %v7087_v28 }
 0x4a9   : > { %v1691_v21 = vmax.f32 %v1661_v56, 0.0  ;;  %v6387_v43 = vpop.f32.mrb[56].mxu0  ;;  %6414 = vmatpush3.bf16.msra.mxu0 %v7088_v0  ;;  %v7089_v56 = vld [vmem:[#allocation10 + $0x100] ss:$8 sps:$4 sm:$0xff]  }
 0x4aa   : > { %v6388_v57 = vpop.f32.mrb[57].mxu0 }
 0x4ab   : > { %v6389_v19 = vadd.f32 %v6388_v57, %v6387_v43  ;;  %v6390_v24 = vpop.f32.mrb[58].mxu0  ;;  %v1701_v45 = vpack.c.bf16 %v1691_v21, %v1690_v31  ;;  %v7091_v31 = vld [vmem:[#allocation10 + $0x104] ss:$8 sps:$4 sm:$0xff]   ;;  %v7094_v21 = vld [vmem:[#allocation10 + $0x114] ss:$8 sps:$4 sm:$0xff]  }
 0x4ac   : > { %v6391_v30 = vpop.f32.mrb[59].mxu0  ;;  %2375 = vmatprep.subr.bf16.mxu1 %v7091_v31  ;;  %v7092_v43 = vld [vmem:[#allocation10 + $0x110] ss:$8 sps:$4 sm:$0xff]   ;;  %v7097_v57 = vld [vmem:[#allocation10 + $0x124] ss:$8 sps:$4 sm:$0xff]  }
 0x4ad   : > { %v1666_v4 = vadd.f32 %v6389_v19, %v8290_v63  ;;  %v6392_v34 = vadd.f32 %v6391_v30, %v6390_v24  ;;  %1897 = vmatmul.mubr.bf16.gmra.mrb[84].mxu1 %v1701_v45  ;;  %v7100_v19 = vld [vmem:[#allocation10 + $0x134] ss:$8 sps:$4 sm:$0xff]   ;;  %v7098_v24 = vld [vmem:[#allocation10 + $0x130] ss:$8 sps:$4 sm:$0xff]   ;;  %v7103_v45 = vld [vmem:[#allocation10 + $0x144] ss:$8 sps:$4 sm:$0xff]  }
 0x4ae   : > { %1906 = vmatprep.mubr.bf16.mxu1 %v9802_v48  ;;  %2376 = vmatpush1.bf16.msra.mxu1 %v7089_v56  ;;  %v7101_v30 = vld [vmem:[#allocation10 + $0x140] ss:$8 sps:$4 sm:$0xff]  }
 0x4af   : > { %v1669_v36 = vadd.f32 %v6392_v34, %v8290_v63  ;;  %v1692_v50 = vmax.f32 %v1666_v4, 0.0  ;;  %2377 = vmatprep.subr.bf16.mxu1 %v7094_v21  ;;  %v7106_v4 = vld [vmem:[#allocation10 + $0x154] ss:$8 sps:$4 sm:$0xff]   ;;  %v7104_v34 = vld [vmem:[#allocation10 + $0x150] ss:$8 sps:$4 sm:$0xff]  }
 0x4b1   : > { %v1693_v17 = vmax.f32 %v1669_v36, 0.0  ;;  %v6393_v46 = vpop.f32.mrb[60].mxu0  ;;  %v7109_v36 = vld [vmem:[#allocation10 + $0x164] ss:$8 sps:$4 sm:$0xff]  }
 0x4b2   : > { %v6394_v15 = vpop.f32.mrb[61].mxu0  ;;  %2378 = vmatpush1.bf16.msra.mxu1 %v7092_v43 }
 0x4b3   : > { %v6395_v25 = vadd.f32 %v6394_v15, %v6393_v46  ;;  %v6396_v59 = vpop.f32.mrb[62].mxu0  ;;  %v1702_v7 = vpack.c.bf16 %v1693_v17, %v1692_v50  ;;  %2379 = vmatprep.subr.bf16.mxu1 %v7097_v57  ;;  %v7107_v50 = vld [vmem:[#allocation10 + $0x160] ss:$8 sps:$4 sm:$0xff]   ;;  %v6008_v17 = vld [vmem:[%s9790_s6 + $0x2] sm:$0x3] }
 0x4b4   : > { %v6397_v27 = vpop.f32.mrb[63].mxu0  ;;  %v8320_v46 = vrot.slane %v6008_v17, %v7958_v5  ;;  %v8323_v15 = vrot.slane %v6008_v17, %v7953_v3 }
 0x4b5   : > { %v1674_v49 = vadd.f32 %v6395_v25, %v8290_v63  ;;  %v6398_v61 = vadd.f32 %v6397_v27, %v6396_v59  ;;  %1907 = vmatmul.mubr.bf16.gmra.mrb[88].mxu1 %v1702_v7 }
 0x4b6   : > { %1916 = vmatprep.mubr.bf16.mxu1 %v9802_v48 }
 0x4b7   : > { %v1677_v51 = vadd.f32 %v6398_v61, %v8290_v63  ;;  %v1694_v32 = vmax.f32 %v1674_v49, 0.0  ;;  %v7095_v63 = vld [vmem:[#allocation10 + $0x120] ss:$8 sps:$4 sm:$0xff]  }
 0x4b8   : > { %2380 = vmatpush1.bf16.msra.mxu1 %v7095_v63 }
 0x4b9   : > { %v1695_v58 = vmax.f32 %v1677_v51, 0.0  ;;  %2381 = vmatprep.subr.bf16.mxu1 %v7100_v19 }
 0x4bb   : > { %v1703_v8 = vpack.c.bf16 %v1695_v58, %v1694_v32 }
 0x4bc   : > { %2382 = vmatpush1.bf16.msra.mxu1 %v7098_v24 }
 0x4bd   : > { %1917 = vmatmul.mubr.bf16.gmra.mrb[92].mxu1 %v1703_v8  ;;  %2383 = vmatprep.subr.bf16.mxu1 %v7103_v45 }
 0x4be   : > { %2407 = vmatprep.mubr.bf16.mxu1 %v9802_v48 }
 0x4c0   : > { %2384 = vmatpush1.bf16.msra.mxu1 %v7101_v30 }
 0x4c1   : > { %2385 = vmatprep.subr.bf16.mxu1 %v7106_v4 }
 0x4c4   : > { %2386 = vmatpush1.bf16.msra.mxu1 %v7104_v34 }
 0x4c5   : > { %2387 = vmatprep.subr.bf16.mxu1 %v7109_v36 }
 0x4c8   : > { %2388 = vmatpush1.bf16.msra.mxu1 %v7107_v50 }
 0x558   : > { %v1848_v25 = vpop.f32.mrb[64].mxu1 }
 0x559   : > { %v1849_v59 = vadd.f32 %v1848_v25, %v8320_v46  ;;  %v1850_v7 = vpop.f32.mrb[65].mxu1 }
 0x55a   : > { %v1851_v27 = vadd.f32 %v1850_v7, %v8323_v15  ;;  %v1852_v49 = vpop.f32.mrb[66].mxu1 }
 0x55b   : > { %v1853_v61 = vadd.f32 %v1852_v49, %v8320_v46  ;;  %v1854_v51 = vpop.f32.mrb[67].mxu1  ;;  %v8333_v8 = vadd.f32 %v1849_v59, %v8138_v20 }
 0x55c   : > { %v8329_v32 = vadd.f32 %v1851_v27, %v8134_v18  ;;  %v1855_v58 = vadd.f32 %v1854_v51, %v8323_v15 }
 0x55d   : > { %v8336_v28 = vadd.f32 %v1853_v61, %v8141_v22  ;;  %v1959_v18 = vmax.f32 %v8333_v8, 0.0 }
 0x55e   : > { %v8339_v0 = vadd.f32 %v1855_v58, %v8144_v33  ;;  %v1960_v31 = vmax.f32 %v8329_v32, 0.0 }
 0x55f   : > { %v1961_v56 = vmax.f32 %v8336_v28, 0.0 }
 0x560   : > { %v1962_v21 = vmax.f32 %v8339_v0, 0.0  ;;  %v1858_v43 = vpop.f32.mrb[68].mxu1 }
 0x561   : > { %v1859_v57 = vadd.f32 %v1858_v43, %v8320_v46  ;;  %v1860_v63 = vpop.f32.mrb[69].mxu1  ;;  %v1991_v24 = vpack.c.bf16 %v1961_v56, %v1959_v18 }
 0x562   : > { %v1861_v20 = vadd.f32 %v1860_v63, %v8323_v15  ;;  %v1862_v19 = vpop.f32.mrb[70].mxu1  ;;  %v1992_v22 = vpack.c.bf16 %v1962_v21, %v1960_v31 }
 0x563   : > { %v1863_v33 = vadd.f32 %v1862_v19, %v8320_v46  ;;  %v1864_v45 = vpop.f32.mrb[71].mxu1  ;;  %v8353_v34 = vadd.f32 %v1859_v57, %v8158_v52 }
 0x564   : > { %v8349_v30 = vadd.f32 %v1861_v20, %v8154_v6  ;;  %v1865_v4 = vadd.f32 %v1864_v45, %v8323_v15  ;;  %2176 = vmatprep.mubr.bf16.mxu0 %v1992_v22 }
 0x565   : > { %v8356_v36 = vadd.f32 %v1863_v33, %v8161_v53  ;;  %2177 = vmatmul.mubr.bf16.vlgmr.msra.gmra.mrb[64].mxu0 %v1991_v24  ;;  %v1963_v7 = vmax.f32 %v8353_v34, 0.0 }
 0x566   : > { %v8359_v50 = vadd.f32 %v1865_v4, %v8164_v54  ;;  %v1964_v25 = vmax.f32 %v8349_v30, 0.0 }
 0x567   : > { %v1965_v17 = vmax.f32 %v8356_v36, 0.0 }
 0x568   : > { %v1966_v6 = vmax.f32 %v8359_v50, 0.0  ;;  %v1868_v59 = vpop.f32.mrb[72].mxu1 }
 0x569   : > { %v1869_v27 = vadd.f32 %v1868_v59, %v8320_v46  ;;  %v1870_v52 = vpop.f32.mrb[73].mxu1  ;;  %v1993_v58 = vpack.c.bf16 %v1965_v17, %v1963_v7 }
 0x56a   : > { %v1871_v49 = vadd.f32 %v1870_v52, %v8323_v15  ;;  %v1872_v53 = vpop.f32.mrb[74].mxu1  ;;  %v1994_v61 = vpack.c.bf16 %v1966_v6, %v1964_v25 }
 0x56b   : > { %v1873_v51 = vadd.f32 %v1872_v53, %v8320_v46  ;;  %v1874_v54 = vpop.f32.mrb[75].mxu1  ;;  %v8373_v21 = vadd.f32 %v1869_v27, %v8178_v37 }
 0x56c   : > { %v8369_v56 = vadd.f32 %v1871_v49, %v8174_v35  ;;  %v1875_v31 = vadd.f32 %v1874_v54, %v8323_v15  ;;  %2184 = vmatprep.mubr.bf16.mxu0 %v1994_v61 }
 0x56d   : > { %v8376_v43 = vadd.f32 %v1873_v51, %v8181_v38  ;;  %2185 = vmatmul.mubr.bf16.gmra.mrb[68].mxu0 %v1993_v58  ;;  %v1967_v19 = vmax.f32 %v8373_v21, 0.0 }
 0x56e   : > { %v8379_v18 = vadd.f32 %v1875_v31, %v8184_v10  ;;  %v1968_v63 = vmax.f32 %v8369_v56, 0.0 }
 0x56f   : > { %v1969_v57 = vmax.f32 %v8376_v43, 0.0 }
 0x570   : > { %v1970_v35 = vmax.f32 %v8379_v18, 0.0  ;;  %v1878_v20 = vpop.f32.mrb[76].mxu1 }
 0x571   : > { %v1879_v22 = vadd.f32 %v1878_v20, %v8320_v46  ;;  %v1880_v37 = vpop.f32.mrb[77].mxu1  ;;  %v1995_v4 = vpack.c.bf16 %v1969_v57, %v1967_v19 }
 0x572   : > { %v1881_v24 = vadd.f32 %v1880_v37, %v8323_v15  ;;  %v1882_v38 = vpop.f32.mrb[78].mxu1  ;;  %v1996_v33 = vpack.c.bf16 %v1970_v35, %v1968_v63 }
 0x573   : > { %v1883_v45 = vadd.f32 %v1882_v38, %v8320_v46  ;;  %v1884_v10 = vpop.f32.mrb[79].mxu1  ;;  %v8393_v6 = vadd.f32 %v1879_v22, %v8198_v60 }
 0x574   : > { %v8389_v17 = vadd.f32 %v1881_v24, %v8194_v55  ;;  %v1885_v25 = vadd.f32 %v1884_v10, %v8323_v15  ;;  %2192 = vmatprep.mubr.bf16.mxu0 %v1996_v33 }
 0x575   : > { %v8396_v59 = vadd.f32 %v1883_v45, %v8201_v26  ;;  %2193 = vmatmul.mubr.bf16.gmra.mrb[72].mxu0 %v1995_v4  ;;  %v1971_v53 = vmax.f32 %v8393_v6, 0.0 }
 0x576   : > { %v8399_v7 = vadd.f32 %v1885_v25, %v8204_v2  ;;  %v1972_v52 = vmax.f32 %v8389_v17, 0.0 }
 0x577   : > { %v1973_v27 = vmax.f32 %v8396_v59, 0.0 }
 0x578   : > { %v1974_v55 = vmax.f32 %v8399_v7, 0.0  ;;  %v1888_v49 = vpop.f32.mrb[80].mxu1 }
 0x579   : > { %v1889_v61 = vadd.f32 %v1888_v49, %v8320_v46  ;;  %v1890_v60 = vpop.f32.mrb[81].mxu1  ;;  %v1997_v31 = vpack.c.bf16 %v1973_v27, %v1971_v53 }
 0x57a   : > { %v1891_v51 = vadd.f32 %v1890_v60, %v8323_v15  ;;  %v1892_v26 = vpop.f32.mrb[82].mxu1  ;;  %v1998_v54 = vpack.c.bf16 %v1974_v55, %v1972_v52 }
 0x57b   : > { %v1893_v58 = vadd.f32 %v1892_v26, %v8320_v46  ;;  %v1894_v2 = vpop.f32.mrb[83].mxu1  ;;  %v8413_v35 = vadd.f32 %v1889_v61, %v8218_v44 }
 0x57c   : > { %v8409_v57 = vadd.f32 %v1891_v51, %v8214_v39  ;;  %v1895_v63 = vadd.f32 %v1894_v2, %v8323_v15  ;;  %2200 = vmatprep.mubr.bf16.mxu0 %v1998_v54 }
 0x57d   : > { %v8416_v20 = vadd.f32 %v1893_v58, %v8221_v12  ;;  %2201 = vmatmul.mubr.bf16.gmra.mrb[76].mxu0 %v1997_v31  ;;  %v1975_v38 = vmax.f32 %v8413_v35, 0.0 }
 0x57e   : > { %v8419_v19 = vadd.f32 %v1895_v63, %v8224_v40  ;;  %v1976_v37 = vmax.f32 %v8409_v57, 0.0 }
 0x57f   : > { %v1977_v22 = vmax.f32 %v8416_v20, 0.0 }
 0x580   : > { %v1978_v39 = vmax.f32 %v8419_v19, 0.0  ;;  %v1898_v24 = vpop.f32.mrb[84].mxu1 }
 0x581   : > { %v1899_v33 = vadd.f32 %v1898_v24, %v8320_v46  ;;  %v1900_v44 = vpop.f32.mrb[85].mxu1  ;;  %v1999_v25 = vpack.c.bf16 %v1977_v22, %v1975_v38 }
 0x582   : > { %v1901_v45 = vadd.f32 %v1900_v44, %v8323_v15  ;;  %v1902_v12 = vpop.f32.mrb[86].mxu1  ;;  %v2000_v10 = vpack.c.bf16 %v1978_v39, %v1976_v37 }
 0x583   : > { %v1903_v4 = vadd.f32 %v1902_v12, %v8320_v46  ;;  %v1904_v40 = vpop.f32.mrb[87].mxu1  ;;  %v8433_v55 = vadd.f32 %v1899_v33, %v8238_v62 }
 0x584   : > { %v8429_v27 = vadd.f32 %v1901_v45, %v8234_v9  ;;  %v1905_v52 = vadd.f32 %v1904_v40, %v8323_v15  ;;  %2208 = vmatprep.mubr.bf16.mxu0 %v2000_v10 }
 0x585   : > { %v8436_v49 = vadd.f32 %v1903_v4, %v8241_v11  ;;  %2209 = vmatmul.mubr.bf16.gmra.mrb[80].mxu0 %v1999_v25  ;;  %v1979_v26 = vmax.f32 %v8433_v55, 0.0 }
 0x586   : > { %v8439_v53 = vadd.f32 %v1905_v52, %v8244_v29  ;;  %v1980_v60 = vmax.f32 %v8429_v27, 0.0 }
 0x587   : > { %v1981_v61 = vmax.f32 %v8436_v49, 0.0 }
 0x588   : > { %v1982_v9 = vmax.f32 %v8439_v53, 0.0  ;;  %v1908_v51 = vpop.f32.mrb[88].mxu1 }
 0x589   : > { %v1909_v54 = vadd.f32 %v1908_v51, %v8320_v46  ;;  %v1910_v62 = vpop.f32.mrb[89].mxu1  ;;  %v2001_v63 = vpack.c.bf16 %v1981_v61, %v1979_v26 }
 0x58a   : > { %v1911_v58 = vadd.f32 %v1910_v62, %v8323_v15  ;;  %v1912_v11 = vpop.f32.mrb[90].mxu1  ;;  %v2002_v2 = vpack.c.bf16 %v1982_v9, %v1980_v60 }
 0x58b   : > { %v1913_v31 = vadd.f32 %v1912_v11, %v8320_v46  ;;  %v1914_v29 = vpop.f32.mrb[91].mxu1  ;;  %v8453_v39 = vadd.f32 %v1909_v54, %v8258_v23  ;;  %v7110_v11 = vld [vmem:[#allocation10 + $0x170] ss:$8 sps:$4 sm:$0xff]  }
 0x58c   : > { %v8449_v22 = vadd.f32 %v1911_v58, %v8254_v13  ;;  %v1915_v37 = vadd.f32 %v1914_v29, %v8323_v15  ;;  %2216 = vmatprep.mubr.bf16.mxu0 %v2002_v2  ;;  %v7114_v2 = vld [vmem:[#allocation7 + $0x180] sm:$0xff]   ;;  %v7117_v29 = vld [vmem:[#allocation7 + $0x1d0] sm:$0xff]  }
 0x58d   : > { %v8456_v24 = vadd.f32 %v1913_v31, %v8261_v42  ;;  %2217 = vmatmul.mubr.bf16.gmra.mrb[84].mxu0 %v2001_v63  ;;  %v1983_v12 = vmax.f32 %v8453_v39, 0.0  ;;  %v7116_v31 = vld [vmem:[#allocation7 + $0x188] sm:$0xff]   ;;  %v7118_v63 = vld [vmem:[#allocation7 + $0x190] sm:$0xff]  }
 0x58e   : > { %v8459_v38 = vadd.f32 %v1915_v37, %v8264_v47  ;;  %v1984_v44 = vmax.f32 %v8449_v22, 0.0  ;;  %v7119_v37 = vld [vmem:[#allocation7 + $0x1d8] sm:$0xff]  }
 0x58f   : > { %v1985_v33 = vmax.f32 %v8456_v24, 0.0 }
 0x590   : > { %v1986_v13 = vmax.f32 %v8459_v38, 0.0  ;;  %v1918_v45 = vpop.f32.mrb[92].mxu1 }
 0x591   : > { %v1919_v10 = vadd.f32 %v1918_v45, %v8320_v46  ;;  %v1920_v23 = vpop.f32.mrb[93].mxu1  ;;  %v2003_v52 = vpack.c.bf16 %v1985_v33, %v1983_v12  ;;  %v7120_v33 = vld [vmem:[#allocation7 + $0x198] sm:$0xff]   ;;  %v7123_v45 = vld [vmem:[#allocation7 + $0x1e8] sm:$0xff]  }
 0x592   : > { %v1921_v4 = vadd.f32 %v1920_v23, %v8323_v15  ;;  %v1922_v42 = vpop.f32.mrb[94].mxu1  ;;  %v2004_v40 = vpack.c.bf16 %v1986_v13, %v1984_v44  ;;  %v7121_v44 = vld [vmem:[#allocation7 + $0x1e0] sm:$0xff]   ;;  %v7124_v12 = vld [vmem:[#allocation7 + $0x1a8] sm:$0xff]   ;;  %v7126_v23 = vld [vmem:[#allocation7 + $0x1b0] sm:$0xff]  }
 0x593   : > { %v1923_v25 = vadd.f32 %v1922_v42, %v8320_v46  ;;  %v1924_v47 = vpop.f32.mrb[95].mxu1  ;;  %v8473_v9 = vadd.f32 %v1919_v10, %v8278_v41  ;;  %v7112_v41 = vld [vmem:[#allocation10 + $0x174] ss:$8 sps:$4 sm:$0xff]   ;;  %v7125_v10 = vld [vmem:[#allocation7 + $0x1f0] sm:$0xff]   ;;  %v8485_v42 = vld [vmem:[#allocation8 + $0x2] ss:$0 sm:$0xff] }
 0x594   : > { %v8469_v61 = vadd.f32 %v1921_v4, %v8274_v14  ;;  %v1925_v60 = vadd.f32 %v1924_v47, %v8323_v15  ;;  %2224 = vmatprep.mubr.bf16.mxu0 %v2004_v40  ;;  %2389 = vmatprep.subr.bf16.mxu1 %v7112_v41  ;;  %v7122_v13 = vld [vmem:[#allocation7 + $0x1a0] sm:$0xff]  }
 0x595   : > { %v8476_v51 = vadd.f32 %v1923_v25, %v8281_v16  ;;  %2225 = vmatmul.mubr.bf16.gmra.mrb[88].mxu0 %v2003_v52  ;;  %v1987_v62 = vmax.f32 %v8473_v9, 0.0  ;;  %2390 = vmatpush1.bf16.msra.mxu1 %v7110_v11  ;;  %v7113_v16 = vld [vmem:[#allocation7 + $0x1c0] sm:$0xff]  }
 0x596   : > { %v8479_v26 = vadd.f32 %v1925_v60, %v8284_v1  ;;  %v1988_v54 = vmax.f32 %v8469_v61, 0.0  ;;  %v7115_v1 = vld [vmem:[#allocation7 + $0x1c8] sm:$0xff]   ;;  %6463 = vmatprep.subr.bf16.mxu0 %v7113_v16 }
 0x597   : > { %v1989_v46 = vmax.f32 %v8476_v51, 0.0  ;;  %6464 = vmatpush3.bf16.msra.mxu0 %v7114_v2 }
 0x598   : > { %v1990_v14 = vmax.f32 %v8479_v26, 0.0  ;;  %6465 = vmatprep.subr.bf16.mxu0 %v7115_v1 }
 0x599   : > { %v2005_v58 = vpack.c.bf16 %v1989_v46, %v1987_v62 }
 0x59a   : > { %v2006_v15 = vpack.c.bf16 %v1990_v14, %v1988_v54 }
 0x59b   : > { %6466 = vmatpush3.bf16.msra.mxu0 %v7116_v31 }
 0x59c   : > { %2232 = vmatprep.mubr.bf16.mxu0 %v2006_v15  ;;  %6467 = vmatprep.subr.bf16.mxu0 %v7117_v29 }
 0x59d   : > { %2233 = vmatmul.mubr.bf16.gmra.mrb[92].mxu0 %v2005_v58 }
 0x59f   : > { %6468 = vmatpush3.bf16.msra.mxu0 %v7118_v63 }
 0x5a0   : > { %6469 = vmatprep.subr.bf16.mxu0 %v7119_v37 }
 0x5a3   : > { %6470 = vmatpush3.bf16.msra.mxu0 %v7120_v33 }
 0x5a4   : > { %6471 = vmatprep.subr.bf16.mxu0 %v7121_v44 }
 0x5a7   : > { %6472 = vmatpush3.bf16.msra.mxu0 %v7122_v13 }
 0x5a8   : > { %6473 = vmatprep.subr.bf16.mxu0 %v7123_v45 }
 0x5ab   : > { %6474 = vmatpush3.bf16.msra.mxu0 %v7124_v12 }
 0x5ac   : > { %6475 = vmatprep.subr.bf16.mxu0 %v7125_v10 }
 0x5af   : > { %6476 = vmatpush3.bf16.msra.mxu0 %v7126_v23 }
 0x638   : > { %v6415_v4 = vpop.f32.mrb[64].mxu0 }
 0x639   : > { %v6416_v40 = vpop.f32.mrb[65].mxu0 }
 0x63a   : > { %v6417_v25 = vadd.f32 %v6416_v40, %v6415_v4  ;;  %v6418_v47 = vpop.f32.mrb[66].mxu0 }
 0x63b   : > { %v6419_v52 = vpop.f32.mrb[67].mxu0 }
 0x63c   : > { %v2179_v60 = vadd.f32 %v6417_v25, %v8485_v42  ;;  %v6420_v46 = vadd.f32 %v6419_v52, %v6418_v47 }
 0x63e   : > { %v2182_v54 = vadd.f32 %v6420_v46, %v8485_v42  ;;  %v2241_v14 = vmax.f32 %v2179_v60, 0.0 }
 0x640   : > { %v2242_v62 = vmax.f32 %v2182_v54, 0.0  ;;  %v6421_v15 = vpop.f32.mrb[68].mxu0 }
 0x641   : > { %v6422_v58 = vpop.f32.mrb[69].mxu0 }
 0x642   : > { %v2257_v41 = vpack.c.bf16 %v2242_v62, %v2241_v14  ;;  %v6423_v11 = vadd.f32 %v6422_v58, %v6421_v15  ;;  %v6424_v16 = vpop.f32.mrb[70].mxu0 }
 0x643   : > { %v6425_v2 = vpop.f32.mrb[71].mxu0 }
 0x644   : > { %v2187_v1 = vadd.f32 %v6423_v11, %v8485_v42  ;;  %v6426_v31 = vadd.f32 %v6425_v2, %v6424_v16  ;;  %2408 = vmatmul.mubr.bf16.vlgmr.msra.gmra.mrb[96].mxu1 %v2257_v41 }
 0x645   : > { %2417 = vmatprep.mubr.bf16.mxu1 %v9802_v48 }
 0x646   : > { %v2190_v29 = vadd.f32 %v6426_v31, %v8485_v42  ;;  %v2243_v63 = vmax.f32 %v2187_v1, 0.0 }
 0x648   : > { %v2244_v37 = vmax.f32 %v2190_v29, 0.0  ;;  %v6427_v33 = vpop.f32.mrb[72].mxu0 }
 0x649   : > { %v6428_v44 = vpop.f32.mrb[73].mxu0 }
 0x64a   : > { %v6429_v13 = vadd.f32 %v6428_v44, %v6427_v33  ;;  %v6430_v45 = vpop.f32.mrb[74].mxu0  ;;  %v2258_v12 = vpack.c.bf16 %v2244_v37, %v2243_v63 }
 0x64b   : > { %v6431_v10 = vpop.f32.mrb[75].mxu0 }
 0x64c   : > { %v2195_v23 = vadd.f32 %v6429_v13, %v8485_v42  ;;  %v6432_v4 = vadd.f32 %v6431_v10, %v6430_v45  ;;  %2418 = vmatmul.mubr.bf16.gmra.mrb[100].mxu1 %v2258_v12 }
 0x64d   : > { %2427 = vmatprep.mubr.bf16.mxu1 %v9802_v48 }
 0x64e   : > { %v2198_v40 = vadd.f32 %v6432_v4, %v8485_v42  ;;  %v2245_v25 = vmax.f32 %v2195_v23, 0.0 }
 0x650   : > { %v2246_v47 = vmax.f32 %v2198_v40, 0.0  ;;  %v6433_v52 = vpop.f32.mrb[76].mxu0 }
 0x651   : > { %v6434_v60 = vpop.f32.mrb[77].mxu0 }
 0x652   : > { %v6435_v46 = vadd.f32 %v6434_v60, %v6433_v52  ;;  %v6436_v54 = vpop.f32.mrb[78].mxu0  ;;  %v2259_v14 = vpack.c.bf16 %v2246_v47, %v2245_v25 }
 0x653   : > { %v6437_v62 = vpop.f32.mrb[79].mxu0 }
 0x654   : > { %v2203_v15 = vadd.f32 %v6435_v46, %v8485_v42  ;;  %v6438_v58 = vadd.f32 %v6437_v62, %v6436_v54  ;;  %2428 = vmatmul.mubr.bf16.gmra.mrb[104].mxu1 %v2259_v14 }
 0x655   : > { %2437 = vmatprep.mubr.bf16.mxu1 %v9802_v48 }
 0x656   : > { %v2206_v41 = vadd.f32 %v6438_v58, %v8485_v42  ;;  %v2247_v11 = vmax.f32 %v2203_v15, 0.0 }
 0x658   : > { %v2248_v16 = vmax.f32 %v2206_v41, 0.0  ;;  %v6439_v2 = vpop.f32.mrb[80].mxu0 }
 0x659   : > { %v6440_v1 = vpop.f32.mrb[81].mxu0 }
 0x65a   : > { %v6441_v31 = vadd.f32 %v6440_v1, %v6439_v2  ;;  %v6442_v29 = vpop.f32.mrb[82].mxu0  ;;  %v2260_v63 = vpack.c.bf16 %v2248_v16, %v2247_v11 }
 0x65b   : > { %v6443_v37 = vpop.f32.mrb[83].mxu0 }
 0x65c   : > { %v2211_v33 = vadd.f32 %v6441_v31, %v8485_v42  ;;  %v6444_v44 = vadd.f32 %v6443_v37, %v6442_v29  ;;  %2438 = vmatmul.mubr.bf16.gmra.mrb[108].mxu1 %v2260_v63 }
 0x65d   : > { %2447 = vmatprep.mubr.bf16.mxu1 %v9802_v48 }
 0x65e   : > { %v2214_v13 = vadd.f32 %v6444_v44, %v8485_v42  ;;  %v2249_v45 = vmax.f32 %v2211_v33, 0.0 }
 0x660   : > { %v2250_v12 = vmax.f32 %v2214_v13, 0.0  ;;  %v6445_v10 = vpop.f32.mrb[84].mxu0 }
 0x661   : > { %v6446_v23 = vpop.f32.mrb[85].mxu0 }
 0x662   : > { %v6447_v4 = vadd.f32 %v6446_v23, %v6445_v10  ;;  %v6448_v40 = vpop.f32.mrb[86].mxu0  ;;  %v2261_v25 = vpack.c.bf16 %v2250_v12, %v2249_v45 }
 0x663   : > { %v6449_v47 = vpop.f32.mrb[87].mxu0 }
 0x664   : > { %v2219_v52 = vadd.f32 %v6447_v4, %v8485_v42  ;;  %v6450_v60 = vadd.f32 %v6449_v47, %v6448_v40  ;;  %2448 = vmatmul.mubr.bf16.gmra.mrb[112].mxu1 %v2261_v25 }
 0x665   : > { %2457 = vmatprep.mubr.bf16.mxu1 %v9802_v48 }
 0x666   : > { %v2222_v46 = vadd.f32 %v6450_v60, %v8485_v42  ;;  %v2251_v54 = vmax.f32 %v2219_v52, 0.0  ;;  %v7127_v52 = vld [vmem:[#allocation7 + $0x1f8] sm:$0xff]  }
 0x667   : > { %v7128_v60 = vld [vmem:[#allocation7 + $0x1b8] sm:$0xff]   ;;  %6477 = vmatprep.subr.bf16.mxu0 %v7127_v52 }
 0x668   : > { %v2252_v14 = vmax.f32 %v2222_v46, 0.0  ;;  %v6451_v62 = vpop.f32.mrb[88].mxu0  ;;  %6478 = vmatpush3.bf16.msra.mxu0 %v7128_v60  ;;  %v7129_v46 = vld [vmem:[#allocation10 + $0x180] ss:$8 sps:$4 sm:$0xff]  }
 0x669   : > { %v6452_v15 = vpop.f32.mrb[89].mxu0 }
 0x66a   : > { %v6453_v58 = vadd.f32 %v6452_v15, %v6451_v62  ;;  %v6454_v41 = vpop.f32.mrb[90].mxu0  ;;  %v2262_v11 = vpack.c.bf16 %v2252_v14, %v2251_v54  ;;  %v7131_v54 = vld [vmem:[#allocation10 + $0x184] ss:$8 sps:$4 sm:$0xff]   ;;  %v7134_v14 = vld [vmem:[#allocation10 + $0x194] ss:$8 sps:$4 sm:$0xff]  }
 0x66b   : > { %v6455_v16 = vpop.f32.mrb[91].mxu0  ;;  %2936 = vmatprep.subr.bf16.mxu1 %v7131_v54  ;;  %v7132_v62 = vld [vmem:[#allocation10 + $0x190] ss:$8 sps:$4 sm:$0xff]   ;;  %v7137_v15 = vld [vmem:[#allocation10 + $0x1a4] ss:$8 sps:$4 sm:$0xff]  }
 0x66c   : > { %v2227_v2 = vadd.f32 %v6453_v58, %v8485_v42  ;;  %v6456_v1 = vadd.f32 %v6455_v16, %v6454_v41  ;;  %2458 = vmatmul.mubr.bf16.gmra.mrb[116].mxu1 %v2262_v11  ;;  %v7140_v58 = vld [vmem:[#allocation10 + $0x1b4] ss:$8 sps:$4 sm:$0xff]   ;;  %v7138_v41 = vld [vmem:[#allocation10 + $0x1b0] ss:$8 sps:$4 sm:$0xff]   ;;  %v7143_v11 = vld [vmem:[#allocation10 + $0x1c4] ss:$8 sps:$4 sm:$0xff]  }
 0x66d   : > { %2467 = vmatprep.mubr.bf16.mxu1 %v9802_v48  ;;  %2937 = vmatpush1.bf16.msra.mxu1 %v7129_v46  ;;  %v7141_v16 = vld [vmem:[#allocation10 + $0x1c0] ss:$8 sps:$4 sm:$0xff]  }
 0x66e   : > { %v2230_v31 = vadd.f32 %v6456_v1, %v8485_v42  ;;  %v2253_v29 = vmax.f32 %v2227_v2, 0.0  ;;  %2938 = vmatprep.subr.bf16.mxu1 %v7134_v14  ;;  %v7146_v2 = vld [vmem:[#allocation10 + $0x1d4] ss:$8 sps:$4 sm:$0xff]   ;;  %v7144_v1 = vld [vmem:[#allocation10 + $0x1d0] ss:$8 sps:$4 sm:$0xff]  }
 0x670   : > { %v2254_v63 = vmax.f32 %v2230_v31, 0.0  ;;  %v6457_v37 = vpop.f32.mrb[92].mxu0  ;;  %v7149_v31 = vld [vmem:[#allocation10 + $0x1e4] ss:$8 sps:$4 sm:$0xff]  }
 0x671   : > { %v6458_v33 = vpop.f32.mrb[93].mxu0  ;;  %2939 = vmatpush1.bf16.msra.mxu1 %v7132_v62 }
 0x672   : > { %v6459_v44 = vadd.f32 %v6458_v33, %v6457_v37  ;;  %v6460_v13 = vpop.f32.mrb[94].mxu0  ;;  %v2263_v45 = vpack.c.bf16 %v2254_v63, %v2253_v29  ;;  %2940 = vmatprep.subr.bf16.mxu1 %v7137_v15  ;;  %v7147_v29 = vld [vmem:[#allocation10 + $0x1e0] ss:$8 sps:$4 sm:$0xff]   ;;  %v6042_v63 = vld [vmem:[%s9790_s6 + $0x4] sm:$0x3] }
 0x673   : > { %v6461_v12 = vpop.f32.mrb[95].mxu0  ;;  %v8515_v37 = vrot.slane %v6042_v63, %v7958_v5  ;;  %v8518_v33 = vrot.slane %v6042_v63, %v7953_v3 }
 0x674   : > { %v2235_v10 = vadd.f32 %v6459_v44, %v8485_v42  ;;  %v6462_v23 = vadd.f32 %v6461_v12, %v6460_v13  ;;  %2468 = vmatmul.mubr.bf16.gmra.mrb[120].mxu1 %v2263_v45 }
 0x675   : > { %2477 = vmatprep.mubr.bf16.mxu1 %v9802_v48 }
 0x676   : > { %v2238_v4 = vadd.f32 %v6462_v23, %v8485_v42  ;;  %v2255_v40 = vmax.f32 %v2235_v10, 0.0  ;;  %v7135_v42 = vld [vmem:[#allocation10 + $0x1a0] ss:$8 sps:$4 sm:$0xff]  }
 0x677   : > { %2941 = vmatpush1.bf16.msra.mxu1 %v7135_v42 }
 0x678   : > { %v2256_v25 = vmax.f32 %v2238_v4, 0.0  ;;  %2942 = vmatprep.subr.bf16.mxu1 %v7140_v58 }
 0x67a   : > { %v2264_v47 = vpack.c.bf16 %v2256_v25, %v2255_v40 }
 0x67b   : > { %2943 = vmatpush1.bf16.msra.mxu1 %v7138_v41 }
 0x67c   : > { %2478 = vmatmul.mubr.bf16.gmra.mrb[124].mxu1 %v2264_v47  ;;  %2944 = vmatprep.subr.bf16.mxu1 %v7143_v11 }
 0x67d   : > { %2968 = vmatprep.mubr.bf16.mxu1 %v9802_v48 }
 0x67f   : > { %2945 = vmatpush1.bf16.msra.mxu1 %v7141_v16 }
 0x680   : > { %2946 = vmatprep.subr.bf16.mxu1 %v7146_v2 }
 0x683   : > { %2947 = vmatpush1.bf16.msra.mxu1 %v7144_v1 }
 0x684   : > { %2948 = vmatprep.subr.bf16.mxu1 %v7149_v31 }
 0x687   : > { %2949 = vmatpush1.bf16.msra.mxu1 %v7147_v29 }
 0x717   : > { %v2409_v44 = vpop.f32.mrb[96].mxu1 }
 0x718   : > { %v2410_v13 = vadd.f32 %v2409_v44, %v8515_v37  ;;  %v2411_v45 = vpop.f32.mrb[97].mxu1 }
 0x719   : > { %v2412_v12 = vadd.f32 %v2411_v45, %v8518_v33  ;;  %v2413_v10 = vpop.f32.mrb[98].mxu1 }
 0x71a   : > { %v2414_v23 = vadd.f32 %v2413_v10, %v8515_v37  ;;  %v2415_v4 = vpop.f32.mrb[99].mxu1  ;;  %v8528_v47 = vadd.f32 %v2410_v13, %v8333_v8 }
 0x71b   : > { %v8524_v40 = vadd.f32 %v2412_v12, %v8329_v32  ;;  %v2416_v25 = vadd.f32 %v2415_v4, %v8518_v33 }
 0x71c   : > { %v8531_v52 = vadd.f32 %v2414_v23, %v8336_v28  ;;  %v2520_v32 = vmax.f32 %v8528_v47, 0.0 }
 0x71d   : > { %v8534_v60 = vadd.f32 %v2416_v25, %v8339_v0  ;;  %v2521_v54 = vmax.f32 %v8524_v40, 0.0 }
 0x71e   : > { %v2522_v46 = vmax.f32 %v8531_v52, 0.0 }
 0x71f   : > { %v2523_v14 = vmax.f32 %v8534_v60, 0.0  ;;  %v2419_v62 = vpop.f32.mrb[100].mxu1 }
 0x720   : > { %v2420_v15 = vadd.f32 %v2419_v62, %v8515_v37  ;;  %v2421_v42 = vpop.f32.mrb[101].mxu1  ;;  %v2552_v41 = vpack.c.bf16 %v2522_v46, %v2520_v32 }
 0x721   : > { %v2422_v8 = vadd.f32 %v2421_v42, %v8518_v33  ;;  %v2423_v58 = vpop.f32.mrb[102].mxu1  ;;  %v2553_v28 = vpack.c.bf16 %v2523_v14, %v2521_v54 }
 0x722   : > { %v2424_v0 = vadd.f32 %v2423_v58, %v8515_v37  ;;  %v2425_v11 = vpop.f32.mrb[103].mxu1  ;;  %v8548_v1 = vadd.f32 %v2420_v15, %v8353_v34 }
 0x723   : > { %v8544_v16 = vadd.f32 %v2422_v8, %v8349_v30  ;;  %v2426_v2 = vadd.f32 %v2425_v11, %v8518_v33  ;;  %2737 = vmatprep.mubr.bf16.mxu0 %v2553_v28 }
 0x724   : > { %v8551_v31 = vadd.f32 %v2424_v0, %v8356_v36  ;;  %2738 = vmatmul.mubr.bf16.vlgmr.msra.gmra.mrb[96].mxu0 %v2552_v41  ;;  %v2524_v45 = vmax.f32 %v8548_v1, 0.0 }
 0x725   : > { %v8554_v29 = vadd.f32 %v2426_v2, %v8359_v50  ;;  %v2525_v44 = vmax.f32 %v8544_v16, 0.0 }
 0x726   : > { %v2526_v63 = vmax.f32 %v8551_v31, 0.0 }
 0x727   : > { %v2527_v30 = vmax.f32 %v8554_v29, 0.0  ;;  %v2429_v13 = vpop.f32.mrb[104].mxu1 }
 0x728   : > { %v2430_v12 = vadd.f32 %v2429_v13, %v8515_v37  ;;  %v2431_v34 = vpop.f32.mrb[105].mxu1  ;;  %v2554_v25 = vpack.c.bf16 %v2526_v63, %v2524_v45 }
 0x729   : > { %v2432_v10 = vadd.f32 %v2431_v34, %v8518_v33  ;;  %v2433_v36 = vpop.f32.mrb[106].mxu1  ;;  %v2555_v23 = vpack.c.bf16 %v2527_v30, %v2525_v44 }
 0x72a   : > { %v2434_v4 = vadd.f32 %v2433_v36, %v8515_v37  ;;  %v2435_v50 = vpop.f32.mrb[107].mxu1  ;;  %v8568_v14 = vadd.f32 %v2430_v12, %v8373_v21 }
 0x72b   : > { %v8564_v46 = vadd.f32 %v2432_v10, %v8369_v56  ;;  %v2436_v54 = vadd.f32 %v2435_v50, %v8518_v33  ;;  %2745 = vmatprep.mubr.bf16.mxu0 %v2555_v23 }
 0x72c   : > { %v8571_v62 = vadd.f32 %v2434_v4, %v8376_v43  ;;  %2746 = vmatmul.mubr.bf16.gmra.mrb[100].mxu0 %v2554_v25  ;;  %v2528_v58 = vmax.f32 %v8568_v14, 0.0 }
 0x72d   : > { %v8574_v32 = vadd.f32 %v2436_v54, %v8379_v18  ;;  %v2529_v42 = vmax.f32 %v8564_v46, 0.0 }
 0x72e   : > { %v2530_v15 = vmax.f32 %v8571_v62, 0.0 }
 0x72f   : > { %v2531_v56 = vmax.f32 %v8574_v32, 0.0  ;;  %v2439_v8 = vpop.f32.mrb[108].mxu1 }
 0x730   : > { %v2440_v28 = vadd.f32 %v2439_v8, %v8515_v37  ;;  %v2441_v21 = vpop.f32.mrb[109].mxu1  ;;  %v2556_v2 = vpack.c.bf16 %v2530_v15, %v2528_v58 }
 0x731   : > { %v2442_v41 = vadd.f32 %v2441_v21, %v8518_v33  ;;  %v2443_v43 = vpop.f32.mrb[110].mxu1  ;;  %v2557_v0 = vpack.c.bf16 %v2531_v56, %v2529_v42 }
 0x732   : > { %v2444_v11 = vadd.f32 %v2443_v43, %v8515_v37  ;;  %v2445_v18 = vpop.f32.mrb[111].mxu1  ;;  %v8588_v30 = vadd.f32 %v2440_v28, %v8393_v6 }
 0x733   : > { %v8584_v63 = vadd.f32 %v2442_v41, %v8389_v17  ;;  %v2446_v44 = vadd.f32 %v2445_v18, %v8518_v33  ;;  %2753 = vmatprep.mubr.bf16.mxu0 %v2557_v0 }
 0x734   : > { %v8591_v13 = vadd.f32 %v2444_v11, %v8396_v59  ;;  %2754 = vmatmul.mubr.bf16.gmra.mrb[104].mxu0 %v2556_v2  ;;  %v2532_v36 = vmax.f32 %v8588_v30, 0.0 }
 0x735   : > { %v8594_v45 = vadd.f32 %v2446_v44, %v8399_v7  ;;  %v2533_v34 = vmax.f32 %v8584_v63, 0.0 }
 0x736   : > { %v2534_v12 = vmax.f32 %v8591_v13, 0.0 }
 0x737   : > { %v2535_v17 = vmax.f32 %v8594_v45, 0.0  ;;  %v2449_v10 = vpop.f32.mrb[112].mxu1 }
 0x738   : > { %v2450_v23 = vadd.f32 %v2449_v10, %v8515_v37  ;;  %v2451_v6 = vpop.f32.mrb[113].mxu1  ;;  %v2558_v54 = vpack.c.bf16 %v2534_v12, %v2532_v36 }
 0x739   : > { %v2452_v4 = vadd.f32 %v2451_v6, %v8518_v33  ;;  %v2453_v59 = vpop.f32.mrb[114].mxu1  ;;  %v2559_v50 = vpack.c.bf16 %v2535_v17, %v2533_v34 }
 0x73a   : > { %v2454_v25 = vadd.f32 %v2453_v59, %v8515_v37  ;;  %v2455_v7 = vpop.f32.mrb[115].mxu1  ;;  %v8608_v56 = vadd.f32 %v2450_v23, %v8413_v35 }
 0x73b   : > { %v8604_v15 = vadd.f32 %v2452_v4, %v8409_v57  ;;  %v2456_v42 = vadd.f32 %v2455_v7, %v8518_v33  ;;  %2761 = vmatprep.mubr.bf16.mxu0 %v2559_v50 }
 0x73c   : > { %v8611_v8 = vadd.f32 %v2454_v25, %v8416_v20  ;;  %2762 = vmatmul.mubr.bf16.gmra.mrb[108].mxu0 %v2558_v54  ;;  %v2536_v43 = vmax.f32 %v8608_v56, 0.0 }
 0x73d   : > { %v8614_v58 = vadd.f32 %v2456_v42, %v8419_v19  ;;  %v2537_v21 = vmax.f32 %v8604_v15, 0.0 }
 0x73e   : > { %v2538_v28 = vmax.f32 %v8611_v8, 0.0 }
 0x73f   : > { %v2539_v57 = vmax.f32 %v8614_v58, 0.0  ;;  %v2459_v41 = vpop.f32.mrb[116].mxu1 }
 0x740   : > { %v2460_v0 = vadd.f32 %v2459_v41, %v8515_v37  ;;  %v2461_v35 = vpop.f32.mrb[117].mxu1  ;;  %v2560_v44 = vpack.c.bf16 %v2538_v28, %v2536_v43 }
 0x741   : > { %v2462_v11 = vadd.f32 %v2461_v35, %v8518_v33  ;;  %v2463_v20 = vpop.f32.mrb[118].mxu1  ;;  %v2561_v18 = vpack.c.bf16 %v2539_v57, %v2537_v21 }
 0x742   : > { %v2464_v2 = vadd.f32 %v2463_v20, %v8515_v37  ;;  %v2465_v19 = vpop.f32.mrb[119].mxu1  ;;  %v8628_v17 = vadd.f32 %v2460_v0, %v8433_v55 }
 0x743   : > { %v8624_v12 = vadd.f32 %v2462_v11, %v8429_v27  ;;  %v2466_v34 = vadd.f32 %v2465_v19, %v8518_v33  ;;  %2769 = vmatprep.mubr.bf16.mxu0 %v2561_v18 }
 0x744   : > { %v8631_v10 = vadd.f32 %v2464_v2, %v8436_v49  ;;  %2770 = vmatmul.mubr.bf16.gmra.mrb[112].mxu0 %v2560_v44  ;;  %v2540_v59 = vmax.f32 %v8628_v17, 0.0 }
 0x745   : > { %v8634_v36 = vadd.f32 %v2466_v34, %v8439_v53  ;;  %v2541_v6 = vmax.f32 %v8624_v12, 0.0 }
 0x746   : > { %v2542_v23 = vmax.f32 %v8631_v10, 0.0 }
 0x747   : > { %v2543_v27 = vmax.f32 %v8634_v36, 0.0  ;;  %v2469_v4 = vpop.f32.mrb[120].mxu1 }
 0x748   : > { %v2470_v50 = vadd.f32 %v2469_v4, %v8515_v37  ;;  %v2471_v55 = vpop.f32.mrb[121].mxu1  ;;  %v2562_v42 = vpack.c.bf16 %v2542_v23, %v2540_v59 }
 0x749   : > { %v2472_v25 = vadd.f32 %v2471_v55, %v8518_v33  ;;  %v2473_v49 = vpop.f32.mrb[122].mxu1  ;;  %v2563_v7 = vpack.c.bf16 %v2543_v27, %v2541_v6 }
 0x74a   : > { %v2474_v54 = vadd.f32 %v2473_v49, %v8515_v37  ;;  %v2475_v53 = vpop.f32.mrb[123].mxu1  ;;  %v8648_v57 = vadd.f32 %v2470_v50, %v8453_v39  ;;  %v7150_v49 = vld [vmem:[#allocation10 + $0x1f0] ss:$8 sps:$4 sm:$0xff]  }
 0x74b   : > { %v8644_v28 = vadd.f32 %v2472_v25, %v8449_v22  ;;  %v2476_v21 = vadd.f32 %v2475_v53, %v8518_v33  ;;  %2777 = vmatprep.mubr.bf16.mxu0 %v2563_v7  ;;  %v7154_v7 = vld [vmem:[#allocation7 + $0x200] sm:$0xff]   ;;  %v7157_v53 = vld [vmem:[#allocation7 + $0x250] sm:$0xff]  }
 0x74c   : > { %v8651_v41 = vadd.f32 %v2474_v54, %v8456_v24  ;;  %2778 = vmatmul.mubr.bf16.gmra.mrb[116].mxu0 %v2562_v42  ;;  %v2544_v20 = vmax.f32 %v8648_v57, 0.0  ;;  %v7156_v54 = vld [vmem:[#allocation7 + $0x208] sm:$0xff]   ;;  %v7158_v42 = vld [vmem:[#allocation7 + $0x210] sm:$0xff]  }
 0x74d   : > { %v8654_v43 = vadd.f32 %v2476_v21, %v8459_v38  ;;  %v2545_v35 = vmax.f32 %v8644_v28, 0.0  ;;  %v7159_v21 = vld [vmem:[#allocation7 + $0x258] sm:$0xff]  }
 0x74e   : > { %v2546_v0 = vmax.f32 %v8651_v41, 0.0 }
 0x74f   : > { %v2547_v22 = vmax.f32 %v8654_v43, 0.0  ;;  %v2479_v11 = vpop.f32.mrb[124].mxu1 }
 0x750   : > { %v2480_v18 = vadd.f32 %v2479_v11, %v8515_v37  ;;  %v2481_v39 = vpop.f32.mrb[125].mxu1  ;;  %v2564_v34 = vpack.c.bf16 %v2546_v0, %v2544_v20  ;;  %v7160_v0 = vld [vmem:[#allocation7 + $0x218] sm:$0xff]   ;;  %v7163_v11 = vld [vmem:[#allocation7 + $0x268] sm:$0xff]  }
 0x751   : > { %v2482_v2 = vadd.f32 %v2481_v39, %v8518_v33  ;;  %v2483_v24 = vpop.f32.mrb[126].mxu1  ;;  %v2565_v19 = vpack.c.bf16 %v2547_v22, %v2545_v35  ;;  %v7161_v35 = vld [vmem:[#allocation7 + $0x260] sm:$0xff]   ;;  %v7164_v20 = vld [vmem:[#allocation7 + $0x228] sm:$0xff]   ;;  %v7166_v39 = vld [vmem:[#allocation7 + $0x230] sm:$0xff]  }
 0x752   : > { %v2484_v44 = vadd.f32 %v2483_v24, %v8515_v37  ;;  %v2485_v38 = vpop.f32.mrb[127].mxu1  ;;  %v8668_v27 = vadd.f32 %v2480_v18, %v8473_v9  ;;  %v7152_v9 = vld [vmem:[#allocation10 + $0x1f4] ss:$8 sps:$4 sm:$0xff]   ;;  %v7165_v18 = vld [vmem:[#allocation7 + $0x270] sm:$0xff]   ;;  %v8680_v24 = vld [vmem:[#allocation8 + $0x3] ss:$0 sm:$0xff] }
 0x753   : > { %v8664_v23 = vadd.f32 %v2482_v2, %v8469_v61  ;;  %v2486_v6 = vadd.f32 %v2485_v38, %v8518_v33  ;;  %2785 = vmatprep.mubr.bf16.mxu0 %v2565_v19  ;;  %2950 = vmatprep.subr.bf16.mxu1 %v7152_v9  ;;  %v7162_v22 = vld [vmem:[#allocation7 + $0x220] sm:$0xff]  }
 0x754   : > { %v8671_v4 = vadd.f32 %v2484_v44, %v8476_v51  ;;  %2786 = vmatmul.mubr.bf16.gmra.mrb[120].mxu0 %v2564_v34  ;;  %v2548_v55 = vmax.f32 %v8668_v27, 0.0  ;;  %2951 = vmatpush1.bf16.msra.mxu1 %v7150_v49  ;;  %v7153_v51 = vld [vmem:[#allocation7 + $0x240] sm:$0xff]  }
 0x755   : > { %v8674_v59 = vadd.f32 %v2486_v6, %v8479_v26  ;;  %v2549_v50 = vmax.f32 %v8664_v23, 0.0  ;;  %v7155_v26 = vld [vmem:[#allocation7 + $0x248] sm:$0xff]   ;;  %6527 = vmatprep.subr.bf16.mxu0 %v7153_v51 }
 0x756   : > { %v2550_v37 = vmax.f32 %v8671_v4, 0.0  ;;  %6528 = vmatpush3.bf16.msra.mxu0 %v7154_v7 }
 0x757   : > { %v2551_v61 = vmax.f32 %v8674_v59, 0.0  ;;  %6529 = vmatprep.subr.bf16.mxu0 %v7155_v26 }
 0x758   : > { %v2566_v25 = vpack.c.bf16 %v2550_v37, %v2548_v55 }
 0x759   : > { %v2567_v33 = vpack.c.bf16 %v2551_v61, %v2549_v50 }
 0x75a   : > { %6530 = vmatpush3.bf16.msra.mxu0 %v7156_v54 }
 0x75b   : > { %2793 = vmatprep.mubr.bf16.mxu0 %v2567_v33  ;;  %6531 = vmatprep.subr.bf16.mxu0 %v7157_v53 }
 0x75c   : > { %2794 = vmatmul.mubr.bf16.gmra.mrb[124].mxu0 %v2566_v25 }
 0x75e   : > { %6532 = vmatpush3.bf16.msra.mxu0 %v7158_v42 }
 0x75f   : > { %6533 = vmatprep.subr.bf16.mxu0 %v7159_v21 }
 0x762   : > { %6534 = vmatpush3.bf16.msra.mxu0 %v7160_v0 }
 0x763   : > { %6535 = vmatprep.subr.bf16.mxu0 %v7161_v35 }
 0x766   : > { %6536 = vmatpush3.bf16.msra.mxu0 %v7162_v22 }
 0x767   : > { %6537 = vmatprep.subr.bf16.mxu0 %v7163_v11 }
 0x76a   : > { %6538 = vmatpush3.bf16.msra.mxu0 %v7164_v20 }
 0x76b   : > { %6539 = vmatprep.subr.bf16.mxu0 %v7165_v18 }
 0x76e   : > { %6540 = vmatpush3.bf16.msra.mxu0 %v7166_v39 }
 0x7f7   : > { %v6479_v2 = vpop.f32.mrb[96].mxu0 }
 0x7f8   : > { %v6480_v19 = vpop.f32.mrb[97].mxu0 }
 0x7f9   : > { %v6481_v44 = vadd.f32 %v6480_v19, %v6479_v2  ;;  %v6482_v38 = vpop.f32.mrb[98].mxu0 }
 0x7fa   : > { %v6483_v34 = vpop.f32.mrb[99].mxu0 }
 0x7fb   : > { %v2740_v6 = vadd.f32 %v6481_v44, %v8680_v24  ;;  %v6484_v37 = vadd.f32 %v6483_v34, %v6482_v38 }
 0x7fd   : > { %v2743_v50 = vadd.f32 %v6484_v37, %v8680_v24  ;;  %v2802_v61 = vmax.f32 %v2740_v6, 0.0 }
 0x7ff   : > { %v2803_v55 = vmax.f32 %v2743_v50, 0.0  ;;  %v6485_v33 = vpop.f32.mrb[100].mxu0 }
 0x800   : > { %v6486_v25 = vpop.f32.mrb[101].mxu0 }
 0x801   : > { %v2818_v9 = vpack.c.bf16 %v2803_v55, %v2802_v61  ;;  %v6487_v49 = vadd.f32 %v6486_v25, %v6485_v33  ;;  %v6488_v51 = vpop.f32.mrb[102].mxu0 }
 0x802   : > { %v6489_v7 = vpop.f32.mrb[103].mxu0 }
 0x803   : > { %v2748_v26 = vadd.f32 %v6487_v49, %v8680_v24  ;;  %v6490_v54 = vadd.f32 %v6489_v7, %v6488_v51  ;;  %2969 = vmatmul.mubr.bf16.vlgmr.msra.gmra.mrb[128].mxu1 %v2818_v9 }
 0x804   : > { %2978 = vmatprep.mubr.bf16.mxu1 %v9802_v48 }
 0x805   : > { %v2751_v53 = vadd.f32 %v6490_v54, %v8680_v24  ;;  %v2804_v42 = vmax.f32 %v2748_v26, 0.0 }
 0x807   : > { %v2805_v21 = vmax.f32 %v2751_v53, 0.0  ;;  %v6491_v0 = vpop.f32.mrb[104].mxu0 }
 0x808   : > { %v6492_v35 = vpop.f32.mrb[105].mxu0 }
 0x809   : > { %v6493_v22 = vadd.f32 %v6492_v35, %v6491_v0  ;;  %v6494_v11 = vpop.f32.mrb[106].mxu0  ;;  %v2819_v20 = vpack.c.bf16 %v2805_v21, %v2804_v42 }
 0x80a   : > { %v6495_v18 = vpop.f32.mrb[107].mxu0 }
 0x80b   : > { %v2756_v39 = vadd.f32 %v6493_v22, %v8680_v24  ;;  %v6496_v2 = vadd.f32 %v6495_v18, %v6494_v11  ;;  %2979 = vmatmul.mubr.bf16.gmra.mrb[132].mxu1 %v2819_v20 }
 0x80c   : > { %2988 = vmatprep.mubr.bf16.mxu1 %v9802_v48 }
 0x80d   : > { %v2759_v19 = vadd.f32 %v6496_v2, %v8680_v24  ;;  %v2806_v44 = vmax.f32 %v2756_v39, 0.0 }
 0x80f   : > { %v2807_v38 = vmax.f32 %v2759_v19, 0.0  ;;  %v6497_v34 = vpop.f32.mrb[108].mxu0 }
 0x810   : > { %v6498_v6 = vpop.f32.mrb[109].mxu0 }
 0x811   : > { %v6499_v37 = vadd.f32 %v6498_v6, %v6497_v34  ;;  %v6500_v50 = vpop.f32.mrb[110].mxu0  ;;  %v2820_v61 = vpack.c.bf16 %v2807_v38, %v2806_v44 }
 0x812   : > { %v6501_v55 = vpop.f32.mrb[111].mxu0 }
 0x813   : > { %v2764_v33 = vadd.f32 %v6499_v37, %v8680_v24  ;;  %v6502_v25 = vadd.f32 %v6501_v55, %v6500_v50  ;;  %2989 = vmatmul.mubr.bf16.gmra.mrb[136].mxu1 %v2820_v61 }
 0x814   : > { %2998 = vmatprep.mubr.bf16.mxu1 %v9802_v48 }
 0x815   : > { %v2767_v9 = vadd.f32 %v6502_v25, %v8680_v24  ;;  %v2808_v49 = vmax.f32 %v2764_v33, 0.0 }
 0x817   : > { %v2809_v51 = vmax.f32 %v2767_v9, 0.0  ;;  %v6503_v7 = vpop.f32.mrb[112].mxu0 }
 0x818   : > { %v6504_v26 = vpop.f32.mrb[113].mxu0 }
 0x819   : > { %v6505_v54 = vadd.f32 %v6504_v26, %v6503_v7  ;;  %v6506_v53 = vpop.f32.mrb[114].mxu0  ;;  %v2821_v42 = vpack.c.bf16 %v2809_v51, %v2808_v49 }
 0x81a   : > { %v6507_v21 = vpop.f32.mrb[115].mxu0 }
 0x81b   : > { %v2772_v0 = vadd.f32 %v6505_v54, %v8680_v24  ;;  %v6508_v35 = vadd.f32 %v6507_v21, %v6506_v53  ;;  %2999 = vmatmul.mubr.bf16.gmra.mrb[140].mxu1 %v2821_v42 }
 0x81c   : > { %3008 = vmatprep.mubr.bf16.mxu1 %v9802_v48 }
 0x81d   : > { %v2775_v22 = vadd.f32 %v6508_v35, %v8680_v24  ;;  %v2810_v11 = vmax.f32 %v2772_v0, 0.0 }
 0x81f   : > { %v2811_v20 = vmax.f32 %v2775_v22, 0.0  ;;  %v6509_v18 = vpop.f32.mrb[116].mxu0 }
 0x820   : > { %v6510_v39 = vpop.f32.mrb[117].mxu0 }
 0x821   : > { %v6511_v2 = vadd.f32 %v6510_v39, %v6509_v18  ;;  %v6512_v19 = vpop.f32.mrb[118].mxu0  ;;  %v2822_v44 = vpack.c.bf16 %v2811_v20, %v2810_v11 }
 0x822   : > { %v6513_v38 = vpop.f32.mrb[119].mxu0 }
 0x823   : > { %v2780_v34 = vadd.f32 %v6511_v2, %v8680_v24  ;;  %v6514_v6 = vadd.f32 %v6513_v38, %v6512_v19  ;;  %3009 = vmatmul.mubr.bf16.gmra.mrb[144].mxu1 %v2822_v44 }
 0x824   : > { %3018 = vmatprep.mubr.bf16.mxu1 %v9802_v48 }
 0x825   : > { %v2783_v37 = vadd.f32 %v6514_v6, %v8680_v24  ;;  %v2812_v50 = vmax.f32 %v2780_v34, 0.0  ;;  %v7167_v34 = vld [vmem:[#allocation7 + $0x278] sm:$0xff]  }
 0x826   : > { %v7168_v6 = vld [vmem:[#allocation7 + $0x238] sm:$0xff]   ;;  %6541 = vmatprep.subr.bf16.mxu0 %v7167_v34 }
 0x827   : > { %v2813_v61 = vmax.f32 %v2783_v37, 0.0  ;;  %v6515_v55 = vpop.f32.mrb[120].mxu0  ;;  %6542 = vmatpush3.bf16.msra.mxu0 %v7168_v6  ;;  %v7169_v37 = vld [vmem:[#allocation10 + $0x200] ss:$8 sps:$4 sm:$0xff]  }
 0x828   : > { %v6516_v33 = vpop.f32.mrb[121].mxu0 }
 0x829   : > { %v6517_v25 = vadd.f32 %v6516_v33, %v6515_v55  ;;  %v6518_v9 = vpop.f32.mrb[122].mxu0  ;;  %v2823_v49 = vpack.c.bf16 %v2813_v61, %v2812_v50  ;;  %v7171_v50 = vld [vmem:[#allocation10 + $0x204] ss:$8 sps:$4 sm:$0xff]   ;;  %v7174_v61 = vld [vmem:[#allocation10 + $0x214] ss:$8 sps:$4 sm:$0xff]  }
 0x82a   : > { %v6519_v51 = vpop.f32.mrb[123].mxu0  ;;  %3497 = vmatprep.subr.bf16.mxu1 %v7171_v50  ;;  %v7172_v55 = vld [vmem:[#allocation10 + $0x210] ss:$8 sps:$4 sm:$0xff]   ;;  %v7177_v33 = vld [vmem:[#allocation10 + $0x224] ss:$8 sps:$4 sm:$0xff]  }
 0x82b   : > { %v2788_v7 = vadd.f32 %v6517_v25, %v8680_v24  ;;  %v6520_v26 = vadd.f32 %v6519_v51, %v6518_v9  ;;  %3019 = vmatmul.mubr.bf16.gmra.mrb[148].mxu1 %v2823_v49  ;;  %v7180_v25 = vld [vmem:[#allocation10 + $0x234] ss:$8 sps:$4 sm:$0xff]   ;;  %v7178_v9 = vld [vmem:[#allocation10 + $0x230] ss:$8 sps:$4 sm:$0xff]   ;;  %v7183_v49 = vld [vmem:[#allocation10 + $0x244] ss:$8 sps:$4 sm:$0xff]  }
 0x82c   : > { %3028 = vmatprep.mubr.bf16.mxu1 %v9802_v48  ;;  %3498 = vmatpush1.bf16.msra.mxu1 %v7169_v37  ;;  %v7181_v51 = vld [vmem:[#allocation10 + $0x240] ss:$8 sps:$4 sm:$0xff]  }
 0x82d   : > { %v2791_v54 = vadd.f32 %v6520_v26, %v8680_v24  ;;  %v2814_v53 = vmax.f32 %v2788_v7, 0.0  ;;  %3499 = vmatprep.subr.bf16.mxu1 %v7174_v61  ;;  %v7186_v7 = vld [vmem:[#allocation10 + $0x254] ss:$8 sps:$4 sm:$0xff]   ;;  %v7184_v26 = vld [vmem:[#allocation10 + $0x250] ss:$8 sps:$4 sm:$0xff]  }
 0x82f   : > { %v2815_v42 = vmax.f32 %v2791_v54, 0.0  ;;  %v6521_v21 = vpop.f32.mrb[124].mxu0  ;;  %v7189_v54 = vld [vmem:[#allocation10 + $0x264] ss:$8 sps:$4 sm:$0xff]  }
 0x830   : > { %v6522_v0 = vpop.f32.mrb[125].mxu0  ;;  %3500 = vmatpush1.bf16.msra.mxu1 %v7172_v55 }
 0x831   : > { %v6523_v35 = vadd.f32 %v6522_v0, %v6521_v21  ;;  %v6524_v22 = vpop.f32.mrb[126].mxu0  ;;  %v2824_v11 = vpack.c.bf16 %v2815_v42, %v2814_v53  ;;  %3501 = vmatprep.subr.bf16.mxu1 %v7177_v33  ;;  %v7187_v53 = vld [vmem:[#allocation10 + $0x260] ss:$8 sps:$4 sm:$0xff]   ;;  %v6076_v42 = vld [vmem:[%s9790_s6 + $0x6] sm:$0x3] }
 0x832   : > { %v6525_v20 = vpop.f32.mrb[127].mxu0  ;;  %v8710_v21 = vrot.slane %v6076_v42, %v7958_v5  ;;  %v8713_v0 = vrot.slane %v6076_v42, %v7953_v3 }
 0x833   : > { %v2796_v18 = vadd.f32 %v6523_v35, %v8680_v24  ;;  %v6526_v39 = vadd.f32 %v6525_v20, %v6524_v22  ;;  %3029 = vmatmul.mubr.bf16.gmra.mrb[152].mxu1 %v2824_v11 }
 0x834   : > { %3038 = vmatprep.mubr.bf16.mxu1 %v9802_v48 }
 0x835   : > { %v2799_v2 = vadd.f32 %v6526_v39, %v8680_v24  ;;  %v2816_v19 = vmax.f32 %v2796_v18, 0.0  ;;  %v7175_v24 = vld [vmem:[#allocation10 + $0x220] ss:$8 sps:$4 sm:$0xff]  }
 0x836   : > { %3502 = vmatpush1.bf16.msra.mxu1 %v7175_v24 }
 0x837   : > { %v2817_v44 = vmax.f32 %v2799_v2, 0.0  ;;  %3503 = vmatprep.subr.bf16.mxu1 %v7180_v25 }
 0x839   : > { %v2825_v38 = vpack.c.bf16 %v2817_v44, %v2816_v19 }
 0x83a   : > { %3504 = vmatpush1.bf16.msra.mxu1 %v7178_v9 }
 0x83b   : > { %3039 = vmatmul.mubr.bf16.gmra.mrb[156].mxu1 %v2825_v38  ;;  %3505 = vmatprep.subr.bf16.mxu1 %v7183_v49 }
 0x83c   : > { %3529 = vmatprep.mubr.bf16.mxu1 %v9802_v48 }
 0x83e   : > { %3506 = vmatpush1.bf16.msra.mxu1 %v7181_v51 }
 0x83f   : > { %3507 = vmatprep.subr.bf16.mxu1 %v7186_v7 }
 0x842   : > { %3508 = vmatpush1.bf16.msra.mxu1 %v7184_v26 }
 0x843   : > { %3509 = vmatprep.subr.bf16.mxu1 %v7189_v54 }
 0x846   : > { %3510 = vmatpush1.bf16.msra.mxu1 %v7187_v53 }
 0x8d6   : > { %v2970_v35 = vpop.f32.mrb[128].mxu1 }
 0x8d7   : > { %v2971_v22 = vadd.f32 %v2970_v35, %v8710_v21  ;;  %v2972_v11 = vpop.f32.mrb[129].mxu1 }
 0x8d8   : > { %v2973_v20 = vadd.f32 %v2972_v11, %v8713_v0  ;;  %v2974_v18 = vpop.f32.mrb[130].mxu1 }
 0x8d9   : > { %v2975_v39 = vadd.f32 %v2974_v18, %v8710_v21  ;;  %v2976_v2 = vpop.f32.mrb[131].mxu1  ;;  %v8723_v38 = vadd.f32 %v2971_v22, %v8528_v47 }
 0x8da   : > { %v8719_v19 = vadd.f32 %v2973_v20, %v8524_v40  ;;  %v2977_v44 = vadd.f32 %v2976_v2, %v8713_v0 }
 0x8db   : > { %v8726_v34 = vadd.f32 %v2975_v39, %v8531_v52  ;;  %v3081_v40 = vmax.f32 %v8723_v38, 0.0 }
 0x8dc   : > { %v8729_v6 = vadd.f32 %v2977_v44, %v8534_v60  ;;  %v3082_v50 = vmax.f32 %v8719_v19, 0.0 }
 0x8dd   : > { %v3083_v37 = vmax.f32 %v8726_v34, 0.0 }
 0x8de   : > { %v3084_v61 = vmax.f32 %v8729_v6, 0.0  ;;  %v2980_v55 = vpop.f32.mrb[132].mxu1 }
 0x8df   : > { %v2981_v33 = vadd.f32 %v2980_v55, %v8710_v21  ;;  %v2982_v24 = vpop.f32.mrb[133].mxu1  ;;  %v3113_v9 = vpack.c.bf16 %v3083_v37, %v3081_v40 }
 0x8e0   : > { %v2983_v47 = vadd.f32 %v2982_v24, %v8713_v0  ;;  %v2984_v25 = vpop.f32.mrb[134].mxu1  ;;  %v3114_v52 = vpack.c.bf16 %v3084_v61, %v3082_v50 }
 0x8e1   : > { %v2985_v60 = vadd.f32 %v2984_v25, %v8710_v21  ;;  %v2986_v49 = vpop.f32.mrb[135].mxu1  ;;  %v8743_v26 = vadd.f32 %v2981_v33, %v8548_v1 }
 0x8e2   : > { %v8739_v51 = vadd.f32 %v2983_v47, %v8544_v16  ;;  %v2987_v7 = vadd.f32 %v2986_v49, %v8713_v0  ;;  %3298 = vmatprep.mubr.bf16.mxu0 %v3114_v52 }
 0x8e3   : > { %v8746_v54 = vadd.f32 %v2985_v60, %v8551_v31  ;;  %3299 = vmatmul.mubr.bf16.vlgmr.msra.gmra.mrb[128].mxu0 %v3113_v9  ;;  %v3085_v11 = vmax.f32 %v8743_v26, 0.0 }
 0x8e4   : > { %v8749_v53 = vadd.f32 %v2987_v7, %v8554_v29  ;;  %v3086_v35 = vmax.f32 %v8739_v51, 0.0 }
 0x8e5   : > { %v3087_v42 = vmax.f32 %v8746_v54, 0.0 }
 0x8e6   : > { %v3088_v16 = vmax.f32 %v8749_v53, 0.0  ;;  %v2990_v22 = vpop.f32.mrb[136].mxu1 }
 0x8e7   : > { %v2991_v20 = vadd.f32 %v2990_v22, %v8710_v21  ;;  %v2992_v1 = vpop.f32.mrb[137].mxu1  ;;  %v3115_v44 = vpack.c.bf16 %v3087_v42, %v3085_v11 }
 0x8e8   : > { %v2993_v18 = vadd.f32 %v2992_v1, %v8713_v0  ;;  %v2994_v31 = vpop.f32.mrb[138].mxu1  ;;  %v3116_v39 = vpack.c.bf16 %v3088_v16, %v3086_v35 }
 0x8e9   : > { %v2995_v2 = vadd.f32 %v2994_v31, %v8710_v21  ;;  %v2996_v29 = vpop.f32.mrb[139].mxu1  ;;  %v8763_v61 = vadd.f32 %v2991_v20, %v8568_v14 }
 0x8ea   : > { %v8759_v37 = vadd.f32 %v2993_v18, %v8564_v46  ;;  %v2997_v50 = vadd.f32 %v2996_v29, %v8713_v0  ;;  %3306 = vmatprep.mubr.bf16.mxu0 %v3116_v39 }
 0x8eb   : > { %v8766_v55 = vadd.f32 %v2995_v2, %v8571_v62  ;;  %3307 = vmatmul.mubr.bf16.gmra.mrb[132].mxu0 %v3115_v44  ;;  %v3089_v25 = vmax.f32 %v8763_v61, 0.0 }
 0x8ec   : > { %v8769_v40 = vadd.f32 %v2997_v50, %v8574_v32  ;;  %v3090_v24 = vmax.f32 %v8759_v37, 0.0 }
 0x8ed   : > { %v3091_v33 = vmax.f32 %v8766_v55, 0.0 }
 0x8ee   : > { %v3092_v46 = vmax.f32 %v8769_v40, 0.0  ;;  %v3000_v47 = vpop.f32.mrb[140].mxu1 }
 0x8ef   : > { %v3001_v52 = vadd.f32 %v3000_v47, %v8710_v21  ;;  %v3002_v14 = vpop.f32.mrb[141].mxu1  ;;  %v3117_v7 = vpack.c.bf16 %v3091_v33, %v3089_v25 }
 0x8f0   : > { %v3003_v9 = vadd.f32 %v3002_v14, %v8713_v0  ;;  %v3004_v62 = vpop.f32.mrb[142].mxu1  ;;  %v3118_v60 = vpack.c.bf16 %v3092_v46, %v3090_v24 }
 0x8f1   : > { %v3005_v49 = vadd.f32 %v3004_v62, %v8710_v21  ;;  %v3006_v32 = vpop.f32.mrb[143].mxu1  ;;  %v8783_v16 = vadd.f32 %v3001_v52, %v8588_v30 }
 0x8f2   : > { %v8779_v42 = vadd.f32 %v3003_v9, %v8584_v63  ;;  %v3007_v35 = vadd.f32 %v3006_v32, %v8713_v0  ;;  %3314 = vmatprep.mubr.bf16.mxu0 %v3118_v60 }
 0x8f3   : > { %v8786_v22 = vadd.f32 %v3005_v49, %v8591_v13  ;;  %3315 = vmatmul.mubr.bf16.gmra.mrb[136].mxu0 %v3117_v7  ;;  %v3093_v31 = vmax.f32 %v8783_v16, 0.0 }
 0x8f4   : > { %v8789_v11 = vadd.f32 %v3007_v35, %v8594_v45  ;;  %v3094_v1 = vmax.f32 %v8779_v42, 0.0 }
 0x8f5   : > { %v3095_v20 = vmax.f32 %v8786_v22, 0.0 }
 0x8f6   : > { %v3096_v63 = vmax.f32 %v8789_v11, 0.0  ;;  %v3010_v18 = vpop.f32.mrb[144].mxu1 }
 0x8f7   : > { %v3011_v39 = vadd.f32 %v3010_v18, %v8710_v21  ;;  %v3012_v30 = vpop.f32.mrb[145].mxu1  ;;  %v3119_v50 = vpack.c.bf16 %v3095_v20, %v3093_v31 }
 0x8f8   : > { %v3013_v2 = vadd.f32 %v3012_v30, %v8713_v0  ;;  %v3014_v13 = vpop.f32.mrb[146].mxu1  ;;  %v3120_v29 = vpack.c.bf16 %v3096_v63, %v3094_v1 }
 0x8f9   : > { %v3015_v44 = vadd.f32 %v3014_v13, %v8710_v21  ;;  %v3016_v45 = vpop.f32.mrb[147].mxu1  ;;  %v8803_v46 = vadd.f32 %v3011_v39, %v8608_v56 }
 0x8fa   : > { %v8799_v33 = vadd.f32 %v3013_v2, %v8604_v15  ;;  %v3017_v24 = vadd.f32 %v3016_v45, %v8713_v0  ;;  %3322 = vmatprep.mubr.bf16.mxu0 %v3120_v29 }
 0x8fb   : > { %v8806_v47 = vadd.f32 %v3015_v44, %v8611_v8  ;;  %3323 = vmatmul.mubr.bf16.gmra.mrb[140].mxu0 %v3119_v50  ;;  %v3097_v62 = vmax.f32 %v8803_v46, 0.0 }
 0x8fc   : > { %v8809_v25 = vadd.f32 %v3017_v24, %v8614_v58  ;;  %v3098_v14 = vmax.f32 %v8799_v33, 0.0 }
 0x8fd   : > { %v3099_v52 = vmax.f32 %v8806_v47, 0.0 }
 0x8fe   : > { %v3100_v15 = vmax.f32 %v8809_v25, 0.0  ;;  %v3020_v9 = vpop.f32.mrb[148].mxu1 }
 0x8ff   : > { %v3021_v60 = vadd.f32 %v3020_v9, %v8710_v21  ;;  %v3022_v56 = vpop.f32.mrb[149].mxu1  ;;  %v3121_v35 = vpack.c.bf16 %v3099_v52, %v3097_v62 }
 0x900   : > { %v3023_v49 = vadd.f32 %v3022_v56, %v8713_v0  ;;  %v3024_v8 = vpop.f32.mrb[150].mxu1  ;;  %v3122_v32 = vpack.c.bf16 %v3100_v15, %v3098_v14 }
 0x901   : > { %v3025_v7 = vadd.f32 %v3024_v8, %v8710_v21  ;;  %v3026_v58 = vpop.f32.mrb[151].mxu1  ;;  %v8823_v63 = vadd.f32 %v3021_v60, %v8628_v17 }
 0x902   : > { %v8819_v20 = vadd.f32 %v3023_v49, %v8624_v12  ;;  %v3027_v1 = vadd.f32 %v3026_v58, %v8713_v0  ;;  %3330 = vmatprep.mubr.bf16.mxu0 %v3122_v32 }
 0x903   : > { %v8826_v18 = vadd.f32 %v3025_v7, %v8631_v10  ;;  %3331 = vmatmul.mubr.bf16.gmra.mrb[144].mxu0 %v3121_v35  ;;  %v3101_v13 = vmax.f32 %v8823_v63, 0.0 }
 0x904   : > { %v8829_v31 = vadd.f32 %v3027_v1, %v8634_v36  ;;  %v3102_v30 = vmax.f32 %v8819_v20, 0.0 }
 0x905   : > { %v3103_v39 = vmax.f32 %v8826_v18, 0.0 }
 0x906   : > { %v3104_v12 = vmax.f32 %v8829_v31, 0.0  ;;  %v3030_v2 = vpop.f32.mrb[152].mxu1 }
 0x907   : > { %v3031_v29 = vadd.f32 %v3030_v2, %v8710_v21  ;;  %v3032_v17 = vpop.f32.mrb[153].mxu1  ;;  %v3123_v24 = vpack.c.bf16 %v3103_v39, %v3101_v13 }
 0x908   : > { %v3033_v44 = vadd.f32 %v3032_v17, %v8713_v0  ;;  %v3034_v10 = vpop.f32.mrb[154].mxu1  ;;  %v3124_v45 = vpack.c.bf16 %v3104_v12, %v3102_v30 }
 0x909   : > { %v3035_v50 = vadd.f32 %v3034_v10, %v8710_v21  ;;  %v3036_v36 = vpop.f32.mrb[155].mxu1  ;;  %v8843_v15 = vadd.f32 %v3031_v29, %v8648_v57  ;;  %v7190_v10 = vld [vmem:[#allocation10 + $0x270] ss:$8 sps:$4 sm:$0xff]  }
 0x90a   : > { %v8839_v52 = vadd.f32 %v3033_v44, %v8644_v28  ;;  %v3037_v14 = vadd.f32 %v3036_v36, %v8713_v0  ;;  %3338 = vmatprep.mubr.bf16.mxu0 %v3124_v45  ;;  %v7194_v45 = vld [vmem:[#allocation7 + $0x280] sm:$0xff]   ;;  %v7197_v36 = vld [vmem:[#allocation7 + $0x2d0] sm:$0xff]  }
 0x90b   : > { %v8846_v9 = vadd.f32 %v3035_v50, %v8651_v41  ;;  %3339 = vmatmul.mubr.bf16.gmra.mrb[148].mxu0 %v3123_v24  ;;  %v3105_v8 = vmax.f32 %v8843_v15, 0.0  ;;  %v7196_v50 = vld [vmem:[#allocation7 + $0x288] sm:$0xff]   ;;  %v7198_v24 = vld [vmem:[#allocation7 + $0x290] sm:$0xff]  }
 0x90c   : > { %v8849_v62 = vadd.f32 %v3037_v14, %v8654_v43  ;;  %v3106_v56 = vmax.f32 %v8839_v52, 0.0  ;;  %v7199_v14 = vld [vmem:[#allocation7 + $0x2d8] sm:$0xff]  }
 0x90d   : > { %v3107_v60 = vmax.f32 %v8846_v9, 0.0 }
 0x90e   : > { %v3108_v28 = vmax.f32 %v8849_v62, 0.0  ;;  %v3040_v49 = vpop.f32.mrb[156].mxu1 }
 0x90f   : > { %v3041_v32 = vadd.f32 %v3040_v49, %v8710_v21  ;;  %v3042_v57 = vpop.f32.mrb[157].mxu1  ;;  %v3125_v1 = vpack.c.bf16 %v3107_v60, %v3105_v8  ;;  %v7200_v60 = vld [vmem:[#allocation7 + $0x298] sm:$0xff]   ;;  %v7203_v49 = vld [vmem:[#allocation7 + $0x2e8] sm:$0xff]  }
 0x910   : > { %v3043_v7 = vadd.f32 %v3042_v57, %v8713_v0  ;;  %v3044_v41 = vpop.f32.mrb[158].mxu1  ;;  %v3126_v58 = vpack.c.bf16 %v3108_v28, %v3106_v56  ;;  %v7201_v56 = vld [vmem:[#allocation7 + $0x2e0] sm:$0xff]   ;;  %v7204_v8 = vld [vmem:[#allocation7 + $0x2a8] sm:$0xff]   ;;  %v7206_v57 = vld [vmem:[#allocation7 + $0x2b0] sm:$0xff]  }
 0x911   : > { %v3045_v35 = vadd.f32 %v3044_v41, %v8710_v21  ;;  %v3046_v43 = vpop.f32.mrb[159].mxu1  ;;  %v8863_v12 = vadd.f32 %v3041_v32, %v8668_v27  ;;  %v7192_v27 = vld [vmem:[#allocation10 + $0x274] ss:$8 sps:$4 sm:$0xff]   ;;  %v7205_v32 = vld [vmem:[#allocation7 + $0x2f0] sm:$0xff]  }
 0x912   : > { %v8859_v39 = vadd.f32 %v3043_v7, %v8664_v23  ;;  %v3047_v30 = vadd.f32 %v3046_v43, %v8713_v0  ;;  %3346 = vmatprep.mubr.bf16.mxu0 %v3126_v58  ;;  %3511 = vmatprep.subr.bf16.mxu1 %v7192_v27  ;;  %v7202_v28 = vld [vmem:[#allocation7 + $0x2a0] sm:$0xff]  }
 0x913   : > { %v8866_v2 = vadd.f32 %v3045_v35, %v8671_v4  ;;  %3347 = vmatmul.mubr.bf16.gmra.mrb[152].mxu0 %v3125_v1  ;;  %v3109_v17 = vmax.f32 %v8863_v12, 0.0  ;;  %3512 = vmatpush1.bf16.msra.mxu1 %v7190_v10  ;;  %v7193_v4 = vld [vmem:[#allocation7 + $0x2c0] sm:$0xff]  }
 0x914   : > { %v8869_v13 = vadd.f32 %v3047_v30, %v8674_v59  ;;  %v3110_v29 = vmax.f32 %v8859_v39, 0.0  ;;  %v7195_v59 = vld [vmem:[#allocation7 + $0x2c8] sm:$0xff]   ;;  %6591 = vmatprep.subr.bf16.mxu0 %v7193_v4  ;;  %v8875_v41 = vld [vmem:[#allocation8 + $0x4] ss:$0 sm:$0xff] }
 0x915   : > { %v3111_v21 = vmax.f32 %v8866_v2, 0.0  ;;  %6592 = vmatpush3.bf16.msra.mxu0 %v7194_v45 }
 0x916   : > { %v3112_v23 = vmax.f32 %v8869_v13, 0.0  ;;  %6593 = vmatprep.subr.bf16.mxu0 %v7195_v59 }
 0x917   : > { %v3127_v44 = vpack.c.bf16 %v3111_v21, %v3109_v17 }
 0x918   : > { %v3128_v0 = vpack.c.bf16 %v3112_v23, %v3110_v29 }
 0x919   : > { %6594 = vmatpush3.bf16.msra.mxu0 %v7196_v50 }
 0x91a   : > { %3354 = vmatprep.mubr.bf16.mxu0 %v3128_v0  ;;  %6595 = vmatprep.subr.bf16.mxu0 %v7197_v36 }
 0x91b   : > { %3355 = vmatmul.mubr.bf16.gmra.mrb[156].mxu0 %v3127_v44 }
 0x91d   : > { %6596 = vmatpush3.bf16.msra.mxu0 %v7198_v24 }
 0x91e   : > { %6597 = vmatprep.subr.bf16.mxu0 %v7199_v14 }
 0x921   : > { %6598 = vmatpush3.bf16.msra.mxu0 %v7200_v60 }
 0x922   : > { %6599 = vmatprep.subr.bf16.mxu0 %v7201_v56 }
 0x925   : > { %6600 = vmatpush3.bf16.msra.mxu0 %v7202_v28 }
 0x926   : > { %6601 = vmatprep.subr.bf16.mxu0 %v7203_v49 }
 0x929   : > { %6602 = vmatpush3.bf16.msra.mxu0 %v7204_v8 }
 0x92a   : > { %6603 = vmatprep.subr.bf16.mxu0 %v7205_v32 }
 0x92d   : > { %6604 = vmatpush3.bf16.msra.mxu0 %v7206_v57 }
 0x9b6   : > { %v6543_v7 = vpop.f32.mrb[128].mxu0 }
 0x9b7   : > { %v6544_v58 = vpop.f32.mrb[129].mxu0 }
 0x9b8   : > { %v6545_v35 = vadd.f32 %v6544_v58, %v6543_v7  ;;  %v6546_v43 = vpop.f32.mrb[130].mxu0 }
 0x9b9   : > { %v6547_v1 = vpop.f32.mrb[131].mxu0 }
 0x9ba   : > { %v3301_v30 = vadd.f32 %v6545_v35, %v8875_v41  ;;  %v6548_v21 = vadd.f32 %v6547_v1, %v6546_v43 }
 0x9bc   : > { %v3304_v29 = vadd.f32 %v6548_v21, %v8875_v41  ;;  %v3363_v23 = vmax.f32 %v3301_v30, 0.0 }
 0x9be   : > { %v3364_v17 = vmax.f32 %v3304_v29, 0.0  ;;  %v6549_v0 = vpop.f32.mrb[132].mxu0 }
 0x9bf   : > { %v6550_v44 = vpop.f32.mrb[133].mxu0 }
 0x9c0   : > { %v3379_v27 = vpack.c.bf16 %v3364_v17, %v3363_v23  ;;  %v6551_v10 = vadd.f32 %v6550_v44, %v6549_v0  ;;  %v6552_v4 = vpop.f32.mrb[134].mxu0 }
 0x9c1   : > { %v6553_v45 = vpop.f32.mrb[135].mxu0 }
 0x9c2   : > { %v3309_v59 = vadd.f32 %v6551_v10, %v8875_v41  ;;  %v6554_v50 = vadd.f32 %v6553_v45, %v6552_v4  ;;  %3530 = vmatmul.mubr.bf16.vlgmr.msra.gmra.mrb[160].mxu1 %v3379_v27 }
 0x9c3   : > { %3539 = vmatprep.mubr.bf16.mxu1 %v9802_v48 }
 0x9c4   : > { %v3312_v36 = vadd.f32 %v6554_v50, %v8875_v41  ;;  %v3365_v24 = vmax.f32 %v3309_v59, 0.0 }
 0x9c6   : > { %v3366_v14 = vmax.f32 %v3312_v36, 0.0  ;;  %v6555_v60 = vpop.f32.mrb[136].mxu0 }
 0x9c7   : > { %v6556_v56 = vpop.f32.mrb[137].mxu0 }
 0x9c8   : > { %v6557_v28 = vadd.f32 %v6556_v56, %v6555_v60  ;;  %v6558_v49 = vpop.f32.mrb[138].mxu0  ;;  %v3380_v8 = vpack.c.bf16 %v3366_v14, %v3365_v24 }
 0x9c9   : > { %v6559_v32 = vpop.f32.mrb[139].mxu0 }
 0x9ca   : > { %v3317_v57 = vadd.f32 %v6557_v28, %v8875_v41  ;;  %v6560_v7 = vadd.f32 %v6559_v32, %v6558_v49  ;;  %3540 = vmatmul.mubr.bf16.gmra.mrb[164].mxu1 %v3380_v8 }
 0x9cb   : > { %3549 = vmatprep.mubr.bf16.mxu1 %v9802_v48 }
 0x9cc   : > { %v3320_v58 = vadd.f32 %v6560_v7, %v8875_v41  ;;  %v3367_v35 = vmax.f32 %v3317_v57, 0.0 }
 0x9ce   : > { %v3368_v43 = vmax.f32 %v3320_v58, 0.0  ;;  %v6561_v1 = vpop.f32.mrb[140].mxu0 }
 0x9cf   : > { %v6562_v30 = vpop.f32.mrb[141].mxu0 }
 0x9d0   : > { %v6563_v21 = vadd.f32 %v6562_v30, %v6561_v1  ;;  %v6564_v29 = vpop.f32.mrb[142].mxu0  ;;  %v3381_v23 = vpack.c.bf16 %v3368_v43, %v3367_v35 }
 0x9d1   : > { %v6565_v17 = vpop.f32.mrb[143].mxu0 }
 0x9d2   : > { %v3325_v0 = vadd.f32 %v6563_v21, %v8875_v41  ;;  %v6566_v44 = vadd.f32 %v6565_v17, %v6564_v29  ;;  %3550 = vmatmul.mubr.bf16.gmra.mrb[168].mxu1 %v3381_v23 }
 0x9d3   : > { %3559 = vmatprep.mubr.bf16.mxu1 %v9802_v48 }
 0x9d4   : > { %v3328_v27 = vadd.f32 %v6566_v44, %v8875_v41  ;;  %v3369_v10 = vmax.f32 %v3325_v0, 0.0 }
 0x9d6   : > { %v3370_v4 = vmax.f32 %v3328_v27, 0.0  ;;  %v6567_v45 = vpop.f32.mrb[144].mxu0 }
 0x9d7   : > { %v6568_v59 = vpop.f32.mrb[145].mxu0 }
 0x9d8   : > { %v6569_v50 = vadd.f32 %v6568_v59, %v6567_v45  ;;  %v6570_v36 = vpop.f32.mrb[146].mxu0  ;;  %v3382_v24 = vpack.c.bf16 %v3370_v4, %v3369_v10 }
 0x9d9   : > { %v6571_v14 = vpop.f32.mrb[147].mxu0 }
 0x9da   : > { %v3333_v60 = vadd.f32 %v6569_v50, %v8875_v41  ;;  %v6572_v56 = vadd.f32 %v6571_v14, %v6570_v36  ;;  %3560 = vmatmul.mubr.bf16.gmra.mrb[172].mxu1 %v3382_v24 }
 0x9db   : > { %3569 = vmatprep.mubr.bf16.mxu1 %v9802_v48 }
 0x9dc   : > { %v3336_v28 = vadd.f32 %v6572_v56, %v8875_v41  ;;  %v3371_v49 = vmax.f32 %v3333_v60, 0.0 }
 0x9de   : > { %v3372_v8 = vmax.f32 %v3336_v28, 0.0  ;;  %v6573_v32 = vpop.f32.mrb[148].mxu0 }
 0x9df   : > { %v6574_v57 = vpop.f32.mrb[149].mxu0 }
 0x9e0   : > { %v6575_v7 = vadd.f32 %v6574_v57, %v6573_v32  ;;  %v6576_v58 = vpop.f32.mrb[150].mxu0  ;;  %v3383_v35 = vpack.c.bf16 %v3372_v8, %v3371_v49 }
 0x9e1   : > { %v6577_v43 = vpop.f32.mrb[151].mxu0 }
 0x9e2   : > { %v3341_v1 = vadd.f32 %v6575_v7, %v8875_v41  ;;  %v6578_v30 = vadd.f32 %v6577_v43, %v6576_v58  ;;  %3570 = vmatmul.mubr.bf16.gmra.mrb[176].mxu1 %v3383_v35 }
 0x9e3   : > { %3579 = vmatprep.mubr.bf16.mxu1 %v9802_v48 }
 0x9e4   : > { %v3344_v21 = vadd.f32 %v6578_v30, %v8875_v41  ;;  %v3373_v29 = vmax.f32 %v3341_v1, 0.0  ;;  %v7207_v1 = vld [vmem:[#allocation7 + $0x2f8] sm:$0xff]  }
 0x9e5   : > { %v7208_v30 = vld [vmem:[#allocation7 + $0x2b8] sm:$0xff]   ;;  %6605 = vmatprep.subr.bf16.mxu0 %v7207_v1 }
 0x9e6   : > { %v3374_v23 = vmax.f32 %v3344_v21, 0.0  ;;  %v6579_v17 = vpop.f32.mrb[152].mxu0  ;;  %6606 = vmatpush3.bf16.msra.mxu0 %v7208_v30  ;;  %v7209_v21 = vld [vmem:[#allocation10 + $0x280] ss:$8 sps:$4 sm:$0xff]  }
 0x9e7   : > { %v6580_v0 = vpop.f32.mrb[153].mxu0 }
 0x9e8   : > { %v6581_v44 = vadd.f32 %v6580_v0, %v6579_v17  ;;  %v6582_v27 = vpop.f32.mrb[154].mxu0  ;;  %v3384_v10 = vpack.c.bf16 %v3374_v23, %v3373_v29  ;;  %v7211_v29 = vld [vmem:[#allocation10 + $0x284] ss:$8 sps:$4 sm:$0xff]   ;;  %v7214_v23 = vld [vmem:[#allocation10 + $0x294] ss:$8 sps:$4 sm:$0xff]  }
 0x9e9   : > { %v6583_v4 = vpop.f32.mrb[155].mxu0  ;;  %4058 = vmatprep.subr.bf16.mxu1 %v7211_v29  ;;  %v7212_v17 = vld [vmem:[#allocation10 + $0x290] ss:$8 sps:$4 sm:$0xff]   ;;  %v7217_v0 = vld [vmem:[#allocation10 + $0x2a4] ss:$8 sps:$4 sm:$0xff]  }
 0x9ea   : > { %v3349_v45 = vadd.f32 %v6581_v44, %v8875_v41  ;;  %v6584_v59 = vadd.f32 %v6583_v4, %v6582_v27  ;;  %3580 = vmatmul.mubr.bf16.gmra.mrb[180].mxu1 %v3384_v10  ;;  %v7220_v44 = vld [vmem:[#allocation10 + $0x2b4] ss:$8 sps:$4 sm:$0xff]   ;;  %v7218_v27 = vld [vmem:[#allocation10 + $0x2b0] ss:$8 sps:$4 sm:$0xff]   ;;  %v7223_v10 = vld [vmem:[#allocation10 + $0x2c4] ss:$8 sps:$4 sm:$0xff]  }
 0x9eb   : > { %3589 = vmatprep.mubr.bf16.mxu1 %v9802_v48  ;;  %4059 = vmatpush1.bf16.msra.mxu1 %v7209_v21  ;;  %v7221_v4 = vld [vmem:[#allocation10 + $0x2c0] ss:$8 sps:$4 sm:$0xff]  }
 0x9ec   : > { %v3352_v50 = vadd.f32 %v6584_v59, %v8875_v41  ;;  %v3375_v36 = vmax.f32 %v3349_v45, 0.0  ;;  %4060 = vmatprep.subr.bf16.mxu1 %v7214_v23  ;;  %v7226_v45 = vld [vmem:[#allocation10 + $0x2d4] ss:$8 sps:$4 sm:$0xff]   ;;  %v7224_v59 = vld [vmem:[#allocation10 + $0x2d0] ss:$8 sps:$4 sm:$0xff]  }
 0x9ee   : > { %v3376_v24 = vmax.f32 %v3352_v50, 0.0  ;;  %v6585_v14 = vpop.f32.mrb[156].mxu0  ;;  %v7229_v50 = vld [vmem:[#allocation10 + $0x2e4] ss:$8 sps:$4 sm:$0xff]  }
 0x9ef   : > { %v6586_v60 = vpop.f32.mrb[157].mxu0  ;;  %4061 = vmatpush1.bf16.msra.mxu1 %v7212_v17 }
 0x9f0   : > { %v6587_v56 = vadd.f32 %v6586_v60, %v6585_v14  ;;  %v6588_v28 = vpop.f32.mrb[158].mxu0  ;;  %v3385_v49 = vpack.c.bf16 %v3376_v24, %v3375_v36  ;;  %4062 = vmatprep.subr.bf16.mxu1 %v7217_v0  ;;  %v7227_v36 = vld [vmem:[#allocation10 + $0x2e0] ss:$8 sps:$4 sm:$0xff]  }
 0x9f1   : > { %v6589_v8 = vpop.f32.mrb[159].mxu0  ;;  %v6110_v24 = vld [vmem:[%s9790_s6 + $0x8] sm:$0x3] }
 0x9f2   : > { %v3357_v32 = vadd.f32 %v6587_v56, %v8875_v41  ;;  %v6590_v57 = vadd.f32 %v6589_v8, %v6588_v28  ;;  %3590 = vmatmul.mubr.bf16.gmra.mrb[184].mxu1 %v3385_v49  ;;  %v8905_v14 = vrot.slane %v6110_v24, %v7958_v5  ;;  %v8908_v60 = vrot.slane %v6110_v24, %v7953_v3 }
 0x9f3   : > { %3599 = vmatprep.mubr.bf16.mxu1 %v9802_v48 }
 0x9f4   : > { %v3360_v7 = vadd.f32 %v6590_v57, %v8875_v41  ;;  %v3377_v58 = vmax.f32 %v3357_v32, 0.0  ;;  %v7215_v41 = vld [vmem:[#allocation10 + $0x2a0] ss:$8 sps:$4 sm:$0xff]  }
 0x9f5   : > { %4063 = vmatpush1.bf16.msra.mxu1 %v7215_v41 }
 0x9f6   : > { %v3378_v35 = vmax.f32 %v3360_v7, 0.0  ;;  %4064 = vmatprep.subr.bf16.mxu1 %v7220_v44 }
 0x9f8   : > { %v3386_v43 = vpack.c.bf16 %v3378_v35, %v3377_v58 }
 0x9f9   : > { %4065 = vmatpush1.bf16.msra.mxu1 %v7218_v27 }
 0x9fa   : > { %3600 = vmatmul.mubr.bf16.gmra.mrb[188].mxu1 %v3386_v43  ;;  %4066 = vmatprep.subr.bf16.mxu1 %v7223_v10 }
 0x9fb   : > { %4090 = vmatprep.mubr.bf16.mxu1 %v9802_v48 }
 0x9fd   : > { %4067 = vmatpush1.bf16.msra.mxu1 %v7221_v4 }
 0x9fe   : > { %4068 = vmatprep.subr.bf16.mxu1 %v7226_v45 }
 0xa01   : > { %4069 = vmatpush1.bf16.msra.mxu1 %v7224_v59 }
 0xa02   : > { %4070 = vmatprep.subr.bf16.mxu1 %v7229_v50 }
 0xa05   : > { %4071 = vmatpush1.bf16.msra.mxu1 %v7227_v36 }
 0xa95   : > { %v3531_v56 = vpop.f32.mrb[160].mxu1 }
 0xa96   : > { %v3532_v28 = vadd.f32 %v3531_v56, %v8905_v14  ;;  %v3533_v49 = vpop.f32.mrb[161].mxu1 }
 0xa97   : > { %v3534_v8 = vadd.f32 %v3533_v49, %v8908_v60  ;;  %v3535_v32 = vpop.f32.mrb[162].mxu1 }
 0xa98   : > { %v3536_v57 = vadd.f32 %v3535_v32, %v8905_v14  ;;  %v3537_v7 = vpop.f32.mrb[163].mxu1  ;;  %v8918_v43 = vadd.f32 %v3532_v28, %v8723_v38 }
 0xa99   : > { %v8914_v58 = vadd.f32 %v3534_v8, %v8719_v19  ;;  %v3538_v35 = vadd.f32 %v3537_v7, %v8908_v60 }
 0xa9a   : > { %v8921_v1 = vadd.f32 %v3536_v57, %v8726_v34  ;;  %v3642_v19 = vmax.f32 %v8918_v43, 0.0 }
 0xa9b   : > { %v8924_v30 = vadd.f32 %v3538_v35, %v8729_v6  ;;  %v3643_v29 = vmax.f32 %v8914_v58, 0.0 }
 0xa9c   : > { %v3644_v21 = vmax.f32 %v8921_v1, 0.0 }
 0xa9d   : > { %v3645_v23 = vmax.f32 %v8924_v30, 0.0  ;;  %v3541_v17 = vpop.f32.mrb[164].mxu1 }
 0xa9e   : > { %v3542_v0 = vadd.f32 %v3541_v17, %v8905_v14  ;;  %v3543_v41 = vpop.f32.mrb[165].mxu1  ;;  %v3674_v27 = vpack.c.bf16 %v3644_v21, %v3642_v19 }
 0xa9f   : > { %v3544_v38 = vadd.f32 %v3543_v41, %v8908_v60  ;;  %v3545_v44 = vpop.f32.mrb[166].mxu1  ;;  %v3675_v34 = vpack.c.bf16 %v3645_v23, %v3643_v29 }
 0xaa0   : > { %v3546_v6 = vadd.f32 %v3545_v44, %v8905_v14  ;;  %v3547_v10 = vpop.f32.mrb[167].mxu1  ;;  %v8938_v59 = vadd.f32 %v3542_v0, %v8743_v26 }
 0xaa1   : > { %v8934_v4 = vadd.f32 %v3544_v38, %v8739_v51  ;;  %v3548_v45 = vadd.f32 %v3547_v10, %v8908_v60  ;;  %3859 = vmatprep.mubr.bf16.mxu0 %v3675_v34 }
 0xaa2   : > { %v8941_v50 = vadd.f32 %v3546_v6, %v8746_v54  ;;  %3860 = vmatmul.mubr.bf16.vlgmr.msra.gmra.mrb[160].mxu0 %v3674_v27  ;;  %v3646_v49 = vmax.f32 %v8938_v59, 0.0 }
 0xaa3   : > { %v8944_v36 = vadd.f32 %v3548_v45, %v8749_v53  ;;  %v3647_v56 = vmax.f32 %v8934_v4, 0.0 }
 0xaa4   : > { %v3648_v24 = vmax.f32 %v8941_v50, 0.0 }
 0xaa5   : > { %v3649_v51 = vmax.f32 %v8944_v36, 0.0  ;;  %v3551_v28 = vpop.f32.mrb[168].mxu1 }
 0xaa6   : > { %v3552_v8 = vadd.f32 %v3551_v28, %v8905_v14  ;;  %v3553_v26 = vpop.f32.mrb[169].mxu1  ;;  %v3676_v35 = vpack.c.bf16 %v3648_v24, %v3646_v49 }
 0xaa7   : > { %v3554_v32 = vadd.f32 %v3553_v26, %v8908_v60  ;;  %v3555_v54 = vpop.f32.mrb[170].mxu1  ;;  %v3677_v57 = vpack.c.bf16 %v3649_v51, %v3647_v56 }
 0xaa8   : > { %v3556_v7 = vadd.f32 %v3555_v54, %v8905_v14  ;;  %v3557_v53 = vpop.f32.mrb[171].mxu1  ;;  %v8958_v23 = vadd.f32 %v3552_v8, %v8763_v61 }
 0xaa9   : > { %v8954_v21 = vadd.f32 %v3554_v32, %v8759_v37  ;;  %v3558_v29 = vadd.f32 %v3557_v53, %v8908_v60  ;;  %3867 = vmatprep.mubr.bf16.mxu0 %v3677_v57 }
 0xaaa   : > { %v8961_v17 = vadd.f32 %v3556_v7, %v8766_v55  ;;  %3868 = vmatmul.mubr.bf16.gmra.mrb[164].mxu0 %v3676_v35  ;;  %v3650_v44 = vmax.f32 %v8958_v23, 0.0 }
 0xaab   : > { %v8964_v19 = vadd.f32 %v3558_v29, %v8769_v40  ;;  %v3651_v41 = vmax.f32 %v8954_v21, 0.0 }
 0xaac   : > { %v3652_v0 = vmax.f32 %v8961_v17, 0.0 }
 0xaad   : > { %v3653_v37 = vmax.f32 %v8964_v19, 0.0  ;;  %v3561_v38 = vpop.f32.mrb[172].mxu1 }
 0xaae   : > { %v3562_v34 = vadd.f32 %v3561_v38, %v8905_v14  ;;  %v3563_v61 = vpop.f32.mrb[173].mxu1  ;;  %v3678_v45 = vpack.c.bf16 %v3652_v0, %v3650_v44 }
 0xaaf   : > { %v3564_v27 = vadd.f32 %v3563_v61, %v8908_v60  ;;  %v3565_v55 = vpop.f32.mrb[174].mxu1  ;;  %v3679_v6 = vpack.c.bf16 %v3653_v37, %v3651_v41 }
 0xab0   : > { %v3566_v10 = vadd.f32 %v3565_v55, %v8905_v14  ;;  %v3567_v40 = vpop.f32.mrb[175].mxu1  ;;  %v8978_v51 = vadd.f32 %v3562_v34, %v8783_v16 }
 0xab1   : > { %v8974_v24 = vadd.f32 %v3564_v27, %v8779_v42  ;;  %v3568_v56 = vadd.f32 %v3567_v40, %v8908_v60  ;;  %3875 = vmatprep.mubr.bf16.mxu0 %v3679_v6 }
 0xab2   : > { %v8981_v28 = vadd.f32 %v3566_v10, %v8786_v22  ;;  %3876 = vmatmul.mubr.bf16.gmra.mrb[168].mxu0 %v3678_v45  ;;  %v3654_v54 = vmax.f32 %v8978_v51, 0.0 }
 0xab3   : > { %v8984_v49 = vadd.f32 %v3568_v56, %v8789_v11  ;;  %v3655_v26 = vmax.f32 %v8974_v24, 0.0 }
 0xab4   : > { %v3656_v8 = vmax.f32 %v8981_v28, 0.0 }
 0xab5   : > { %v3657_v42 = vmax.f32 %v8984_v49, 0.0  ;;  %v3571_v32 = vpop.f32.mrb[176].mxu1 }
 0xab6   : > { %v3572_v57 = vadd.f32 %v3571_v32, %v8905_v14  ;;  %v3573_v16 = vpop.f32.mrb[177].mxu1  ;;  %v3680_v29 = vpack.c.bf16 %v3656_v8, %v3654_v54 }
 0xab7   : > { %v3574_v7 = vadd.f32 %v3573_v16, %v8908_v60  ;;  %v3575_v22 = vpop.f32.mrb[178].mxu1  ;;  %v3681_v53 = vpack.c.bf16 %v3657_v42, %v3655_v26 }
 0xab8   : > { %v3576_v35 = vadd.f32 %v3575_v22, %v8905_v14  ;;  %v3577_v11 = vpop.f32.mrb[179].mxu1  ;;  %v8998_v37 = vadd.f32 %v3572_v57, %v8803_v46 }
 0xab9   : > { %v8994_v0 = vadd.f32 %v3574_v7, %v8799_v33  ;;  %v3578_v41 = vadd.f32 %v3577_v11, %v8908_v60  ;;  %3883 = vmatprep.mubr.bf16.mxu0 %v3681_v53 }
 0xaba   : > { %v9001_v38 = vadd.f32 %v3576_v35, %v8806_v47  ;;  %3884 = vmatmul.mubr.bf16.gmra.mrb[172].mxu0 %v3680_v29  ;;  %v3658_v55 = vmax.f32 %v8998_v37, 0.0 }
 0xabb   : > { %v9004_v44 = vadd.f32 %v3578_v41, %v8809_v25  ;;  %v3659_v61 = vmax.f32 %v8994_v0, 0.0 }
 0xabc   : > { %v3660_v34 = vmax.f32 %v9001_v38, 0.0 }
 0xabd   : > { %v3661_v33 = vmax.f32 %v9004_v44, 0.0  ;;  %v3581_v27 = vpop.f32.mrb[180].mxu1 }
 0xabe   : > { %v3582_v6 = vadd.f32 %v3581_v27, %v8905_v14  ;;  %v3583_v46 = vpop.f32.mrb[181].mxu1  ;;  %v3682_v56 = vpack.c.bf16 %v3660_v34, %v3658_v55 }
 0xabf   : > { %v3584_v10 = vadd.f32 %v3583_v46, %v8908_v60  ;;  %v3585_v47 = vpop.f32.mrb[182].mxu1  ;;  %v3683_v40 = vpack.c.bf16 %v3661_v33, %v3659_v61 }
 0xac0   : > { %v3586_v45 = vadd.f32 %v3585_v47, %v8905_v14  ;;  %v3587_v25 = vpop.f32.mrb[183].mxu1  ;;  %v9018_v42 = vadd.f32 %v3582_v6, %v8823_v63 }
 0xac1   : > { %v9014_v8 = vadd.f32 %v3584_v10, %v8819_v20  ;;  %v3588_v26 = vadd.f32 %v3587_v25, %v8908_v60  ;;  %3891 = vmatprep.mubr.bf16.mxu0 %v3683_v40 }
 0xac2   : > { %v9021_v32 = vadd.f32 %v3586_v45, %v8826_v18  ;;  %3892 = vmatmul.mubr.bf16.gmra.mrb[176].mxu0 %v3682_v56  ;;  %v3662_v22 = vmax.f32 %v9018_v42, 0.0 }
 0xac3   : > { %v9024_v54 = vadd.f32 %v3588_v26, %v8829_v31  ;;  %v3663_v16 = vmax.f32 %v9014_v8, 0.0 }
 0xac4   : > { %v3664_v57 = vmax.f32 %v9021_v32, 0.0 }
 0xac5   : > { %v3665_v20 = vmax.f32 %v9024_v54, 0.0  ;;  %v3591_v7 = vpop.f32.mrb[184].mxu1 }
 0xac6   : > { %v3592_v53 = vadd.f32 %v3591_v7, %v8905_v14  ;;  %v3593_v63 = vpop.f32.mrb[185].mxu1  ;;  %v3684_v41 = vpack.c.bf16 %v3664_v57, %v3662_v22 }
 0xac7   : > { %v3594_v35 = vadd.f32 %v3593_v63, %v8908_v60  ;;  %v3595_v18 = vpop.f32.mrb[186].mxu1  ;;  %v3685_v11 = vpack.c.bf16 %v3665_v20, %v3663_v16 }
 0xac8   : > { %v3596_v29 = vadd.f32 %v3595_v18, %v8905_v14  ;;  %v3597_v31 = vpop.f32.mrb[187].mxu1  ;;  %v9038_v33 = vadd.f32 %v3592_v53, %v8843_v15  ;;  %v7230_v18 = vld [vmem:[#allocation10 + $0x2f0] ss:$8 sps:$4 sm:$0xff]  }
 0xac9   : > { %v9034_v34 = vadd.f32 %v3594_v35, %v8839_v52  ;;  %v3598_v61 = vadd.f32 %v3597_v31, %v8908_v60  ;;  %3899 = vmatprep.mubr.bf16.mxu0 %v3685_v11  ;;  %v7234_v11 = vld [vmem:[#allocation7 + $0x300] sm:$0xff]   ;;  %v7237_v31 = vld [vmem:[#allocation7 + $0x350] sm:$0xff]  }
 0xaca   : > { %v9041_v27 = vadd.f32 %v3596_v29, %v8846_v9  ;;  %3900 = vmatmul.mubr.bf16.gmra.mrb[180].mxu0 %v3684_v41  ;;  %v3666_v47 = vmax.f32 %v9038_v33, 0.0  ;;  %v7236_v29 = vld [vmem:[#allocation7 + $0x308] sm:$0xff]   ;;  %v7238_v41 = vld [vmem:[#allocation7 + $0x310] sm:$0xff]  }
 0xacb   : > { %v9044_v55 = vadd.f32 %v3598_v61, %v8849_v62  ;;  %v3667_v46 = vmax.f32 %v9034_v34, 0.0  ;;  %v7239_v61 = vld [vmem:[#allocation7 + $0x358] sm:$0xff]  }
 0xacc   : > { %v3668_v6 = vmax.f32 %v9041_v27, 0.0 }
 0xacd   : > { %v3669_v52 = vmax.f32 %v9044_v55, 0.0  ;;  %v3601_v10 = vpop.f32.mrb[188].mxu1 }
 0xace   : > { %v3602_v40 = vadd.f32 %v3601_v10, %v8905_v14  ;;  %v3603_v15 = vpop.f32.mrb[189].mxu1  ;;  %v3686_v26 = vpack.c.bf16 %v3668_v6, %v3666_v47  ;;  %v7240_v6 = vld [vmem:[#allocation7 + $0x318] sm:$0xff]   ;;  %v7243_v10 = vld [vmem:[#allocation7 + $0x368] sm:$0xff]  }
 0xacf   : > { %v3604_v45 = vadd.f32 %v3603_v15, %v8908_v60  ;;  %v3605_v9 = vpop.f32.mrb[190].mxu1  ;;  %v3687_v25 = vpack.c.bf16 %v3669_v52, %v3667_v46  ;;  %v7241_v46 = vld [vmem:[#allocation7 + $0x360] sm:$0xff]   ;;  %v7244_v47 = vld [vmem:[#allocation7 + $0x328] sm:$0xff]   ;;  %v7246_v15 = vld [vmem:[#allocation7 + $0x330] sm:$0xff]  }
 0xad0   : > { %v3606_v56 = vadd.f32 %v3605_v9, %v8905_v14  ;;  %v3607_v62 = vpop.f32.mrb[191].mxu1  ;;  %v9058_v20 = vadd.f32 %v3602_v40, %v8863_v12  ;;  %v7232_v12 = vld [vmem:[#allocation10 + $0x2f4] ss:$8 sps:$4 sm:$0xff]   ;;  %v7245_v40 = vld [vmem:[#allocation7 + $0x370] sm:$0xff]  }
 0xad1   : > { %v9054_v57 = vadd.f32 %v3604_v45, %v8859_v39  ;;  %v3608_v16 = vadd.f32 %v3607_v62, %v8908_v60  ;;  %3907 = vmatprep.mubr.bf16.mxu0 %v3687_v25  ;;  %4072 = vmatprep.subr.bf16.mxu1 %v7232_v12  ;;  %v7242_v52 = vld [vmem:[#allocation7 + $0x320] sm:$0xff]  }
 0xad2   : > { %v9061_v7 = vadd.f32 %v3606_v56, %v8866_v2  ;;  %3908 = vmatmul.mubr.bf16.gmra.mrb[184].mxu0 %v3686_v26  ;;  %v3670_v63 = vmax.f32 %v9058_v20, 0.0  ;;  %4073 = vmatpush1.bf16.msra.mxu1 %v7230_v18  ;;  %v7233_v2 = vld [vmem:[#allocation7 + $0x340] sm:$0xff]  }
 0xad3   : > { %v9064_v22 = vadd.f32 %v3608_v16, %v8869_v13  ;;  %v3671_v53 = vmax.f32 %v9054_v57, 0.0  ;;  %v7235_v13 = vld [vmem:[#allocation7 + $0x348] sm:$0xff]   ;;  %6655 = vmatprep.subr.bf16.mxu0 %v7233_v2  ;;  %v9070_v9 = vld [vmem:[#allocation8 + $0x5] ss:$0 sm:$0xff] }
 0xad4   : > { %v3672_v14 = vmax.f32 %v9061_v7, 0.0  ;;  %6656 = vmatpush3.bf16.msra.mxu0 %v7234_v11 }
 0xad5   : > { %v3673_v39 = vmax.f32 %v9064_v22, 0.0  ;;  %6657 = vmatprep.subr.bf16.mxu0 %v7235_v13 }
 0xad6   : > { %v3688_v35 = vpack.c.bf16 %v3672_v14, %v3670_v63 }
 0xad7   : > { %v3689_v60 = vpack.c.bf16 %v3673_v39, %v3671_v53 }
 0xad8   : > { %6658 = vmatpush3.bf16.msra.mxu0 %v7236_v29 }
 0xad9   : > { %3915 = vmatprep.mubr.bf16.mxu0 %v3689_v60  ;;  %6659 = vmatprep.subr.bf16.mxu0 %v7237_v31 }
 0xada   : > { %3916 = vmatmul.mubr.bf16.gmra.mrb[188].mxu0 %v3688_v35 }
 0xadc   : > { %6660 = vmatpush3.bf16.msra.mxu0 %v7238_v41 }
 0xadd   : > { %6661 = vmatprep.subr.bf16.mxu0 %v7239_v61 }
 0xae0   : > { %6662 = vmatpush3.bf16.msra.mxu0 %v7240_v6 }
 0xae1   : > { %6663 = vmatprep.subr.bf16.mxu0 %v7241_v46 }
 0xae4   : > { %6664 = vmatpush3.bf16.msra.mxu0 %v7242_v52 }
 0xae5   : > { %6665 = vmatprep.subr.bf16.mxu0 %v7243_v10 }
 0xae8   : > { %6666 = vmatpush3.bf16.msra.mxu0 %v7244_v47 }
 0xae9   : > { %6667 = vmatprep.subr.bf16.mxu0 %v7245_v40 }
 0xaec   : > { %6668 = vmatpush3.bf16.msra.mxu0 %v7246_v15 }
 0xb75   : > { %v6607_v45 = vpop.f32.mrb[160].mxu0 }
 0xb76   : > { %v6608_v25 = vpop.f32.mrb[161].mxu0 }
 0xb77   : > { %v6609_v56 = vadd.f32 %v6608_v25, %v6607_v45  ;;  %v6610_v62 = vpop.f32.mrb[162].mxu0 }
 0xb78   : > { %v6611_v26 = vpop.f32.mrb[163].mxu0 }
 0xb79   : > { %v3862_v16 = vadd.f32 %v6609_v56, %v9070_v9  ;;  %v6612_v14 = vadd.f32 %v6611_v26, %v6610_v62 }
 0xb7b   : > { %v3865_v53 = vadd.f32 %v6612_v14, %v9070_v9  ;;  %v3924_v39 = vmax.f32 %v3862_v16, 0.0 }
 0xb7d   : > { %v3925_v63 = vmax.f32 %v3865_v53, 0.0  ;;  %v6613_v60 = vpop.f32.mrb[164].mxu0 }
 0xb7e   : > { %v6614_v35 = vpop.f32.mrb[165].mxu0 }
 0xb7f   : > { %v3940_v12 = vpack.c.bf16 %v3925_v63, %v3924_v39  ;;  %v6615_v18 = vadd.f32 %v6614_v35, %v6613_v60  ;;  %v6616_v2 = vpop.f32.mrb[166].mxu0 }
 0xb80   : > { %v6617_v11 = vpop.f32.mrb[167].mxu0 }
 0xb81   : > { %v3870_v13 = vadd.f32 %v6615_v18, %v9070_v9  ;;  %v6618_v29 = vadd.f32 %v6617_v11, %v6616_v2  ;;  %4091 = vmatmul.mubr.bf16.vlgmr.msra.gmra.mrb[192].mxu1 %v3940_v12 }
 0xb82   : > { %4100 = vmatprep.mubr.bf16.mxu1 %v9802_v48 }
 0xb83   : > { %v3873_v31 = vadd.f32 %v6618_v29, %v9070_v9  ;;  %v3926_v41 = vmax.f32 %v3870_v13, 0.0 }
 0xb85   : > { %v3927_v61 = vmax.f32 %v3873_v31, 0.0  ;;  %v6619_v6 = vpop.f32.mrb[168].mxu0 }
 0xb86   : > { %v6620_v46 = vpop.f32.mrb[169].mxu0 }
 0xb87   : > { %v6621_v52 = vadd.f32 %v6620_v46, %v6619_v6  ;;  %v6622_v10 = vpop.f32.mrb[170].mxu0  ;;  %v3941_v47 = vpack.c.bf16 %v3927_v61, %v3926_v41 }
 0xb88   : > { %v6623_v40 = vpop.f32.mrb[171].mxu0 }
 0xb89   : > { %v3878_v15 = vadd.f32 %v6621_v52, %v9070_v9  ;;  %v6624_v45 = vadd.f32 %v6623_v40, %v6622_v10  ;;  %4101 = vmatmul.mubr.bf16.gmra.mrb[196].mxu1 %v3941_v47 }
 0xb8a   : > { %4110 = vmatprep.mubr.bf16.mxu1 %v9802_v48 }
 0xb8b   : > { %v3881_v25 = vadd.f32 %v6624_v45, %v9070_v9  ;;  %v3928_v56 = vmax.f32 %v3878_v15, 0.0 }
 0xb8d   : > { %v3929_v62 = vmax.f32 %v3881_v25, 0.0  ;;  %v6625_v26 = vpop.f32.mrb[172].mxu0 }
 0xb8e   : > { %v6626_v16 = vpop.f32.mrb[173].mxu0 }
 0xb8f   : > { %v6627_v14 = vadd.f32 %v6626_v16, %v6625_v26  ;;  %v6628_v53 = vpop.f32.mrb[174].mxu0  ;;  %v3942_v39 = vpack.c.bf16 %v3929_v62, %v3928_v56 }
 0xb90   : > { %v6629_v63 = vpop.f32.mrb[175].mxu0 }
 0xb91   : > { %v3886_v60 = vadd.f32 %v6627_v14, %v9070_v9  ;;  %v6630_v35 = vadd.f32 %v6629_v63, %v6628_v53  ;;  %4111 = vmatmul.mubr.bf16.gmra.mrb[200].mxu1 %v3942_v39 }
 0xb92   : > { %4120 = vmatprep.mubr.bf16.mxu1 %v9802_v48 }
 0xb93   : > { %v3889_v12 = vadd.f32 %v6630_v35, %v9070_v9  ;;  %v3930_v18 = vmax.f32 %v3886_v60, 0.0 }
 0xb95   : > { %v3931_v2 = vmax.f32 %v3889_v12, 0.0  ;;  %v6631_v11 = vpop.f32.mrb[176].mxu0 }
 0xb96   : > { %v6632_v13 = vpop.f32.mrb[177].mxu0 }
 0xb97   : > { %v6633_v29 = vadd.f32 %v6632_v13, %v6631_v11  ;;  %v6634_v31 = vpop.f32.mrb[178].mxu0  ;;  %v3943_v41 = vpack.c.bf16 %v3931_v2, %v3930_v18 }
 0xb98   : > { %v6635_v61 = vpop.f32.mrb[179].mxu0 }
 0xb99   : > { %v3894_v6 = vadd.f32 %v6633_v29, %v9070_v9  ;;  %v6636_v46 = vadd.f32 %v6635_v61, %v6634_v31  ;;  %4121 = vmatmul.mubr.bf16.gmra.mrb[204].mxu1 %v3943_v41 }
 0xb9a   : > { %4130 = vmatprep.mubr.bf16.mxu1 %v9802_v48 }
 0xb9b   : > { %v3897_v52 = vadd.f32 %v6636_v46, %v9070_v9  ;;  %v3932_v10 = vmax.f32 %v3894_v6, 0.0 }
 0xb9d   : > { %v3933_v47 = vmax.f32 %v3897_v52, 0.0  ;;  %v6637_v40 = vpop.f32.mrb[180].mxu0 }
 0xb9e   : > { %v6638_v15 = vpop.f32.mrb[181].mxu0 }
 0xb9f   : > { %v6639_v45 = vadd.f32 %v6638_v15, %v6637_v40  ;;  %v6640_v25 = vpop.f32.mrb[182].mxu0  ;;  %v3944_v56 = vpack.c.bf16 %v3933_v47, %v3932_v10 }
 0xba0   : > { %v6641_v62 = vpop.f32.mrb[183].mxu0 }
 0xba1   : > { %v3902_v26 = vadd.f32 %v6639_v45, %v9070_v9  ;;  %v6642_v16 = vadd.f32 %v6641_v62, %v6640_v25  ;;  %4131 = vmatmul.mubr.bf16.gmra.mrb[208].mxu1 %v3944_v56 }
 0xba2   : > { %4140 = vmatprep.mubr.bf16.mxu1 %v9802_v48 }
 0xba3   : > { %v3905_v14 = vadd.f32 %v6642_v16, %v9070_v9  ;;  %v3934_v53 = vmax.f32 %v3902_v26, 0.0  ;;  %v7247_v26 = vld [vmem:[#allocation7 + $0x378] sm:$0xff]  }
 0xba4   : > { %v7248_v16 = vld [vmem:[#allocation7 + $0x338] sm:$0xff]   ;;  %6669 = vmatprep.subr.bf16.mxu0 %v7247_v26 }
 0xba5   : > { %v3935_v39 = vmax.f32 %v3905_v14, 0.0  ;;  %v6643_v63 = vpop.f32.mrb[184].mxu0  ;;  %6670 = vmatpush3.bf16.msra.mxu0 %v7248_v16  ;;  %v7249_v14 = vld [vmem:[#allocation10 + $0x300] ss:$8 sps:$4 sm:$0xff]  }
 0xba6   : > { %v6644_v60 = vpop.f32.mrb[185].mxu0 }
 0xba7   : > { %v6645_v35 = vadd.f32 %v6644_v60, %v6643_v63  ;;  %v6646_v12 = vpop.f32.mrb[186].mxu0  ;;  %v3945_v18 = vpack.c.bf16 %v3935_v39, %v3934_v53  ;;  %v7251_v53 = vld [vmem:[#allocation10 + $0x304] ss:$8 sps:$4 sm:$0xff]   ;;  %v7254_v39 = vld [vmem:[#allocation10 + $0x314] ss:$8 sps:$4 sm:$0xff]  }
 0xba8   : > { %v6647_v2 = vpop.f32.mrb[187].mxu0  ;;  %4619 = vmatprep.subr.bf16.mxu1 %v7251_v53  ;;  %v7252_v63 = vld [vmem:[#allocation10 + $0x310] ss:$8 sps:$4 sm:$0xff]   ;;  %v7257_v60 = vld [vmem:[#allocation10 + $0x324] ss:$8 sps:$4 sm:$0xff]  }
 0xba9   : > { %v3910_v11 = vadd.f32 %v6645_v35, %v9070_v9  ;;  %v6648_v13 = vadd.f32 %v6647_v2, %v6646_v12  ;;  %4141 = vmatmul.mubr.bf16.gmra.mrb[212].mxu1 %v3945_v18  ;;  %v7260_v35 = vld [vmem:[#allocation10 + $0x334] ss:$8 sps:$4 sm:$0xff]   ;;  %v7258_v12 = vld [vmem:[#allocation10 + $0x330] ss:$8 sps:$4 sm:$0xff]   ;;  %v7263_v18 = vld [vmem:[#allocation10 + $0x344] ss:$8 sps:$4 sm:$0xff]  }
 0xbaa   : > { %4150 = vmatprep.mubr.bf16.mxu1 %v9802_v48  ;;  %4620 = vmatpush1.bf16.msra.mxu1 %v7249_v14  ;;  %v7261_v2 = vld [vmem:[#allocation10 + $0x340] ss:$8 sps:$4 sm:$0xff]  }
 0xbab   : > { %v3913_v29 = vadd.f32 %v6648_v13, %v9070_v9  ;;  %v3936_v31 = vmax.f32 %v3910_v11, 0.0  ;;  %4621 = vmatprep.subr.bf16.mxu1 %v7254_v39  ;;  %v7266_v11 = vld [vmem:[#allocation10 + $0x354] ss:$8 sps:$4 sm:$0xff]   ;;  %v7264_v13 = vld [vmem:[#allocation10 + $0x350] ss:$8 sps:$4 sm:$0xff]  }
 0xbad   : > { %v3937_v41 = vmax.f32 %v3913_v29, 0.0  ;;  %v6649_v61 = vpop.f32.mrb[188].mxu0  ;;  %v7269_v29 = vld [vmem:[#allocation10 + $0x364] ss:$8 sps:$4 sm:$0xff]  }
 0xbae   : > { %v6650_v6 = vpop.f32.mrb[189].mxu0  ;;  %4622 = vmatpush1.bf16.msra.mxu1 %v7252_v63 }
 0xbaf   : > { %v6651_v46 = vadd.f32 %v6650_v6, %v6649_v61  ;;  %v6652_v52 = vpop.f32.mrb[190].mxu0  ;;  %v3946_v10 = vpack.c.bf16 %v3937_v41, %v3936_v31  ;;  %4623 = vmatprep.subr.bf16.mxu1 %v7257_v60  ;;  %v7267_v31 = vld [vmem:[#allocation10 + $0x360] ss:$8 sps:$4 sm:$0xff]  }
 0xbb0   : > { %v6653_v47 = vpop.f32.mrb[191].mxu0  ;;  %v6144_v41 = vld [vmem:[%s9790_s6 + $0xa] sm:$0x3] }
 0xbb1   : > { %v3918_v40 = vadd.f32 %v6651_v46, %v9070_v9  ;;  %v6654_v15 = vadd.f32 %v6653_v47, %v6652_v52  ;;  %4151 = vmatmul.mubr.bf16.gmra.mrb[216].mxu1 %v3946_v10  ;;  %v9100_v61 = vrot.slane %v6144_v41, %v7958_v5  ;;  %v9103_v6 = vrot.slane %v6144_v41, %v7953_v3 }
 0xbb2   : > { %4160 = vmatprep.mubr.bf16.mxu1 %v9802_v48 }
 0xbb3   : > { %v3921_v45 = vadd.f32 %v6654_v15, %v9070_v9  ;;  %v3938_v25 = vmax.f32 %v3918_v40, 0.0  ;;  %v7255_v9 = vld [vmem:[#allocation10 + $0x320] ss:$8 sps:$4 sm:$0xff]  }
 0xbb4   : > { %4624 = vmatpush1.bf16.msra.mxu1 %v7255_v9 }
 0xbb5   : > { %v3939_v56 = vmax.f32 %v3921_v45, 0.0  ;;  %4625 = vmatprep.subr.bf16.mxu1 %v7260_v35 }
 0xbb7   : > { %v3947_v62 = vpack.c.bf16 %v3939_v56, %v3938_v25 }
 0xbb8   : > { %4626 = vmatpush1.bf16.msra.mxu1 %v7258_v12 }
 0xbb9   : > { %4161 = vmatmul.mubr.bf16.gmra.mrb[220].mxu1 %v3947_v62  ;;  %4627 = vmatprep.subr.bf16.mxu1 %v7263_v18 }
 0xbba   : > { %4651 = vmatprep.mubr.bf16.mxu1 %v9802_v48 }
 0xbbc   : > { %4628 = vmatpush1.bf16.msra.mxu1 %v7261_v2 }
 0xbbd   : > { %4629 = vmatprep.subr.bf16.mxu1 %v7266_v11 }
 0xbc0   : > { %4630 = vmatpush1.bf16.msra.mxu1 %v7264_v13 }
 0xbc1   : > { %4631 = vmatprep.subr.bf16.mxu1 %v7269_v29 }
 0xbc4   : > { %4632 = vmatpush1.bf16.msra.mxu1 %v7267_v31 }
 0xc54   : > { %v4092_v46 = vpop.f32.mrb[192].mxu1 }
 0xc55   : > { %v4093_v52 = vadd.f32 %v4092_v46, %v9100_v61  ;;  %v4094_v10 = vpop.f32.mrb[193].mxu1 }
 0xc56   : > { %v4095_v47 = vadd.f32 %v4094_v10, %v9103_v6  ;;  %v4096_v40 = vpop.f32.mrb[194].mxu1 }
 0xc57   : > { %v4097_v15 = vadd.f32 %v4096_v40, %v9100_v61  ;;  %v4098_v45 = vpop.f32.mrb[195].mxu1  ;;  %v9113_v62 = vadd.f32 %v4093_v52, %v8918_v43 }
 0xc58   : > { %v9109_v25 = vadd.f32 %v4095_v47, %v8914_v58  ;;  %v4099_v56 = vadd.f32 %v4098_v45, %v9103_v6 }
 0xc59   : > { %v9116_v26 = vadd.f32 %v4097_v15, %v8921_v1  ;;  %v4203_v58 = vmax.f32 %v9113_v62, 0.0 }
 0xc5a   : > { %v9119_v16 = vadd.f32 %v4099_v56, %v8924_v30  ;;  %v4204_v53 = vmax.f32 %v9109_v25, 0.0 }
 0xc5b   : > { %v4205_v14 = vmax.f32 %v9116_v26, 0.0 }
 0xc5c   : > { %v4206_v39 = vmax.f32 %v9119_v16, 0.0  ;;  %v4102_v63 = vpop.f32.mrb[196].mxu1 }
 0xc5d   : > { %v4103_v60 = vadd.f32 %v4102_v63, %v9100_v61  ;;  %v4104_v9 = vpop.f32.mrb[197].mxu1  ;;  %v4235_v12 = vpack.c.bf16 %v4205_v14, %v4203_v58 }
 0xc5e   : > { %v4105_v43 = vadd.f32 %v4104_v9, %v9103_v6  ;;  %v4106_v35 = vpop.f32.mrb[198].mxu1  ;;  %v4236_v1 = vpack.c.bf16 %v4206_v39, %v4204_v53 }
 0xc5f   : > { %v4107_v30 = vadd.f32 %v4106_v35, %v9100_v61  ;;  %v4108_v18 = vpop.f32.mrb[199].mxu1  ;;  %v9133_v13 = vadd.f32 %v4103_v60, %v8938_v59 }
 0xc60   : > { %v9129_v2 = vadd.f32 %v4105_v43, %v8934_v4  ;;  %v4109_v11 = vadd.f32 %v4108_v18, %v9103_v6  ;;  %4420 = vmatprep.mubr.bf16.mxu0 %v4236_v1 }
 0xc61   : > { %v9136_v29 = vadd.f32 %v4107_v30, %v8941_v50  ;;  %4421 = vmatmul.mubr.bf16.vlgmr.msra.gmra.mrb[192].mxu0 %v4235_v12  ;;  %v4207_v10 = vmax.f32 %v9133_v13, 0.0 }
 0xc62   : > { %v9139_v31 = vadd.f32 %v4109_v11, %v8944_v36  ;;  %v4208_v46 = vmax.f32 %v9129_v2, 0.0 }
 0xc63   : > { %v4209_v41 = vmax.f32 %v9136_v29, 0.0 }
 0xc64   : > { %v4210_v4 = vmax.f32 %v9139_v31, 0.0  ;;  %v4112_v52 = vpop.f32.mrb[200].mxu1 }
 0xc65   : > { %v4113_v47 = vadd.f32 %v4112_v52, %v9100_v61  ;;  %v4114_v59 = vpop.f32.mrb[201].mxu1  ;;  %v4237_v56 = vpack.c.bf16 %v4209_v41, %v4207_v10 }
 0xc66   : > { %v4115_v40 = vadd.f32 %v4114_v59, %v9103_v6  ;;  %v4116_v50 = vpop.f32.mrb[202].mxu1  ;;  %v4238_v15 = vpack.c.bf16 %v4210_v4, %v4208_v46 }
 0xc67   : > { %v4117_v45 = vadd.f32 %v4116_v50, %v9100_v61  ;;  %v4118_v36 = vpop.f32.mrb[203].mxu1  ;;  %v9153_v39 = vadd.f32 %v4113_v47, %v8958_v23 }
 0xc68   : > { %v9149_v14 = vadd.f32 %v4115_v40, %v8954_v21  ;;  %v4119_v53 = vadd.f32 %v4118_v36, %v9103_v6  ;;  %4428 = vmatprep.mubr.bf16.mxu0 %v4238_v15 }
 0xc69   : > { %v9156_v63 = vadd.f32 %v4117_v45, %v8961_v17  ;;  %4429 = vmatmul.mubr.bf16.gmra.mrb[196].mxu0 %v4237_v56  ;;  %v4211_v35 = vmax.f32 %v9153_v39, 0.0 }
 0xc6a   : > { %v9159_v58 = vadd.f32 %v4119_v53, %v8964_v19  ;;  %v4212_v9 = vmax.f32 %v9149_v14, 0.0 }
 0xc6b   : > { %v4213_v60 = vmax.f32 %v9156_v63, 0.0 }
 0xc6c   : > { %v4214_v21 = vmax.f32 %v9159_v58, 0.0  ;;  %v4122_v43 = vpop.f32.mrb[204].mxu1 }
 0xc6d   : > { %v4123_v1 = vadd.f32 %v4122_v43, %v9100_v61  ;;  %v4124_v23 = vpop.f32.mrb[205].mxu1  ;;  %v4239_v11 = vpack.c.bf16 %v4213_v60, %v4211_v35 }
 0xc6e   : > { %v4125_v12 = vadd.f32 %v4124_v23, %v9103_v6  ;;  %v4126_v17 = vpop.f32.mrb[206].mxu1  ;;  %v4240_v30 = vpack.c.bf16 %v4214_v21, %v4212_v9 }
 0xc6f   : > { %v4127_v18 = vadd.f32 %v4126_v17, %v9100_v61  ;;  %v4128_v19 = vpop.f32.mrb[207].mxu1  ;;  %v9173_v4 = vadd.f32 %v4123_v1, %v8978_v51 }
 0xc70   : > { %v9169_v41 = vadd.f32 %v4125_v12, %v8974_v24  ;;  %v4129_v46 = vadd.f32 %v4128_v19, %v9103_v6  ;;  %4436 = vmatprep.mubr.bf16.mxu0 %v4240_v30 }
 0xc71   : > { %v9176_v52 = vadd.f32 %v4127_v18, %v8981_v28  ;;  %4437 = vmatmul.mubr.bf16.gmra.mrb[200].mxu0 %v4239_v11  ;;  %v4215_v50 = vmax.f32 %v9173_v4, 0.0 }
 0xc72   : > { %v9179_v10 = vadd.f32 %v4129_v46, %v8984_v49  ;;  %v4216_v59 = vmax.f32 %v9169_v41, 0.0 }
 0xc73   : > { %v4217_v47 = vmax.f32 %v9176_v52, 0.0 }
 0xc74   : > { %v4218_v24 = vmax.f32 %v9179_v10, 0.0  ;;  %v4132_v40 = vpop.f32.mrb[208].mxu1 }
 0xc75   : > { %v4133_v15 = vadd.f32 %v4132_v40, %v9100_v61  ;;  %v4134_v51 = vpop.f32.mrb[209].mxu1  ;;  %v4241_v53 = vpack.c.bf16 %v4217_v47, %v4215_v50 }
 0xc76   : > { %v4135_v45 = vadd.f32 %v4134_v51, %v9103_v6  ;;  %v4136_v28 = vpop.f32.mrb[210].mxu1  ;;  %v4242_v36 = vpack.c.bf16 %v4218_v24, %v4216_v59 }
 0xc77   : > { %v4137_v56 = vadd.f32 %v4136_v28, %v9100_v61  ;;  %v4138_v49 = vpop.f32.mrb[211].mxu1  ;;  %v9193_v21 = vadd.f32 %v4133_v15, %v8998_v37 }
 0xc78   : > { %v9189_v60 = vadd.f32 %v4135_v45, %v8994_v0  ;;  %v4139_v9 = vadd.f32 %v4138_v49, %v9103_v6  ;;  %4444 = vmatprep.mubr.bf16.mxu0 %v4242_v36 }
 0xc79   : > { %v9196_v43 = vadd.f32 %v4137_v56, %v9001_v38  ;;  %4445 = vmatmul.mubr.bf16.gmra.mrb[204].mxu0 %v4241_v53  ;;  %v4219_v17 = vmax.f32 %v9193_v21, 0.0 }
 0xc7a   : > { %v9199_v35 = vadd.f32 %v4139_v9, %v9004_v44  ;;  %v4220_v23 = vmax.f32 %v9189_v60, 0.0 }
 0xc7b   : > { %v4221_v1 = vmax.f32 %v9196_v43, 0.0 }
 0xc7c   : > { %v4222_v0 = vmax.f32 %v9199_v35, 0.0  ;;  %v4142_v12 = vpop.f32.mrb[212].mxu1 }
 0xc7d   : > { %v4143_v30 = vadd.f32 %v4142_v12, %v9100_v61  ;;  %v4144_v37 = vpop.f32.mrb[213].mxu1  ;;  %v4243_v46 = vpack.c.bf16 %v4221_v1, %v4219_v17 }
 0xc7e   : > { %v4145_v18 = vadd.f32 %v4144_v37, %v9103_v6  ;;  %v4146_v38 = vpop.f32.mrb[214].mxu1  ;;  %v4244_v19 = vpack.c.bf16 %v4222_v0, %v4220_v23 }
 0xc7f   : > { %v4147_v11 = vadd.f32 %v4146_v38, %v9100_v61  ;;  %v4148_v44 = vpop.f32.mrb[215].mxu1  ;;  %v9213_v24 = vadd.f32 %v4143_v30, %v9018_v42 }
 0xc80   : > { %v9209_v47 = vadd.f32 %v4145_v18, %v9014_v8  ;;  %v4149_v59 = vadd.f32 %v4148_v44, %v9103_v6  ;;  %4452 = vmatprep.mubr.bf16.mxu0 %v4244_v19 }
 0xc81   : > { %v9216_v40 = vadd.f32 %v4147_v11, %v9021_v32  ;;  %4453 = vmatmul.mubr.bf16.gmra.mrb[208].mxu0 %v4243_v46  ;;  %v4223_v28 = vmax.f32 %v9213_v24, 0.0 }
 0xc82   : > { %v9219_v50 = vadd.f32 %v4149_v59, %v9024_v54  ;;  %v4224_v51 = vmax.f32 %v9209_v47, 0.0 }
 0xc83   : > { %v4225_v15 = vmax.f32 %v9216_v40, 0.0 }
 0xc84   : > { %v4226_v8 = vmax.f32 %v9219_v50, 0.0  ;;  %v4152_v45 = vpop.f32.mrb[216].mxu1 }
 0xc85   : > { %v4153_v36 = vadd.f32 %v4152_v45, %v9100_v61  ;;  %v4154_v42 = vpop.f32.mrb[217].mxu1  ;;  %v4245_v9 = vpack.c.bf16 %v4225_v15, %v4223_v28 }
 0xc86   : > { %v4155_v56 = vadd.f32 %v4154_v42, %v9103_v6  ;;  %v4156_v32 = vpop.f32.mrb[218].mxu1  ;;  %v4246_v49 = vpack.c.bf16 %v4226_v8, %v4224_v51 }
 0xc87   : > { %v4157_v53 = vadd.f32 %v4156_v32, %v9100_v61  ;;  %v4158_v54 = vpop.f32.mrb[219].mxu1  ;;  %v9233_v0 = vadd.f32 %v4153_v36, %v9038_v33  ;;  %v7270_v32 = vld [vmem:[#allocation10 + $0x370] ss:$8 sps:$4 sm:$0xff]  }
 0xc88   : > { %v9229_v1 = vadd.f32 %v4155_v56, %v9034_v34  ;;  %v4159_v23 = vadd.f32 %v4158_v54, %v9103_v6  ;;  %4460 = vmatprep.mubr.bf16.mxu0 %v4246_v49  ;;  %v7274_v49 = vld [vmem:[#allocation7 + $0x380] sm:$0xff]   ;;  %v7277_v54 = vld [vmem:[#allocation7 + $0x3d0] sm:$0xff]  }
 0xc89   : > { %v9236_v12 = vadd.f32 %v4157_v53, %v9041_v27  ;;  %4461 = vmatmul.mubr.bf16.gmra.mrb[212].mxu0 %v4245_v9  ;;  %v4227_v38 = vmax.f32 %v9233_v0, 0.0  ;;  %v7276_v53 = vld [vmem:[#allocation7 + $0x388] sm:$0xff]   ;;  %v7278_v9 = vld [vmem:[#allocation7 + $0x390] sm:$0xff]  }
 0xc8a   : > { %v9239_v17 = vadd.f32 %v4159_v23, %v9044_v55  ;;  %v4228_v37 = vmax.f32 %v9229_v1, 0.0  ;;  %v7279_v23 = vld [vmem:[#allocation7 + $0x3d8] sm:$0xff]  }
 0xc8b   : > { %v4229_v30 = vmax.f32 %v9236_v12, 0.0 }
 0xc8c   : > { %v4230_v34 = vmax.f32 %v9239_v17, 0.0  ;;  %v4162_v18 = vpop.f32.mrb[220].mxu1 }
 0xc8d   : > { %v4163_v19 = vadd.f32 %v4162_v18, %v9100_v61  ;;  %v4164_v33 = vpop.f32.mrb[221].mxu1  ;;  %v4247_v59 = vpack.c.bf16 %v4229_v30, %v4227_v38  ;;  %v7280_v30 = vld [vmem:[#allocation7 + $0x398] sm:$0xff]   ;;  %v7283_v18 = vld [vmem:[#allocation7 + $0x3e8] sm:$0xff]  }
 0xc8e   : > { %v4165_v11 = vadd.f32 %v4164_v33, %v9103_v6  ;;  %v4166_v27 = vpop.f32.mrb[222].mxu1  ;;  %v4248_v44 = vpack.c.bf16 %v4230_v34, %v4228_v37  ;;  %v7281_v37 = vld [vmem:[#allocation7 + $0x3e0] sm:$0xff]   ;;  %v7284_v38 = vld [vmem:[#allocation7 + $0x3a8] sm:$0xff]   ;;  %v7286_v33 = vld [vmem:[#allocation7 + $0x3b0] sm:$0xff]  }
 0xc8f   : > { %v4167_v46 = vadd.f32 %v4166_v27, %v9100_v61  ;;  %v4168_v55 = vpop.f32.mrb[223].mxu1  ;;  %v9253_v8 = vadd.f32 %v4163_v19, %v9058_v20  ;;  %v7272_v20 = vld [vmem:[#allocation10 + $0x374] ss:$8 sps:$4 sm:$0xff]   ;;  %v7285_v19 = vld [vmem:[#allocation7 + $0x3f0] sm:$0xff]  }
 0xc90   : > { %v9249_v15 = vadd.f32 %v4165_v11, %v9054_v57  ;;  %v4169_v51 = vadd.f32 %v4168_v55, %v9103_v6  ;;  %4468 = vmatprep.mubr.bf16.mxu0 %v4248_v44  ;;  %4633 = vmatprep.subr.bf16.mxu1 %v7272_v20  ;;  %v7282_v34 = vld [vmem:[#allocation7 + $0x3a0] sm:$0xff]  }
 0xc91   : > { %v9256_v45 = vadd.f32 %v4167_v46, %v9061_v7  ;;  %4469 = vmatmul.mubr.bf16.gmra.mrb[216].mxu0 %v4247_v59  ;;  %v4231_v42 = vmax.f32 %v9253_v8, 0.0  ;;  %4634 = vmatpush1.bf16.msra.mxu1 %v7270_v32  ;;  %v7273_v7 = vld [vmem:[#allocation7 + $0x3c0] sm:$0xff]  }
 0xc92   : > { %v9259_v28 = vadd.f32 %v4169_v51, %v9064_v22  ;;  %v4232_v36 = vmax.f32 %v9249_v15, 0.0  ;;  %v7275_v22 = vld [vmem:[#allocation7 + $0x3c8] sm:$0xff]   ;;  %6719 = vmatprep.subr.bf16.mxu0 %v7273_v7  ;;  %v9265_v27 = vld [vmem:[#allocation8 + $0x6] ss:$0 sm:$0xff] }
 0xc93   : > { %v4233_v61 = vmax.f32 %v9256_v45, 0.0  ;;  %6720 = vmatpush3.bf16.msra.mxu0 %v7274_v49 }
 0xc94   : > { %v4234_v57 = vmax.f32 %v9259_v28, 0.0  ;;  %6721 = vmatprep.subr.bf16.mxu0 %v7275_v22 }
 0xc95   : > { %v4249_v56 = vpack.c.bf16 %v4233_v61, %v4231_v42 }
 0xc96   : > { %v4250_v6 = vpack.c.bf16 %v4234_v57, %v4232_v36 }
 0xc97   : > { %6722 = vmatpush3.bf16.msra.mxu0 %v7276_v53 }
 0xc98   : > { %4476 = vmatprep.mubr.bf16.mxu0 %v4250_v6  ;;  %6723 = vmatprep.subr.bf16.mxu0 %v7277_v54 }
 0xc99   : > { %4477 = vmatmul.mubr.bf16.gmra.mrb[220].mxu0 %v4249_v56 }
 0xc9b   : > { %6724 = vmatpush3.bf16.msra.mxu0 %v7278_v9 }
 0xc9c   : > { %6725 = vmatprep.subr.bf16.mxu0 %v7279_v23 }
 0xc9f   : > { %6726 = vmatpush3.bf16.msra.mxu0 %v7280_v30 }
 0xca0   : > { %6727 = vmatprep.subr.bf16.mxu0 %v7281_v37 }
 0xca3   : > { %6728 = vmatpush3.bf16.msra.mxu0 %v7282_v34 }
 0xca4   : > { %6729 = vmatprep.subr.bf16.mxu0 %v7283_v18 }
 0xca7   : > { %6730 = vmatpush3.bf16.msra.mxu0 %v7284_v38 }
 0xca8   : > { %6731 = vmatprep.subr.bf16.mxu0 %v7285_v19 }
 0xcab   : > { %6732 = vmatpush3.bf16.msra.mxu0 %v7286_v33 }
 0xd34   : > { %v6671_v11 = vpop.f32.mrb[192].mxu0 }
 0xd35   : > { %v6672_v44 = vpop.f32.mrb[193].mxu0 }
 0xd36   : > { %v6673_v46 = vadd.f32 %v6672_v44, %v6671_v11  ;;  %v6674_v55 = vpop.f32.mrb[194].mxu0 }
 0xd37   : > { %v6675_v59 = vpop.f32.mrb[195].mxu0 }
 0xd38   : > { %v4423_v51 = vadd.f32 %v6673_v46, %v9265_v27  ;;  %v6676_v61 = vadd.f32 %v6675_v59, %v6674_v55 }
 0xd3a   : > { %v4426_v36 = vadd.f32 %v6676_v61, %v9265_v27  ;;  %v4485_v57 = vmax.f32 %v4423_v51, 0.0 }
 0xd3c   : > { %v4486_v42 = vmax.f32 %v4426_v36, 0.0  ;;  %v6677_v6 = vpop.f32.mrb[196].mxu0 }
 0xd3d   : > { %v6678_v56 = vpop.f32.mrb[197].mxu0 }
 0xd3e   : > { %v4501_v20 = vpack.c.bf16 %v4486_v42, %v4485_v57  ;;  %v6679_v32 = vadd.f32 %v6678_v56, %v6677_v6  ;;  %v6680_v7 = vpop.f32.mrb[198].mxu0 }
 0xd3f   : > { %v6681_v49 = vpop.f32.mrb[199].mxu0 }
 0xd40   : > { %v4431_v22 = vadd.f32 %v6679_v32, %v9265_v27  ;;  %v6682_v53 = vadd.f32 %v6681_v49, %v6680_v7  ;;  %4652 = vmatmul.mubr.bf16.vlgmr.msra.gmra.mrb[224].mxu1 %v4501_v20 }
 0xd41   : > { %4661 = vmatprep.mubr.bf16.mxu1 %v9802_v48 }
 0xd42   : > { %v4434_v54 = vadd.f32 %v6682_v53, %v9265_v27  ;;  %v4487_v9 = vmax.f32 %v4431_v22, 0.0 }
 0xd44   : > { %v4488_v23 = vmax.f32 %v4434_v54, 0.0  ;;  %v6683_v30 = vpop.f32.mrb[200].mxu0 }
 0xd45   : > { %v6684_v37 = vpop.f32.mrb[201].mxu0 }
 0xd46   : > { %v6685_v34 = vadd.f32 %v6684_v37, %v6683_v30  ;;  %v6686_v18 = vpop.f32.mrb[202].mxu0  ;;  %v4502_v38 = vpack.c.bf16 %v4488_v23, %v4487_v9 }
 0xd47   : > { %v6687_v19 = vpop.f32.mrb[203].mxu0 }
 0xd48   : > { %v4439_v33 = vadd.f32 %v6685_v34, %v9265_v27  ;;  %v6688_v11 = vadd.f32 %v6687_v19, %v6686_v18  ;;  %4662 = vmatmul.mubr.bf16.gmra.mrb[228].mxu1 %v4502_v38 }
 0xd49   : > { %4671 = vmatprep.mubr.bf16.mxu1 %v9802_v48 }
 0xd4a   : > { %v4442_v44 = vadd.f32 %v6688_v11, %v9265_v27  ;;  %v4489_v46 = vmax.f32 %v4439_v33, 0.0 }
 0xd4c   : > { %v4490_v55 = vmax.f32 %v4442_v44, 0.0  ;;  %v6689_v59 = vpop.f32.mrb[204].mxu0 }
 0xd4d   : > { %v6690_v51 = vpop.f32.mrb[205].mxu0 }
 0xd4e   : > { %v6691_v61 = vadd.f32 %v6690_v51, %v6689_v59  ;;  %v6692_v36 = vpop.f32.mrb[206].mxu0  ;;  %v4503_v57 = vpack.c.bf16 %v4490_v55, %v4489_v46 }
 0xd4f   : > { %v6693_v42 = vpop.f32.mrb[207].mxu0 }
 0xd50   : > { %v4447_v6 = vadd.f32 %v6691_v61, %v9265_v27  ;;  %v6694_v56 = vadd.f32 %v6693_v42, %v6692_v36  ;;  %4672 = vmatmul.mubr.bf16.gmra.mrb[232].mxu1 %v4503_v57 }
 0xd51   : > { %4681 = vmatprep.mubr.bf16.mxu1 %v9802_v48 }
 0xd52   : > { %v4450_v20 = vadd.f32 %v6694_v56, %v9265_v27  ;;  %v4491_v32 = vmax.f32 %v4447_v6, 0.0 }
 0xd54   : > { %v4492_v7 = vmax.f32 %v4450_v20, 0.0  ;;  %v6695_v49 = vpop.f32.mrb[208].mxu0 }
 0xd55   : > { %v6696_v22 = vpop.f32.mrb[209].mxu0 }
 0xd56   : > { %v6697_v53 = vadd.f32 %v6696_v22, %v6695_v49  ;;  %v6698_v54 = vpop.f32.mrb[210].mxu0  ;;  %v4504_v9 = vpack.c.bf16 %v4492_v7, %v4491_v32 }
 0xd57   : > { %v6699_v23 = vpop.f32.mrb[211].mxu0 }
 0xd58   : > { %v4455_v30 = vadd.f32 %v6697_v53, %v9265_v27  ;;  %v6700_v37 = vadd.f32 %v6699_v23, %v6698_v54  ;;  %4682 = vmatmul.mubr.bf16.gmra.mrb[236].mxu1 %v4504_v9 }
 0xd59   : > { %4691 = vmatprep.mubr.bf16.mxu1 %v9802_v48 }
 0xd5a   : > { %v4458_v34 = vadd.f32 %v6700_v37, %v9265_v27  ;;  %v4493_v18 = vmax.f32 %v4455_v30, 0.0 }
 0xd5c   : > { %v4494_v38 = vmax.f32 %v4458_v34, 0.0  ;;  %v6701_v19 = vpop.f32.mrb[212].mxu0 }
 0xd5d   : > { %v6702_v33 = vpop.f32.mrb[213].mxu0 }
 0xd5e   : > { %v6703_v11 = vadd.f32 %v6702_v33, %v6701_v19  ;;  %v6704_v44 = vpop.f32.mrb[214].mxu0  ;;  %v4505_v46 = vpack.c.bf16 %v4494_v38, %v4493_v18 }
 0xd5f   : > { %v6705_v55 = vpop.f32.mrb[215].mxu0 }
 0xd60   : > { %v4463_v59 = vadd.f32 %v6703_v11, %v9265_v27  ;;  %v6706_v51 = vadd.f32 %v6705_v55, %v6704_v44  ;;  %4692 = vmatmul.mubr.bf16.gmra.mrb[240].mxu1 %v4505_v46 }
 0xd61   : > { %4701 = vmatprep.mubr.bf16.mxu1 %v9802_v48 }
 0xd62   : > { %v4466_v61 = vadd.f32 %v6706_v51, %v9265_v27  ;;  %v4495_v36 = vmax.f32 %v4463_v59, 0.0  ;;  %v7287_v59 = vld [vmem:[#allocation7 + $0x3f8] sm:$0xff]  }
 0xd63   : > { %v7288_v51 = vld [vmem:[#allocation7 + $0x3b8] sm:$0xff]   ;;  %6733 = vmatprep.subr.bf16.mxu0 %v7287_v59 }
 0xd64   : > { %v4496_v57 = vmax.f32 %v4466_v61, 0.0  ;;  %v6707_v42 = vpop.f32.mrb[216].mxu0  ;;  %6734 = vmatpush3.bf16.msra.mxu0 %v7288_v51  ;;  %v7289_v61 = vld [vmem:[#allocation10 + $0x380] ss:$8 sps:$4 sm:$0xff]  }
 0xd65   : > { %v6708_v6 = vpop.f32.mrb[217].mxu0 }
 0xd66   : > { %v6709_v56 = vadd.f32 %v6708_v6, %v6707_v42  ;;  %v6710_v20 = vpop.f32.mrb[218].mxu0  ;;  %v4506_v32 = vpack.c.bf16 %v4496_v57, %v4495_v36  ;;  %v7291_v36 = vld [vmem:[#allocation10 + $0x384] ss:$8 sps:$4 sm:$0xff]   ;;  %v7294_v57 = vld [vmem:[#allocation10 + $0x394] ss:$8 sps:$4 sm:$0xff]  }
 0xd67   : > { %v6711_v7 = vpop.f32.mrb[219].mxu0  ;;  %5180 = vmatprep.subr.bf16.mxu1 %v7291_v36  ;;  %v7292_v42 = vld [vmem:[#allocation10 + $0x390] ss:$8 sps:$4 sm:$0xff]   ;;  %v7297_v6 = vld [vmem:[#allocation10 + $0x3a4] ss:$8 sps:$4 sm:$0xff]  }
 0xd68   : > { %v4471_v49 = vadd.f32 %v6709_v56, %v9265_v27  ;;  %v6712_v22 = vadd.f32 %v6711_v7, %v6710_v20  ;;  %4702 = vmatmul.mubr.bf16.gmra.mrb[244].mxu1 %v4506_v32  ;;  %v7300_v56 = vld [vmem:[#allocation10 + $0x3b4] ss:$8 sps:$4 sm:$0xff]   ;;  %v7298_v20 = vld [vmem:[#allocation10 + $0x3b0] ss:$8 sps:$4 sm:$0xff]   ;;  %v7303_v32 = vld [vmem:[#allocation10 + $0x3c4] ss:$8 sps:$4 sm:$0xff]  }
 0xd69   : > { %4711 = vmatprep.mubr.bf16.mxu1 %v9802_v48  ;;  %5181 = vmatpush1.bf16.msra.mxu1 %v7289_v61  ;;  %v7301_v7 = vld [vmem:[#allocation10 + $0x3c0] ss:$8 sps:$4 sm:$0xff]  }
 0xd6a   : > { %v4474_v53 = vadd.f32 %v6712_v22, %v9265_v27  ;;  %v4497_v54 = vmax.f32 %v4471_v49, 0.0  ;;  %5182 = vmatprep.subr.bf16.mxu1 %v7294_v57  ;;  %v7306_v49 = vld [vmem:[#allocation10 + $0x3d4] ss:$8 sps:$4 sm:$0xff]   ;;  %v7304_v22 = vld [vmem:[#allocation10 + $0x3d0] ss:$8 sps:$4 sm:$0xff]  }
 0xd6c   : > { %v4498_v9 = vmax.f32 %v4474_v53, 0.0  ;;  %v6713_v23 = vpop.f32.mrb[220].mxu0  ;;  %v7309_v53 = vld [vmem:[#allocation10 + $0x3e4] ss:$8 sps:$4 sm:$0xff]  }
 0xd6d   : > { %v6714_v30 = vpop.f32.mrb[221].mxu0  ;;  %5183 = vmatpush1.bf16.msra.mxu1 %v7292_v42 }
 0xd6e   : > { %v6715_v37 = vadd.f32 %v6714_v30, %v6713_v23  ;;  %v6716_v34 = vpop.f32.mrb[222].mxu0  ;;  %v4507_v18 = vpack.c.bf16 %v4498_v9, %v4497_v54  ;;  %5184 = vmatprep.subr.bf16.mxu1 %v7297_v6  ;;  %v7307_v54 = vld [vmem:[#allocation10 + $0x3e0] ss:$8 sps:$4 sm:$0xff]   ;;  %v6178_v9 = vld [vmem:[%s9790_s6 + $0xc] sm:$0x3] }
 0xd6f   : > { %v6717_v38 = vpop.f32.mrb[223].mxu0  ;;  %v9295_v23 = vrot.slane %v6178_v9, %v7958_v5  ;;  %v9298_v30 = vrot.slane %v6178_v9, %v7953_v3 }
 0xd70   : > { %v4479_v19 = vadd.f32 %v6715_v37, %v9265_v27  ;;  %v6718_v33 = vadd.f32 %v6717_v38, %v6716_v34  ;;  %4712 = vmatmul.mubr.bf16.gmra.mrb[248].mxu1 %v4507_v18 }
 0xd71   : > { %4721 = vmatprep.mubr.bf16.mxu1 %v9802_v48 }
 0xd72   : > { %v4482_v11 = vadd.f32 %v6718_v33, %v9265_v27  ;;  %v4499_v44 = vmax.f32 %v4479_v19, 0.0  ;;  %v7295_v27 = vld [vmem:[#allocation10 + $0x3a0] ss:$8 sps:$4 sm:$0xff]  }
 0xd73   : > { %5185 = vmatpush1.bf16.msra.mxu1 %v7295_v27 }
 0xd74   : > { %v4500_v46 = vmax.f32 %v4482_v11, 0.0  ;;  %5186 = vmatprep.subr.bf16.mxu1 %v7300_v56 }
 0xd76   : > { %v4508_v55 = vpack.c.bf16 %v4500_v46, %v4499_v44 }
 0xd77   : > { %5187 = vmatpush1.bf16.msra.mxu1 %v7298_v20 }
 0xd78   : > { %4722 = vmatmul.mubr.bf16.gmra.mrb[252].mxu1 %v4508_v55  ;;  %5188 = vmatprep.subr.bf16.mxu1 %v7303_v32 }
 0xd79   : > { %5212 = vmatprep.mubr.bf16.mxu1 %v9802_v48 }
 0xd7b   : > { %5189 = vmatpush1.bf16.msra.mxu1 %v7301_v7 }
 0xd7c   : > { %5190 = vmatprep.subr.bf16.mxu1 %v7306_v49 }
 0xd7f   : > { %5191 = vmatpush1.bf16.msra.mxu1 %v7304_v22 }
 0xd80   : > { %5192 = vmatprep.subr.bf16.mxu1 %v7309_v53 }
 0xd83   : > { %5193 = vmatpush1.bf16.msra.mxu1 %v7307_v54 }
 0xe13   : > { %v4653_v37 = vpop.f32.mrb[224].mxu1 }
 0xe14   : > { %v4654_v34 = vadd.f32 %v4653_v37, %v9295_v23  ;;  %v4655_v18 = vpop.f32.mrb[225].mxu1 }
 0xe15   : > { %v4656_v38 = vadd.f32 %v4655_v18, %v9298_v30  ;;  %v4657_v19 = vpop.f32.mrb[226].mxu1 }
 0xe16   : > { %v4658_v33 = vadd.f32 %v4657_v19, %v9295_v23  ;;  %v4659_v11 = vpop.f32.mrb[227].mxu1  ;;  %v9308_v55 = vadd.f32 %v4654_v34, %v9113_v62 }
 0xe17   : > { %v9304_v44 = vadd.f32 %v4656_v38, %v9109_v25  ;;  %v4660_v46 = vadd.f32 %v4659_v11, %v9298_v30 }
 0xe18   : > { %v9311_v59 = vadd.f32 %v4658_v33, %v9116_v26  ;;  %v4764_v25 = vmax.f32 %v9308_v55, 0.0 }
 0xe19   : > { %v9314_v51 = vadd.f32 %v4660_v46, %v9119_v16  ;;  %v4765_v36 = vmax.f32 %v9304_v44, 0.0 }
 0xe1a   : > { %v4766_v61 = vmax.f32 %v9311_v59, 0.0 }
 0xe1b   : > { %v4767_v57 = vmax.f32 %v9314_v51, 0.0  ;;  %v4663_v42 = vpop.f32.mrb[228].mxu1 }
 0xe1c   : > { %v4664_v6 = vadd.f32 %v4663_v42, %v9295_v23  ;;  %v4665_v27 = vpop.f32.mrb[229].mxu1  ;;  %v4796_v20 = vpack.c.bf16 %v4766_v61, %v4764_v25 }
 0xe1d   : > { %v4666_v62 = vadd.f32 %v4665_v27, %v9298_v30  ;;  %v4667_v56 = vpop.f32.mrb[230].mxu1  ;;  %v4797_v26 = vpack.c.bf16 %v4767_v57, %v4765_v36 }
 0xe1e   : > { %v4668_v16 = vadd.f32 %v4667_v56, %v9295_v23  ;;  %v4669_v32 = vpop.f32.mrb[231].mxu1  ;;  %v9328_v22 = vadd.f32 %v4664_v6, %v9133_v13 }
 0xe1f   : > { %v9324_v7 = vadd.f32 %v4666_v62, %v9129_v2  ;;  %v4670_v49 = vadd.f32 %v4669_v32, %v9298_v30  ;;  %4981 = vmatprep.mubr.bf16.mxu0 %v4797_v26 }
 0xe20   : > { %v9331_v53 = vadd.f32 %v4668_v16, %v9136_v29  ;;  %4982 = vmatmul.mubr.bf16.vlgmr.msra.gmra.mrb[224].mxu0 %v4796_v20  ;;  %v4768_v18 = vmax.f32 %v9328_v22, 0.0 }
 0xe21   : > { %v9334_v54 = vadd.f32 %v4670_v49, %v9139_v31  ;;  %v4769_v37 = vmax.f32 %v9324_v7, 0.0 }
 0xe22   : > { %v4770_v9 = vmax.f32 %v9331_v53, 0.0 }
 0xe23   : > { %v4771_v2 = vmax.f32 %v9334_v54, 0.0  ;;  %v4673_v34 = vpop.f32.mrb[232].mxu1 }
 0xe24   : > { %v4674_v38 = vadd.f32 %v4673_v34, %v9295_v23  ;;  %v4675_v13 = vpop.f32.mrb[233].mxu1  ;;  %v4798_v46 = vpack.c.bf16 %v4770_v9, %v4768_v18 }
 0xe25   : > { %v4676_v19 = vadd.f32 %v4675_v13, %v9298_v30  ;;  %v4677_v29 = vpop.f32.mrb[234].mxu1  ;;  %v4799_v33 = vpack.c.bf16 %v4771_v2, %v4769_v37 }
 0xe26   : > { %v4678_v11 = vadd.f32 %v4677_v29, %v9295_v23  ;;  %v4679_v31 = vpop.f32.mrb[235].mxu1  ;;  %v9348_v57 = vadd.f32 %v4674_v38, %v9153_v39 }
 0xe27   : > { %v9344_v61 = vadd.f32 %v4676_v19, %v9149_v14  ;;  %v4680_v36 = vadd.f32 %v4679_v31, %v9298_v30  ;;  %4989 = vmatprep.mubr.bf16.mxu0 %v4799_v33 }
 0xe28   : > { %v9351_v42 = vadd.f32 %v4678_v11, %v9156_v63  ;;  %4990 = vmatmul.mubr.bf16.gmra.mrb[228].mxu0 %v4798_v46  ;;  %v4772_v56 = vmax.f32 %v9348_v57, 0.0 }
 0xe29   : > { %v9354_v25 = vadd.f32 %v4680_v36, %v9159_v58  ;;  %v4773_v27 = vmax.f32 %v9344_v61, 0.0 }
 0xe2a   : > { %v4774_v6 = vmax.f32 %v9351_v42, 0.0 }
 0xe2b   : > { %v4775_v14 = vmax.f32 %v9354_v25, 0.0  ;;  %v4683_v62 = vpop.f32.mrb[236].mxu1 }
 0xe2c   : > { %v4684_v26 = vadd.f32 %v4683_v62, %v9295_v23  ;;  %v4685_v39 = vpop.f32.mrb[237].mxu1  ;;  %v4800_v49 = vpack.c.bf16 %v4774_v6, %v4772_v56 }
 0xe2d   : > { %v4686_v20 = vadd.f32 %v4685_v39, %v9298_v30  ;;  %v4687_v63 = vpop.f32.mrb[238].mxu1  ;;  %v4801_v16 = vpack.c.bf16 %v4775_v14, %v4773_v27 }
 0xe2e   : > { %v4688_v32 = vadd.f32 %v4687_v63, %v9295_v23  ;;  %v4689_v58 = vpop.f32.mrb[239].mxu1  ;;  %v9368_v2 = vadd.f32 %v4684_v26, %v9173_v4 }
 0xe2f   : > { %v9364_v9 = vadd.f32 %v4686_v20, %v9169_v41  ;;  %v4690_v37 = vadd.f32 %v4689_v58, %v9298_v30  ;;  %4997 = vmatprep.mubr.bf16.mxu0 %v4801_v16 }
 0xe30   : > { %v9371_v34 = vadd.f32 %v4688_v32, %v9176_v52  ;;  %4998 = vmatmul.mubr.bf16.gmra.mrb[232].mxu0 %v4800_v49  ;;  %v4776_v29 = vmax.f32 %v9368_v2, 0.0 }
 0xe31   : > { %v9374_v18 = vadd.f32 %v4690_v37, %v9179_v10  ;;  %v4777_v13 = vmax.f32 %v9364_v9, 0.0 }
 0xe32   : > { %v4778_v38 = vmax.f32 %v9371_v34, 0.0 }
 0xe33   : > { %v4779_v41 = vmax.f32 %v9374_v18, 0.0  ;;  %v4693_v19 = vpop.f32.mrb[240].mxu1 }
 0xe34   : > { %v4694_v33 = vadd.f32 %v4693_v19, %v9295_v23  ;;  %v4695_v4 = vpop.f32.mrb[241].mxu1  ;;  %v4802_v36 = vpack.c.bf16 %v4778_v38, %v4776_v29 }
 0xe35   : > { %v4696_v11 = vadd.f32 %v4695_v4, %v9298_v30  ;;  %v4697_v52 = vpop.f32.mrb[242].mxu1  ;;  %v4803_v31 = vpack.c.bf16 %v4779_v41, %v4777_v13 }
 0xe36   : > { %v4698_v46 = vadd.f32 %v4697_v52, %v9295_v23  ;;  %v4699_v10 = vpop.f32.mrb[243].mxu1  ;;  %v9388_v14 = vadd.f32 %v4694_v33, %v9193_v21 }
 0xe37   : > { %v9384_v6 = vadd.f32 %v4696_v11, %v9189_v60  ;;  %v4700_v27 = vadd.f32 %v4699_v10, %v9298_v30  ;;  %5005 = vmatprep.mubr.bf16.mxu0 %v4803_v31 }
 0xe38   : > { %v9391_v62 = vadd.f32 %v4698_v46, %v9196_v43  ;;  %5006 = vmatmul.mubr.bf16.gmra.mrb[236].mxu0 %v4802_v36  ;;  %v4780_v63 = vmax.f32 %v9388_v14, 0.0 }
 0xe39   : > { %v9394_v56 = vadd.f32 %v4700_v27, %v9199_v35  ;;  %v4781_v39 = vmax.f32 %v9384_v6, 0.0 }
 0xe3a   : > { %9840 = vst [vmem:[#allocation19_spill] sm:$0xff] %v9391_v62  ;;  %v4782_v26 = vmax.f32 %v9391_v62, 0.0 }
 0xe3b   : > { %9841 = vst [vmem:[#allocation20_spill] sm:$0xff] %v9394_v56  ;;  %v4783_v60 = vmax.f32 %v9394_v56, 0.0  ;;  %v4703_v20 = vpop.f32.mrb[244].mxu1 }
 0xe3c   : > { %v4704_v16 = vadd.f32 %v4703_v20, %v9295_v23  ;;  %v4705_v21 = vpop.f32.mrb[245].mxu1  ;;  %v4804_v37 = vpack.c.bf16 %v4782_v26, %v4780_v63 }
 0xe3d   : > { %v4706_v32 = vadd.f32 %v4705_v21, %v9298_v30  ;;  %v4707_v43 = vpop.f32.mrb[246].mxu1  ;;  %v4805_v58 = vpack.c.bf16 %v4783_v60, %v4781_v39 }
 0xe3e   : > { %v4708_v49 = vadd.f32 %v4707_v43, %v9295_v23  ;;  %v4709_v35 = vpop.f32.mrb[247].mxu1  ;;  %v9408_v41 = vadd.f32 %v4704_v16, %v9213_v24 }
 0xe3f   : > { %v9404_v38 = vadd.f32 %v4706_v32, %v9209_v47  ;;  %v4710_v13 = vadd.f32 %v4709_v35, %v9298_v30  ;;  %5013 = vmatprep.mubr.bf16.mxu0 %v4805_v58 }
 0xe40   : > { %9843 = vst [vmem:[#allocation22_spill] sm:$0xff] %v9408_v41  ;;  %v9411_v19 = vadd.f32 %v4708_v49, %v9216_v40  ;;  %5014 = vmatmul.mubr.bf16.gmra.mrb[240].mxu0 %v4804_v37  ;;  %v4784_v52 = vmax.f32 %v9408_v41, 0.0 }
 0xe41   : > { %9842 = vst [vmem:[#allocation21_spill] sm:$0xff] %v9404_v38  ;;  %v9414_v29 = vadd.f32 %v4710_v13, %v9219_v50  ;;  %v4785_v4 = vmax.f32 %v9404_v38, 0.0 }
 0xe42   : > { %9844 = vst [vmem:[#allocation23_spill] sm:$0xff] %v9411_v19  ;;  %v4786_v33 = vmax.f32 %v9411_v19, 0.0 }
 0xe43   : > { %9845 = vst [vmem:[#allocation24_spill] sm:$0xff] %v9414_v29  ;;  %v4787_v47 = vmax.f32 %v9414_v29, 0.0  ;;  %v4713_v11 = vpop.f32.mrb[248].mxu1 }
 0xe44   : > { %v4714_v31 = vadd.f32 %v4713_v11, %v9295_v23  ;;  %v4715_v24 = vpop.f32.mrb[249].mxu1  ;;  %v4806_v27 = vpack.c.bf16 %v4786_v33, %v4784_v52 }
 0xe45   : > { %v4716_v46 = vadd.f32 %v4715_v24, %v9298_v30  ;;  %v4717_v40 = vpop.f32.mrb[250].mxu1  ;;  %v4807_v10 = vpack.c.bf16 %v4787_v47, %v4785_v4 }
 0xe46   : > { %v4718_v36 = vadd.f32 %v4717_v40, %v9295_v23  ;;  %v4719_v50 = vpop.f32.mrb[251].mxu1  ;;  %v9428_v60 = vadd.f32 %v4714_v31, %v9233_v0  ;;  %v7310_v40 = vld [vmem:[#allocation10 + $0x3f0] ss:$8 sps:$4 sm:$0xff]  }
 0xe47   : > { %v9424_v26 = vadd.f32 %v4716_v46, %v9229_v1  ;;  %v4720_v39 = vadd.f32 %v4719_v50, %v9298_v30  ;;  %5021 = vmatprep.mubr.bf16.mxu0 %v4807_v10  ;;  %v9462_v10 = vld [vmem:[#allocation11 + $0x14] ss:$8 sps:$4 sm:$0xff]   ;;  %v9468_v50 = vld [vmem:[#allocation11 + $0x24] ss:$8 sps:$4 sm:$0xff]  }
 0xe48   : > { %9847 = vst [vmem:[#allocation26_spill] sm:$0xff] %v9428_v60  ;;  %v9431_v20 = vadd.f32 %v4718_v36, %v9236_v12  ;;  %5022 = vmatmul.mubr.bf16.gmra.mrb[244].mxu0 %v4806_v27  ;;  %v4788_v43 = vmax.f32 %v9428_v60, 0.0  ;;  %v9465_v36 = vld [vmem:[#allocation11 + $0x10] ss:$8 sps:$4 sm:$0xff]   ;;  %v9471_v27 = vld [vmem:[#allocation11 + $0x20] ss:$8 sps:$4 sm:$0xff]  }
 0xe49   : > { %9846 = vst [vmem:[#allocation25_spill] sm:$0xff] %v9424_v26  ;;  %v9434_v63 = vadd.f32 %v4720_v39, %v9239_v17  ;;  %v4789_v21 = vmax.f32 %v9424_v26, 0.0  ;;  %v9474_v39 = vld [vmem:[#allocation11 + $0x34] ss:$8 sps:$4 sm:$0xff]  }
 0xe4a   : > { %9848 = vst [vmem:[#allocation27_spill] sm:$0xff] %v9431_v20  ;;  %v4790_v16 = vmax.f32 %v9431_v20, 0.0 }
 0xe4b   : > { %9849 = vst [vmem:[#allocation28_spill] sm:$0xff] %v9434_v63  ;;  %v4791_v1 = vmax.f32 %v9434_v63, 0.0  ;;  %v4723_v32 = vpop.f32.mrb[252].mxu1 }
 0xe4c   : > { %v4724_v58 = vadd.f32 %v4723_v32, %v9295_v23  ;;  %v4725_v0 = vpop.f32.mrb[253].mxu1  ;;  %v4808_v13 = vpack.c.bf16 %v4790_v16, %v4788_v43  ;;  %v9477_v16 = vld [vmem:[#allocation11 + $0x30] ss:$8 sps:$4 sm:$0xff]   ;;  %v9486_v32 = vld [vmem:[#allocation11 + $0x54] ss:$8 sps:$4 sm:$0xff]  }
 0xe4d   : > { %v4726_v49 = vadd.f32 %v4725_v0, %v9298_v30  ;;  %v4727_v12 = vpop.f32.mrb[254].mxu1  ;;  %v4809_v35 = vpack.c.bf16 %v4791_v1, %v4789_v21  ;;  %v9480_v21 = vld [vmem:[#allocation11 + $0x44] ss:$8 sps:$4 sm:$0xff]   ;;  %v9483_v1 = vld [vmem:[#allocation11 + $0x40] ss:$8 sps:$4 sm:$0xff]  }
 0xe4e   : > { %v4728_v37 = vadd.f32 %v4727_v12, %v9295_v23  ;;  %v4729_v17 = vpop.f32.mrb[255].mxu1  ;;  %v9448_v47 = vadd.f32 %v4724_v58, %v9253_v8  ;;  %v7312_v8 = vld [vmem:[#allocation10 + $0x3f4] ss:$8 sps:$4 sm:$0xff]   ;;  %v9489_v43 = vld [vmem:[#allocation11 + $0x50] ss:$8 sps:$4 sm:$0xff]  }
 0xe4f   : > { %v9444_v33 = vadd.f32 %v4726_v49, %v9249_v15  ;;  %v4730_v4 = vadd.f32 %v4729_v17, %v9298_v30  ;;  %5029 = vmatprep.mubr.bf16.mxu0 %v4809_v35  ;;  %5194 = vmatprep.subr.bf16.mxu1 %v7312_v8  ;;  %v9492_v58 = vld [vmem:[#allocation11 + $0x64] ss:$8 sps:$4 sm:$0xff]   ;;  %v9495_v0 = vld [vmem:[#allocation11 + $0x60] ss:$8 sps:$4 sm:$0xff]   ;;  %v9498_v49 = vld [vmem:[#allocation11 + $0x74] ss:$8 sps:$4 sm:$0xff]  }
 0xe50   : > { %9851 = vst [vmem:[#allocation30_spill] sm:$0xff] %v9448_v47  ;;  %v9451_v11 = vadd.f32 %v4728_v37, %v9256_v45  ;;  %5030 = vmatmul.mubr.bf16.gmra.mrb[248].mxu0 %v4808_v13  ;;  %v4792_v24 = vmax.f32 %v9448_v47, 0.0  ;;  %5195 = vmatpush1.bf16.msra.mxu1 %v7310_v40  ;;  %v9460_v45 = vld [vmem:[#allocation11] ss:$8 sps:$4 sm:$0xff]   ;;  %v9501_v12 = vld [vmem:[#allocation11 + $0x70] ss:$8 sps:$4 sm:$0xff]  }
 0xe51   : > { %9850 = vst [vmem:[#allocation29_spill] sm:$0xff] %v9444_v33  ;;  %v9454_v52 = vadd.f32 %v4730_v4, %v9259_v28  ;;  %v4793_v31 = vmax.f32 %v9444_v33, 0.0  ;;  %v7315_v28 = vld [vmem:[#allocation11 + $0x4] ss:$8 sps:$4 sm:$0xff]   ;;  %v9507_v37 = vld [vmem:[#allocation11 + $0x80] ss:$8 sps:$4 sm:$0xff]  }
 0xe52   : > { %9852 = vst [vmem:[#allocation31_spill] sm:$0xff] %v9451_v11  ;;  %v4794_v23 = vmax.f32 %v9451_v11, 0.0  ;;  %5577 = vmatprep.subr.bf16.mxu0 %v7315_v28  ;;  %6783 = vmatprep.subr.bf16.mxu1 %v7315_v28  ;;  %v9504_v35 = vld [vmem:[#allocation11 + $0x84] ss:$8 sps:$4 sm:$0xff]   ;;  %v9510_v17 = vld [vmem:[#allocation11 + $0x94] ss:$8 sps:$4 sm:$0xff]  }
 0xe53   : > { %9853 = vst [vmem:[#allocation32_spill] sm:$0xff] %v9454_v52  ;;  %v4795_v15 = vmax.f32 %v9454_v52, 0.0  ;;  %5578 = vmatpush1.bf16.msra.mxu0 %v9460_v45  ;;  %v9513_v13 = vld [vmem:[#allocation11 + $0x90] ss:$8 sps:$4 sm:$0xff]   ;;  %v9516_v4 = vld [vmem:[#allocation11 + $0xa4] ss:$8 sps:$4 sm:$0xff]  }
 0xe54   : > { %v4810_v46 = vpack.c.bf16 %v4794_v23, %v4792_v24  ;;  %5579 = vmatprep.subr.bf16.mxu0 %v9462_v10  ;;  %v9519_v23 = vld [vmem:[#allocation11 + $0xa0] ss:$8 sps:$4 sm:$0xff]   ;;  %v9528_v24 = vld [vmem:[#allocation11 + $0xc4] ss:$8 sps:$4 sm:$0xff]   ;;  %v9535_v8 = vld [vmem:[#allocation8 + $0x7] ss:$0 sm:$0xff] }
 0xe55   : > { %v4811_v30 = vpack.c.bf16 %v4795_v15, %v4793_v31  ;;  %v9522_v31 = vld [vmem:[#allocation11 + $0xb4] ss:$8 sps:$4 sm:$0xff]   ;;  %v9525_v15 = vld [vmem:[#allocation11 + $0xb0] ss:$8 sps:$4 sm:$0xff]  }
 0xe57   : > { %5037 = vmatprep.mubr.bf16.mxu0 %v4811_v30  ;;  %5580 = vmatpush1.bf16.msra.mxu0 %v9465_v36  ;;  %v9531_v30 = vld [vmem:[#allocation11 + $0xc0] ss:$8 sps:$4 sm:$0xff]  }
 0xe58   : > { %5038 = vmatmul.mubr.bf16.gmra.mrb[252].mxu0 %v4810_v46  ;;  %5581 = vmatprep.subr.bf16.mxu0 %v9468_v50 }
 0xe5b   : > { %5582 = vmatpush1.bf16.msra.mxu0 %v9471_v27 }
 0xe5c   : > { %5583 = vmatprep.subr.bf16.mxu0 %v9474_v39 }
 0xe5f   : > { %5584 = vmatpush1.bf16.msra.mxu0 %v9477_v16 }
 0xe60   : > { %5585 = vmatprep.subr.bf16.mxu0 %v9480_v21 }
 0xe63   : > { %5586 = vmatpush1.bf16.msra.mxu0 %v9483_v1 }
 0xe64   : > { %5587 = vmatprep.subr.bf16.mxu0 %v9486_v32 }
 0xe67   : > { %5588 = vmatpush1.bf16.msra.mxu0 %v9489_v43 }
 0xe68   : > { %5589 = vmatprep.subr.bf16.mxu0 %v9492_v58 }
 0xe6b   : > { %5590 = vmatpush1.bf16.msra.mxu0 %v9495_v0 }
 0xe6c   : > { %5591 = vmatprep.subr.bf16.mxu0 %v9498_v49 }
 0xe6f   : > { %5592 = vmatpush1.bf16.msra.mxu0 %v9501_v12 }
 0xe70   : > { %5593 = vmatprep.subr.bf16.mxu0 %v9504_v35 }
 0xe73   : > { %5594 = vmatpush1.bf16.msra.mxu0 %v9507_v37 }
 0xe74   : > { %5595 = vmatprep.subr.bf16.mxu0 %v9510_v17 }
 0xe77   : > { %5596 = vmatpush1.bf16.msra.mxu0 %v9513_v13 }
 0xe78   : > { %5597 = vmatprep.subr.bf16.mxu0 %v9516_v4 }
 0xe7b   : > { %5598 = vmatpush1.bf16.msra.mxu0 %v9519_v23 }
 0xe7c   : > { %5599 = vmatprep.subr.bf16.mxu0 %v9522_v31 }
 0xe7f   : > { %5600 = vmatpush1.bf16.msra.mxu0 %v9525_v15 }
 0xe80   : > { %5601 = vmatprep.subr.bf16.mxu0 %v9528_v24 }
 0xe83   : > { %5602 = vmatpush1.bf16.msra.mxu0 %v9531_v30 }
 0xef3   : > { %v6735_v46 = vpop.f32.mrb[224].mxu0 }
 0xef4   : > { %v6736_v40 = vpop.f32.mrb[225].mxu0 }
 0xef5   : > { %v6737_v28 = vadd.f32 %v6736_v40, %v6735_v46  ;;  %v6738_v48 = vpop.f32.mrb[226].mxu0  ;;  %v9854_v46 = vmov 0  }
 0xef6   : > { %v6739_v52 = vpop.f32.mrb[227].mxu0 }
 0xef7   : > { %v4984_v11 = vadd.f32 %v6737_v28, %v9535_v8  ;;  %v6740_v33 = vadd.f32 %v6739_v52, %v6738_v48 }
 0xef9   : > { %v4987_v47 = vadd.f32 %v6740_v33, %v9535_v8  ;;  %v5046_v63 = vmax.f32 %v4984_v11, 0.0 }
 0xefb   : > { %v5047_v20 = vmax.f32 %v4987_v47, 0.0  ;;  %v6741_v26 = vpop.f32.mrb[228].mxu0 }
 0xefc   : > { %v6742_v60 = vpop.f32.mrb[229].mxu0 }
 0xefd   : > { %v5062_v29 = vpack.c.bf16 %v5047_v20, %v5046_v63  ;;  %v6743_v19 = vadd.f32 %v6742_v60, %v6741_v26  ;;  %v6744_v38 = vpop.f32.mrb[230].mxu0 }
 0xefe   : > { %v6745_v41 = vpop.f32.mrb[231].mxu0 }
 0xeff   : > { %v4992_v56 = vadd.f32 %v6743_v19, %v9535_v8  ;;  %v6746_v62 = vadd.f32 %v6745_v41, %v6744_v38  ;;  %5213 = vmatmul.mubr.bf16.vlgmr.msra.gmra.mrb[0].mxu1 %v5062_v29 }
 0xf00   : > { %5222 = vmatprep.mubr.bf16.mxu1 %v9854_v46  ;;  %6799 = vmatpush1.bf16.msra.mxu1 %v9460_v45 }
 0xf01   : > { %v4995_v48 = vadd.f32 %v6746_v62, %v9535_v8  ;;  %6784 = vmatprep.subr.bf16.mxu1 %v9462_v10  ;;  %v5048_v33 = vmax.f32 %v4992_v56, 0.0 }
 0xf03   : > { %v5049_v47 = vmax.f32 %v4995_v48, 0.0  ;;  %v6747_v11 = vpop.f32.mrb[232].mxu0 }
 0xf04   : > { %v6748_v52 = vpop.f32.mrb[233].mxu0  ;;  %6800 = vmatpush1.bf16.msra.mxu1 %v9465_v36 }
 0xf05   : > { %v5063_v26 = vpack.c.bf16 %v5049_v47, %v5048_v33  ;;  %v6749_v60 = vadd.f32 %v6748_v52, %v6747_v11  ;;  %v6750_v20 = vpop.f32.mrb[234].mxu0  ;;  %6785 = vmatprep.subr.bf16.mxu1 %v9468_v50 }
 0xf06   : > { %v6751_v38 = vpop.f32.mrb[235].mxu0 }
 0xf07   : > { %v5000_v41 = vadd.f32 %v6749_v60, %v9535_v8  ;;  %v6752_v19 = vadd.f32 %v6751_v38, %v6750_v20  ;;  %5223 = vmatmul.mubr.bf16.gmra.mrb[4].mxu1 %v5063_v26 }
 0xf08   : > { %5232 = vmatprep.mubr.bf16.mxu1 %v9854_v46  ;;  %6801 = vmatpush1.bf16.msra.mxu1 %v9471_v27 }
 0xf09   : > { %v5003_v62 = vadd.f32 %v6752_v19, %v9535_v8  ;;  %6786 = vmatprep.subr.bf16.mxu1 %v9474_v39  ;;  %v5050_v56 = vmax.f32 %v5000_v41, 0.0 }
 0xf0b   : > { %v5051_v29 = vmax.f32 %v5003_v62, 0.0  ;;  %v6753_v63 = vpop.f32.mrb[236].mxu0 }
 0xf0c   : > { %v6754_v45 = vpop.f32.mrb[237].mxu0  ;;  %6802 = vmatpush1.bf16.msra.mxu1 %v9477_v16 }
 0xf0d   : > { %v5064_v10 = vpack.c.bf16 %v5051_v29, %v5050_v56  ;;  %v6755_v36 = vadd.f32 %v6754_v45, %v6753_v63  ;;  %v6756_v50 = vpop.f32.mrb[238].mxu0  ;;  %6787 = vmatprep.subr.bf16.mxu1 %v9480_v21 }
 0xf0e   : > { %v6757_v40 = vpop.f32.mrb[239].mxu0 }
 0xf0f   : > { %v5008_v28 = vadd.f32 %v6755_v36, %v9535_v8  ;;  %v6758_v48 = vadd.f32 %v6757_v40, %v6756_v50  ;;  %5233 = vmatmul.mubr.bf16.gmra.mrb[8].mxu1 %v5064_v10 }
 0xf10   : > { %5242 = vmatprep.mubr.bf16.mxu1 %v9854_v46  ;;  %6803 = vmatpush1.bf16.msra.mxu1 %v9483_v1 }
 0xf11   : > { %v5011_v27 = vadd.f32 %v6758_v48, %v9535_v8  ;;  %6788 = vmatprep.subr.bf16.mxu1 %v9486_v32  ;;  %v5052_v39 = vmax.f32 %v5008_v28, 0.0 }
 0xf13   : > { %v5053_v16 = vmax.f32 %v5011_v27, 0.0  ;;  %v6759_v33 = vpop.f32.mrb[240].mxu0 }
 0xf14   : > { %v6760_v47 = vpop.f32.mrb[241].mxu0  ;;  %6804 = vmatpush1.bf16.msra.mxu1 %v9489_v43 }
 0xf15   : > { %v5065_v21 = vpack.c.bf16 %v5053_v16, %v5052_v39  ;;  %v6761_v11 = vadd.f32 %v6760_v47, %v6759_v33  ;;  %v6762_v52 = vpop.f32.mrb[242].mxu0  ;;  %6789 = vmatprep.subr.bf16.mxu1 %v9492_v58 }
 0xf16   : > { %v6763_v26 = vpop.f32.mrb[243].mxu0 }
 0xf17   : > { %v5016_v60 = vadd.f32 %v6761_v11, %v9535_v8  ;;  %v6764_v20 = vadd.f32 %v6763_v26, %v6762_v52  ;;  %5243 = vmatmul.mubr.bf16.gmra.mrb[12].mxu1 %v5065_v21 }
 0xf18   : > { %5252 = vmatprep.mubr.bf16.mxu1 %v9854_v46  ;;  %6805 = vmatpush1.bf16.msra.mxu1 %v9495_v0 }
 0xf19   : > { %v5019_v1 = vadd.f32 %v6764_v20, %v9535_v8  ;;  %6790 = vmatprep.subr.bf16.mxu1 %v9498_v49  ;;  %v5054_v32 = vmax.f32 %v5016_v60, 0.0  ;;  %v7352_v60 = vld [vmem:[#allocation11 + $0xd0] ss:$8 sps:$4 sm:$0xff]   ;;  %v7355_v20 = vld [vmem:[#allocation11 + $0xe0] ss:$8 sps:$4 sm:$0xff]  }
 0xf1b   : > { %v5055_v43 = vmax.f32 %v5019_v1, 0.0  ;;  %v6765_v38 = vpop.f32.mrb[244].mxu0 }
 0xf1c   : > { %v6766_v41 = vpop.f32.mrb[245].mxu0  ;;  %6806 = vmatpush1.bf16.msra.mxu1 %v9501_v12 }
 0xf1d   : > { %v5066_v58 = vpack.c.bf16 %v5055_v43, %v5054_v32  ;;  %v6767_v19 = vadd.f32 %v6766_v41, %v6765_v38  ;;  %v6768_v62 = vpop.f32.mrb[246].mxu0  ;;  %6791 = vmatprep.subr.bf16.mxu1 %v9504_v35 }
 0xf1e   : > { %v6769_v56 = vpop.f32.mrb[247].mxu0 }
 0xf1f   : > { %v5024_v29 = vadd.f32 %v6767_v19, %v9535_v8  ;;  %v6770_v63 = vadd.f32 %v6769_v56, %v6768_v62  ;;  %5253 = vmatmul.mubr.bf16.gmra.mrb[16].mxu1 %v5066_v58 }
 0xf20   : > { %5262 = vmatprep.mubr.bf16.mxu1 %v9854_v46  ;;  %6807 = vmatpush1.bf16.msra.mxu1 %v9507_v37 }
 0xf21   : > { %v5027_v0 = vadd.f32 %v6770_v63, %v9535_v8  ;;  %6792 = vmatprep.subr.bf16.mxu1 %v9510_v17  ;;  %v5056_v49 = vmax.f32 %v5024_v29, 0.0 }
 0xf23   : > { %v5057_v12 = vmax.f32 %v5027_v0, 0.0  ;;  %v6771_v45 = vpop.f32.mrb[248].mxu0 }
 0xf24   : > { %v6772_v10 = vpop.f32.mrb[249].mxu0  ;;  %6808 = vmatpush1.bf16.msra.mxu1 %v9513_v13 }
 0xf25   : > { %v5067_v35 = vpack.c.bf16 %v5057_v12, %v5056_v49  ;;  %v6773_v36 = vadd.f32 %v6772_v10, %v6771_v45  ;;  %v6774_v50 = vpop.f32.mrb[250].mxu0  ;;  %6793 = vmatprep.subr.bf16.mxu1 %v9516_v4 }
 0xf26   : > { %v6775_v40 = vpop.f32.mrb[251].mxu0 }
 0xf27   : > { %v5032_v28 = vadd.f32 %v6773_v36, %v9535_v8  ;;  %v6776_v48 = vadd.f32 %v6775_v40, %v6774_v50  ;;  %5263 = vmatmul.mubr.bf16.gmra.mrb[20].mxu1 %v5067_v35 }
 0xf28   : > { %5272 = vmatprep.mubr.bf16.mxu1 %v9854_v46  ;;  %6809 = vmatpush1.bf16.msra.mxu1 %v9519_v23 }
 0xf29   : > { %v5035_v37 = vadd.f32 %v6776_v48, %v9535_v8  ;;  %6794 = vmatprep.subr.bf16.mxu1 %v9522_v31  ;;  %v5058_v17 = vmax.f32 %v5032_v28, 0.0 }
 0xf2b   : > { %v5059_v13 = vmax.f32 %v5035_v37, 0.0  ;;  %v6777_v27 = vpop.f32.mrb[252].mxu0 }
 0xf2c   : > { %v6778_v39 = vpop.f32.mrb[253].mxu0  ;;  %6810 = vmatpush1.bf16.msra.mxu1 %v9525_v15  ;;  %v7354_v15 = vld [vmem:[#allocation11 + $0xd4] ss:$8 sps:$4 sm:$0xff]  }
 0xf2d   : > { %v5068_v4 = vpack.c.bf16 %v5059_v13, %v5058_v17  ;;  %v6779_v16 = vadd.f32 %v6778_v39, %v6777_v27  ;;  %v6780_v33 = vpop.f32.mrb[254].mxu0  ;;  %6795 = vmatprep.subr.bf16.mxu1 %v9528_v24  ;;  %5603 = vmatprep.subr.bf16.mxu0 %v7354_v15  ;;  %v7357_v24 = vld [vmem:[#allocation11 + $0xe4] ss:$8 sps:$4 sm:$0xff]  }
 0xf2e   : > { %v6781_v47 = vpop.f32.mrb[255].mxu0  ;;  %5604 = vmatpush1.bf16.msra.mxu0 %v7352_v60 }
 0xf2f   : > { %v5040_v21 = vadd.f32 %v6779_v16, %v9535_v8  ;;  %v6782_v11 = vadd.f32 %v6781_v47, %v6780_v33  ;;  %5273 = vmatmul.mubr.bf16.gmra.mrb[24].mxu1 %v5068_v4  ;;  %5605 = vmatprep.subr.bf16.mxu0 %v7357_v24 }
 0xf30   : > { %5282 = vmatprep.mubr.bf16.mxu1 %v9854_v46  ;;  %6811 = vmatpush1.bf16.msra.mxu1 %v9531_v30  ;;  %v7360_v46 = vld [vmem:[#allocation11 + $0xf4] ss:$8 sps:$4 sm:$0xff]   ;;  %v7358_v30 = vld [vmem:[#allocation11 + $0xf0] ss:$8 sps:$4 sm:$0xff]  }
 0xf31   : > { %v5043_v23 = vadd.f32 %v6782_v11, %v9535_v8  ;;  %v5060_v31 = vmax.f32 %v5040_v21, 0.0  ;;  %6796 = vmatprep.subr.bf16.mxu1 %v7354_v15  ;;  %v6212_v8 = vld [vmem:[%s9790_s6 + $0xe] sm:$0x3] }
 0xf32   : > { %5606 = vmatpush1.bf16.msra.mxu0 %v7355_v20  ;;  %v9589_v1 = vrot.slane %v6212_v8, %v7958_v5  ;;  %v9592_v32 = vrot.slane %v6212_v8, %v7953_v3 }
 0xf33   : > { %v5061_v52 = vmax.f32 %v5043_v23, 0.0  ;;  %5607 = vmatprep.subr.bf16.mxu0 %v7360_v46 }
 0xf34   : > { %6812 = vmatpush1.bf16.msra.mxu1 %v7352_v60 }
 0xf35   : > { %v5069_v26 = vpack.c.bf16 %v5061_v52, %v5060_v31  ;;  %6797 = vmatprep.subr.bf16.mxu1 %v7357_v24 }
 0xf36   : > { %5608 = vmatpush1.bf16.msra.mxu0 %v7358_v30 }
 0xf37   : > { %5283 = vmatmul.mubr.bf16.gmra.mrb[28].mxu1 %v5069_v26 }
 0xf38   : > { %6813 = vmatpush1.bf16.msra.mxu1 %v7355_v20 }
 0xf39   : > { %6798 = vmatprep.subr.bf16.mxu1 %v7360_v46 }
 0xf3c   : > { %6814 = vmatpush1.bf16.msra.mxu1 %v7358_v30 }
 0xfd2   : > { %v5214_v43 = vpop.f32.mrb[0].mxu1 }
 0xfd3   : > { %v5215_v38 = vadd.f32 %v5214_v43, %v9589_v1  ;;  %v5216_v41 = vpop.f32.mrb[1].mxu1 }
 0xfd4   : > { %v5217_v58 = vadd.f32 %v5216_v41, %v9592_v32  ;;  %v5218_v19 = vpop.f32.mrb[2].mxu1 }
 0xfd5   : > { %v5293_v62 = vadd.f32 %v5215_v38, %v9308_v55  ;;  %v5219_v56 = vadd.f32 %v5218_v19, %v9589_v1  ;;  %v5220_v29 = vpop.f32.mrb[3].mxu1 }
 0xfd6   : > { %v5294_v63 = vadd.f32 %v5217_v58, %v9304_v44  ;;  %v5221_v0 = vadd.f32 %v5220_v29, %v9592_v32 }
 0xfd7   : > { %v5295_v49 = vadd.f32 %v5219_v56, %v9311_v59  ;;  %v5325_v45 = vmax.f32 %v5293_v62, 0.0 }
 0xfd8   : > { %v5296_v12 = vadd.f32 %v5221_v0, %v9314_v51  ;;  %v5326_v35 = vmax.f32 %v5294_v63, 0.0 }
 0xfd9   : > { %v5327_v10 = vmax.f32 %v5295_v49, 0.0 }
 0xfda   : > { %v5328_v36 = vmax.f32 %v5296_v12, 0.0  ;;  %v5224_v50 = vpop.f32.mrb[4].mxu1 }
 0xfdb   : > { %v5357_v40 = vpack.c.bf16 %v5327_v10, %v5325_v45  ;;  %v5225_v28 = vadd.f32 %v5224_v50, %v9589_v1  ;;  %v5226_v55 = vpop.f32.mrb[5].mxu1 }
 0xfdc   : > { %v5227_v48 = vadd.f32 %v5226_v55, %v9592_v32  ;;  %v5228_v37 = vpop.f32.mrb[6].mxu1  ;;  %v5358_v17 = vpack.c.bf16 %v5328_v36, %v5326_v35 }
 0xfdd   : > { %v5297_v44 = vadd.f32 %v5225_v28, %v9328_v22  ;;  %v5229_v13 = vadd.f32 %v5228_v37, %v9589_v1  ;;  %v5230_v59 = vpop.f32.mrb[7].mxu1 }
 0xfde   : > { %v5298_v51 = vadd.f32 %v5227_v48, %v9324_v7  ;;  %v5231_v27 = vadd.f32 %v5230_v59, %v9592_v32  ;;  %5609 = vmatprep.mubr.bf16.mxu0 %v5358_v17 }
 0xfdf   : > { %v5299_v39 = vadd.f32 %v5229_v13, %v9331_v53  ;;  %5610 = vmatmul.mubr.bf16.vlgmr.msra.gmra.mrb[0].mxu0 %v5357_v40  ;;  %v5329_v16 = vmax.f32 %v5297_v44, 0.0  ;;  %v9855_v13 = vld [vmem:[#allocation19_spill] sm:$0xff] }
 0xfe0   : > { %v5300_v4 = vadd.f32 %v5231_v27, %v9334_v54  ;;  %v5330_v47 = vmax.f32 %v5298_v51, 0.0  ;;  %v9856_v51 = vld [vmem:[#allocation20_spill] sm:$0xff] }
 0xfe1   : > { %v5331_v33 = vmax.f32 %v5299_v39, 0.0 }
 0xfe2   : > { %v5332_v21 = vmax.f32 %v5300_v4, 0.0  ;;  %v5234_v11 = vpop.f32.mrb[8].mxu1 }
 0xfe3   : > { %v5359_v23 = vpack.c.bf16 %v5331_v33, %v5329_v16  ;;  %v5235_v22 = vadd.f32 %v5234_v11, %v9589_v1  ;;  %v5236_v31 = vpop.f32.mrb[9].mxu1 }
 0xfe4   : > { %v5237_v52 = vadd.f32 %v5236_v31, %v9592_v32  ;;  %v5238_v7 = vpop.f32.mrb[10].mxu1  ;;  %v5360_v26 = vpack.c.bf16 %v5332_v21, %v5330_v47  ;;  %v9857_v31 = vld [vmem:[#allocation22_spill] sm:$0xff] }
 0xfe5   : > { %v5301_v15 = vadd.f32 %v5235_v22, %v9348_v57  ;;  %v5239_v53 = vadd.f32 %v5238_v7, %v9589_v1  ;;  %v5240_v60 = vpop.f32.mrb[11].mxu1 }
 0xfe6   : > { %v5302_v54 = vadd.f32 %v5237_v52, %v9344_v61  ;;  %v5241_v24 = vadd.f32 %v5240_v60, %v9592_v32  ;;  %5619 = vmatprep.mubr.bf16.mxu0 %v5360_v26 }
 0xfe7   : > { %v5303_v20 = vadd.f32 %v5239_v53, %v9351_v42  ;;  %5620 = vmatmul.mubr.bf16.gmra.mrb[4].mxu0 %v5359_v23  ;;  %v5333_v30 = vmax.f32 %v5301_v15, 0.0  ;;  %v9858_v15 = vld [vmem:[#allocation21_spill] sm:$0xff] }
 0xfe8   : > { %v5304_v46 = vadd.f32 %v5241_v24, %v9354_v25  ;;  %v5334_v43 = vmax.f32 %v5302_v54, 0.0  ;;  %v9859_v54 = vld [vmem:[#allocation23_spill] sm:$0xff] }
 0xfe9   : > { %v5335_v8 = vmax.f32 %v5303_v20, 0.0  ;;  %v9860_v20 = vld [vmem:[#allocation24_spill] sm:$0xff] }
 0xfea   : > { %v5336_v38 = vmax.f32 %v5304_v46, 0.0  ;;  %v5244_v41 = vpop.f32.mrb[12].mxu1 }
 0xfeb   : > { %v5361_v58 = vpack.c.bf16 %v5335_v8, %v5333_v30  ;;  %v5245_v57 = vadd.f32 %v5244_v41, %v9589_v1  ;;  %v5246_v19 = vpop.f32.mrb[13].mxu1 }
 0xfec   : > { %v5247_v62 = vadd.f32 %v5246_v19, %v9592_v32  ;;  %v5248_v61 = vpop.f32.mrb[14].mxu1  ;;  %v5362_v56 = vpack.c.bf16 %v5336_v38, %v5334_v43 }
 0xfed   : > { %v5305_v29 = vadd.f32 %v5245_v57, %v9368_v2  ;;  %v5249_v42 = vadd.f32 %v5248_v61, %v9589_v1  ;;  %v5250_v63 = vpop.f32.mrb[15].mxu1 }
 0xfee   : > { %v5306_v25 = vadd.f32 %v5247_v62, %v9364_v9  ;;  %v5251_v0 = vadd.f32 %v5250_v63, %v9592_v32  ;;  %5629 = vmatprep.mubr.bf16.mxu0 %v5362_v56 }
 0xfef   : > { %v5307_v49 = vadd.f32 %v5249_v42, %v9371_v34  ;;  %5630 = vmatmul.mubr.bf16.gmra.mrb[8].mxu0 %v5361_v58  ;;  %v5337_v45 = vmax.f32 %v5305_v29, 0.0  ;;  %v9861_v29 = vld [vmem:[#allocation26_spill] sm:$0xff] }
 0xff0   : > { %v5308_v12 = vadd.f32 %v5251_v0, %v9374_v18  ;;  %v5338_v35 = vmax.f32 %v5306_v25, 0.0  ;;  %v9862_v0 = vld [vmem:[#allocation25_spill] sm:$0xff] }
 0xff1   : > { %v5339_v10 = vmax.f32 %v5307_v49, 0.0 }
 0xff2   : > { %v5340_v36 = vmax.f32 %v5308_v12, 0.0  ;;  %v5254_v50 = vpop.f32.mrb[16].mxu1 }
 0xff3   : > { %v5363_v40 = vpack.c.bf16 %v5339_v10, %v5337_v45  ;;  %v5255_v2 = vadd.f32 %v5254_v50, %v9589_v1  ;;  %v5256_v28 = vpop.f32.mrb[17].mxu1  ;;  %v9863_v45 = vld [vmem:[#allocation27_spill] sm:$0xff] }
 0xff4   : > { %v5257_v55 = vadd.f32 %v5256_v28, %v9592_v32  ;;  %v5258_v9 = vpop.f32.mrb[18].mxu1  ;;  %v5364_v48 = vpack.c.bf16 %v5340_v36, %v5338_v35  ;;  %v9864_v35 = vld [vmem:[#allocation28_spill] sm:$0xff] }
 0xff5   : > { %v5309_v37 = vadd.f32 %v5255_v2, %v9388_v14  ;;  %v5259_v34 = vadd.f32 %v5258_v9, %v9589_v1  ;;  %v5260_v17 = vpop.f32.mrb[19].mxu1 }
 0xff6   : > { %v5310_v18 = vadd.f32 %v5257_v55, %v9384_v6  ;;  %v5261_v44 = vadd.f32 %v5260_v17, %v9592_v32  ;;  %5639 = vmatprep.mubr.bf16.mxu0 %v5364_v48 }
 0xff7   : > { %v5311_v59 = vadd.f32 %v5259_v34, %v9855_v13  ;;  %5640 = vmatmul.mubr.bf16.gmra.mrb[12].mxu0 %v5363_v40  ;;  %v5341_v39 = vmax.f32 %v5309_v37, 0.0 }
 0xff8   : > { %v5312_v27 = vadd.f32 %v5261_v44, %v9856_v51  ;;  %v5342_v16 = vmax.f32 %v5310_v18, 0.0  ;;  %v9865_v44 = vld [vmem:[#allocation30_spill] sm:$0xff] }
 0xff9   : > { %v5343_v4 = vmax.f32 %v5311_v59, 0.0 }
 0xffa   : > { %v5344_v33 = vmax.f32 %v5312_v27, 0.0  ;;  %v5264_v47 = vpop.f32.mrb[20].mxu1  ;;  %v9866_v27 = vld [vmem:[#allocation29_spill] sm:$0xff] }
 0xffb   : > { %v5365_v21 = vpack.c.bf16 %v5343_v4, %v5341_v39  ;;  %v5265_v14 = vadd.f32 %v5264_v47, %v9589_v1  ;;  %v5266_v11 = vpop.f32.mrb[21].mxu1  ;;  %v9868_v47 = vld [vmem:[#allocation32_spill] sm:$0xff] }
 0xffc   : > { %v5267_v23 = vadd.f32 %v5266_v11, %v9592_v32  ;;  %v5268_v6 = vpop.f32.mrb[22].mxu1  ;;  %v5366_v22 = vpack.c.bf16 %v5344_v33, %v5342_v16  ;;  %v9867_v16 = vld [vmem:[#allocation31_spill] sm:$0xff] }
 0xffd   : > { %v5313_v52 = vadd.f32 %v5265_v14, %v9857_v31  ;;  %v5269_v7 = vadd.f32 %v5268_v6, %v9589_v1  ;;  %v5270_v26 = vpop.f32.mrb[23].mxu1 }
 0xffe   : > { %v5314_v53 = vadd.f32 %v5267_v23, %v9858_v15  ;;  %v5271_v60 = vadd.f32 %v5270_v26, %v9592_v32  ;;  %5649 = vmatprep.mubr.bf16.mxu0 %v5366_v22 }
 0xfff   : > { %v5315_v24 = vadd.f32 %v5269_v7, %v9859_v54  ;;  %5650 = vmatmul.mubr.bf16.gmra.mrb[16].mxu0 %v5365_v21  ;;  %v5345_v30 = vmax.f32 %v5313_v52, 0.0 }
0x1000   : > { %v5316_v46 = vadd.f32 %v5271_v60, %v9860_v20  ;;  %v5346_v43 = vmax.f32 %v5314_v53, 0.0 }
0x1001   : > { %v5347_v8 = vmax.f32 %v5315_v24, 0.0 }
0x1002   : > { %v5348_v38 = vmax.f32 %v5316_v46, 0.0  ;;  %v5274_v41 = vpop.f32.mrb[24].mxu1 }
0x1003   : > { %v5367_v58 = vpack.c.bf16 %v5347_v8, %v5345_v30  ;;  %v5275_v57 = vadd.f32 %v5274_v41, %v9589_v1  ;;  %v5276_v19 = vpop.f32.mrb[25].mxu1 }
0x1004   : > { %v5277_v62 = vadd.f32 %v5276_v19, %v9592_v32  ;;  %v5278_v61 = vpop.f32.mrb[26].mxu1  ;;  %v5368_v56 = vpack.c.bf16 %v5348_v38, %v5346_v43 }
0x1005   : > { %v5317_v42 = vadd.f32 %v5275_v57, %v9861_v29  ;;  %v5279_v63 = vadd.f32 %v5278_v61, %v9589_v1  ;;  %v5280_v25 = vpop.f32.mrb[27].mxu1 }
0x1006   : > { %v5318_v49 = vadd.f32 %v5277_v62, %v9862_v0  ;;  %v5281_v12 = vadd.f32 %v5280_v25, %v9592_v32  ;;  %5659 = vmatprep.mubr.bf16.mxu0 %v5368_v56 }
0x1007   : > { %v5319_v10 = vadd.f32 %v5279_v63, %v9863_v45  ;;  %5660 = vmatmul.mubr.bf16.gmra.mrb[20].mxu0 %v5367_v58  ;;  %v5349_v50 = vmax.f32 %v5317_v42, 0.0 }
0x1008   : > { %v5320_v36 = vadd.f32 %v5281_v12, %v9864_v35  ;;  %v5350_v2 = vmax.f32 %v5318_v49, 0.0 }
0x1009   : > { %v5351_v40 = vmax.f32 %v5319_v10, 0.0 }
0x100a   : > { %v5352_v28 = vmax.f32 %v5320_v36, 0.0  ;;  %v5284_v55 = vpop.f32.mrb[28].mxu1 }
0x100b   : > { %v5369_v9 = vpack.c.bf16 %v5351_v40, %v5349_v50  ;;  %v5285_v48 = vadd.f32 %v5284_v55, %v9589_v1  ;;  %v5286_v37 = vpop.f32.mrb[29].mxu1 }
0x100c   : > { %v5287_v34 = vadd.f32 %v5286_v37, %v9592_v32  ;;  %v5288_v17 = vpop.f32.mrb[30].mxu1  ;;  %v5370_v18 = vpack.c.bf16 %v5352_v28, %v5350_v2 }
0x100d   : > { %v5321_v13 = vadd.f32 %v5285_v48, %v9865_v44  ;;  %v5289_v59 = vadd.f32 %v5288_v17, %v9589_v1  ;;  %v5290_v51 = vpop.f32.mrb[31].mxu1  ;;  %v5405_v1 = vld [vmem:[%s9792_s8] sm:$0x3] }
0x100e   : > { %v5322_v39 = vadd.f32 %v5287_v34, %v9866_v27  ;;  %v5291_v4 = vadd.f32 %v5290_v51, %v9592_v32  ;;  %5669 = vmatprep.mubr.bf16.mxu1 %v5370_v18  ;;  %v9662_v32 = vrot.slane %v5405_v1, %v7958_v5  ;;  %v9665_v52 = vrot.slane %v5405_v1, %v7953_v3 }
0x100f   : > { %v5323_v33 = vadd.f32 %v5289_v59, %v9867_v16  ;;  %5670 = vmatmul.mubr.bf16.vlgmr.msra.gmra.mrb[32].mxu1 %v5369_v9  ;;  %v5353_v14 = vmax.f32 %v5321_v13, 0.0 }
0x1010   : > { %v5324_v21 = vadd.f32 %v5291_v4, %v9868_v47  ;;  %v5354_v23 = vmax.f32 %v5322_v39, 0.0 }
0x1011   : > { %v5355_v11 = vmax.f32 %v5323_v33, 0.0 }
0x1012   : > { %v5356_v6 = vmax.f32 %v5324_v21, 0.0 }
0x1013   : > { %v5371_v22 = vpack.c.bf16 %v5355_v11, %v5353_v14 }
0x1014   : > { %v5372_v31 = vpack.c.bf16 %v5356_v6, %v5354_v23 }
0x1016   : > { %5679 = vmatprep.mubr.bf16.mxu1 %v5372_v31 }
0x1017   : > { %5680 = vmatmul.mubr.bf16.gmra.mrb[36].mxu1 %v5371_v22 }
0x10b2   : > { %v5611_v7 = vpop.f32.mrb[0].mxu0 }
0x10b3   : > { %v5612_v26 = vadd.f32 %v5611_v7, %v9662_v32  ;;  %v5613_v15 = vpop.f32.mrb[1].mxu0 }
0x10b4   : > { %v5614_v53 = vadd.f32 %v5613_v15, %v9665_v52  ;;  %v5615_v60 = vpop.f32.mrb[2].mxu0 }
0x10b5   : > { %v5690_v54 = vmax.f32 %v5612_v26, 0.0  ;;  %v5616_v24 = vadd.f32 %v5615_v60, %v9662_v32  ;;  %v5617_v20 = vpop.f32.mrb[3].mxu0 }
0x10b6   : > { %v5691_v46 = vmax.f32 %v5614_v53, 0.0  ;;  %v5618_v30 = vadd.f32 %v5617_v20, %v9665_v52 }
0x10b7   : > { %5722 = vst [vmem:[%s9672_s21] sm:$0xff] %v5690_v54  ;;  %v5692_v3 = vmax.f32 %v5616_v24, 0.0 }
0x10b8   : > { %5723 = vst [vmem:[%s9672_s21 + $0x8] sm:$0xff] %v5691_v46  ;;  %v5693_v5 = vmax.f32 %v5618_v30, 0.0 }
0x10b9   : > { %5724 = vst [vmem:[%s9672_s21 + $0x10] sm:$0xff] %v5692_v3 }
0x10ba   : > { %5725 = vst [vmem:[%s9672_s21 + $0x18] sm:$0xff] %v5693_v5  ;;  %v5621_v8 = vpop.f32.mrb[4].mxu0 }
0x10bb   : > { %v5622_v43 = vadd.f32 %v5621_v8, %v9662_v32  ;;  %v5623_v38 = vpop.f32.mrb[5].mxu0 }
0x10bc   : > { %v5624_v41 = vadd.f32 %v5623_v38, %v9665_v52  ;;  %v5625_v58 = vpop.f32.mrb[6].mxu0 }
0x10bd   : > { %v5694_v57 = vmax.f32 %v5622_v43, 0.0  ;;  %v5626_v19 = vadd.f32 %v5625_v58, %v9662_v32  ;;  %v5627_v62 = vpop.f32.mrb[7].mxu0 }
0x10be   : > { %v5695_v61 = vmax.f32 %v5624_v41, 0.0  ;;  %v5628_v56 = vadd.f32 %v5627_v62, %v9665_v52 }
0x10bf   : > { %5726 = vst [vmem:[%s9672_s21 + $0x20] sm:$0xff] %v5694_v57  ;;  %v5696_v29 = vmax.f32 %v5626_v19, 0.0 }
0x10c0   : > { %5727 = vst [vmem:[%s9672_s21 + $0x28] sm:$0xff] %v5695_v61  ;;  %v5697_v42 = vmax.f32 %v5628_v56, 0.0 }
0x10c1   : > { %5728 = vst [vmem:[%s9672_s21 + $0x30] sm:$0xff] %v5696_v29 }
0x10c2   : > { %5729 = vst [vmem:[%s9672_s21 + $0x38] sm:$0xff] %v5697_v42  ;;  %v5631_v63 = vpop.f32.mrb[8].mxu0 }
0x10c3   : > { %v5632_v25 = vadd.f32 %v5631_v63, %v9662_v32  ;;  %v5633_v0 = vpop.f32.mrb[9].mxu0 }
0x10c4   : > { %v5634_v49 = vadd.f32 %v5633_v0, %v9665_v52  ;;  %v5635_v12 = vpop.f32.mrb[10].mxu0 }
0x10c5   : > { %v5698_v45 = vmax.f32 %v5632_v25, 0.0  ;;  %v5636_v10 = vadd.f32 %v5635_v12, %v9662_v32  ;;  %v5637_v35 = vpop.f32.mrb[11].mxu0 }
0x10c6   : > { %v5699_v36 = vmax.f32 %v5634_v49, 0.0  ;;  %v5638_v50 = vadd.f32 %v5637_v35, %v9665_v52 }
0x10c7   : > { %5730 = vst [vmem:[%s9672_s21 + $0x40] sm:$0xff] %v5698_v45  ;;  %v5700_v40 = vmax.f32 %v5636_v10, 0.0 }
0x10c8   : > { %5731 = vst [vmem:[%s9672_s21 + $0x48] sm:$0xff] %v5699_v36  ;;  %v5701_v2 = vmax.f32 %v5638_v50, 0.0 }
0x10c9   : > { %5732 = vst [vmem:[%s9672_s21 + $0x50] sm:$0xff] %v5700_v40 }
0x10ca   : > { %5733 = vst [vmem:[%s9672_s21 + $0x58] sm:$0xff] %v5701_v2  ;;  %v5641_v28 = vpop.f32.mrb[12].mxu0 }
0x10cb   : > { %v5642_v55 = vadd.f32 %v5641_v28, %v9662_v32  ;;  %v5643_v9 = vpop.f32.mrb[13].mxu0 }
0x10cc   : > { %v5644_v48 = vadd.f32 %v5643_v9, %v9665_v52  ;;  %v5645_v37 = vpop.f32.mrb[14].mxu0 }
0x10cd   : > { %v5702_v34 = vmax.f32 %v5642_v55, 0.0  ;;  %v5646_v17 = vadd.f32 %v5645_v37, %v9662_v32  ;;  %v5647_v18 = vpop.f32.mrb[15].mxu0 }
0x10ce   : > { %v5703_v44 = vmax.f32 %v5644_v48, 0.0  ;;  %v5648_v13 = vadd.f32 %v5647_v18, %v9665_v52 }
0x10cf   : > { %5734 = vst [vmem:[%s9672_s21 + $0x60] sm:$0xff] %v5702_v34  ;;  %v5704_v59 = vmax.f32 %v5646_v17, 0.0 }
0x10d0   : > { %5735 = vst [vmem:[%s9672_s21 + $0x68] sm:$0xff] %v5703_v44  ;;  %v5705_v51 = vmax.f32 %v5648_v13, 0.0 }
0x10d1   : > { %5736 = vst [vmem:[%s9672_s21 + $0x70] sm:$0xff] %v5704_v59 }
0x10d2   : > { %5737 = vst [vmem:[%s9672_s21 + $0x78] sm:$0xff] %v5705_v51  ;;  %v5651_v27 = vpop.f32.mrb[16].mxu0 }
0x10d3   : > { %v5652_v39 = vadd.f32 %v5651_v27, %v9662_v32  ;;  %v5653_v4 = vpop.f32.mrb[17].mxu0 }
0x10d4   : > { %v5654_v16 = vadd.f32 %v5653_v4, %v9665_v52  ;;  %v5655_v33 = vpop.f32.mrb[18].mxu0 }
0x10d5   : > { %v5706_v47 = vmax.f32 %v5652_v39, 0.0  ;;  %v5656_v21 = vadd.f32 %v5655_v33, %v9662_v32  ;;  %v5657_v14 = vpop.f32.mrb[19].mxu0 }
0x10d6   : > { %v5707_v11 = vmax.f32 %v5654_v16, 0.0  ;;  %v5658_v23 = vadd.f32 %v5657_v14, %v9665_v52 }
0x10d7   : > { %5738 = vst [vmem:[%s9672_s21 + $0x80] sm:$0xff] %v5706_v47  ;;  %v5708_v6 = vmax.f32 %v5656_v21, 0.0 }
0x10d8   : > { %5739 = vst [vmem:[%s9672_s21 + $0x88] sm:$0xff] %v5707_v11  ;;  %v5709_v22 = vmax.f32 %v5658_v23, 0.0 }
0x10d9   : > { %5740 = vst [vmem:[%s9672_s21 + $0x90] sm:$0xff] %v5708_v6 }
0x10da   : > { %5741 = vst [vmem:[%s9672_s21 + $0x98] sm:$0xff] %v5709_v22  ;;  %v5661_v31 = vpop.f32.mrb[20].mxu0 }
0x10db   : > { %v5662_v1 = vadd.f32 %v5661_v31, %v9662_v32  ;;  %v5663_v7 = vpop.f32.mrb[21].mxu0 }
0x10dc   : > { %v5664_v26 = vadd.f32 %v5663_v7, %v9665_v52  ;;  %v5665_v15 = vpop.f32.mrb[22].mxu0 }
0x10dd   : > { %v5710_v53 = vmax.f32 %v5662_v1, 0.0  ;;  %v5666_v60 = vadd.f32 %v5665_v15, %v9662_v32  ;;  %v5667_v54 = vpop.f32.mrb[23].mxu0 }
0x10de   : > { %v5711_v24 = vmax.f32 %v5664_v26, 0.0  ;;  %v5668_v20 = vadd.f32 %v5667_v54, %v9665_v52 }
0x10df   : > { %5742 = vst [vmem:[%s9672_s21 + $0xa0] sm:$0xff] %v5710_v53  ;;  %v5712_v46 = vmax.f32 %v5666_v60, 0.0 }
0x10e0   : > { %5743 = vst [vmem:[%s9672_s21 + $0xa8] sm:$0xff] %v5711_v24  ;;  %v5713_v30 = vmax.f32 %v5668_v20, 0.0 }
0x10e1   : > { %5744 = vst [vmem:[%s9672_s21 + $0xb0] sm:$0xff] %v5712_v46 }
0x10e2   : > { %5745 = vst [vmem:[%s9672_s21 + $0xb8] sm:$0xff] %v5713_v30  ;;  %v5671_v3 = vpop.f32.mrb[32].mxu1 }
0x10e3   : > { %v5672_v5 = vadd.f32 %v5671_v3, %v9662_v32  ;;  %v5673_v8 = vpop.f32.mrb[33].mxu1 }
0x10e4   : > { %v5674_v43 = vadd.f32 %v5673_v8, %v9665_v52  ;;  %v5675_v38 = vpop.f32.mrb[34].mxu1 }
0x10e5   : > { %v5714_v41 = vmax.f32 %v5672_v5, 0.0  ;;  %v5676_v58 = vadd.f32 %v5675_v38, %v9662_v32  ;;  %v5677_v57 = vpop.f32.mrb[35].mxu1 }
0x10e6   : > { %v5715_v19 = vmax.f32 %v5674_v43, 0.0  ;;  %v5678_v62 = vadd.f32 %v5677_v57, %v9665_v52 }
0x10e7   : > { %5746 = vst [vmem:[%s9672_s21 + $0xc0] sm:$0xff] %v5714_v41  ;;  %v5716_v61 = vmax.f32 %v5676_v58, 0.0 }
0x10e8   : > { %5747 = vst [vmem:[%s9672_s21 + $0xc8] sm:$0xff] %v5715_v19  ;;  %v5717_v56 = vmax.f32 %v5678_v62, 0.0 }
0x10e9   : > { %5748 = vst [vmem:[%s9672_s21 + $0xd0] sm:$0xff] %v5716_v61 }
0x10ea   : > { %5749 = vst [vmem:[%s9672_s21 + $0xd8] sm:$0xff] %v5717_v56  ;;  %v5681_v29 = vpop.f32.mrb[36].mxu1 }
0x10eb   : > { %v5682_v42 = vadd.f32 %v5681_v29, %v9662_v32  ;;  %v5683_v63 = vpop.f32.mrb[37].mxu1 }
0x10ec   : > { %v5684_v25 = vadd.f32 %v5683_v63, %v9665_v52  ;;  %v5685_v0 = vpop.f32.mrb[38].mxu1 }
0x10ed   : > { %v5718_v49 = vmax.f32 %v5682_v42, 0.0  ;;  %v5686_v12 = vadd.f32 %v5685_v0, %v9662_v32  ;;  %v5687_v45 = vpop.f32.mrb[39].mxu1 }
0x10ee   : > { %v5719_v10 = vmax.f32 %v5684_v25, 0.0  ;;  %v5688_v35 = vadd.f32 %v5687_v45, %v9665_v52 }
0x10ef   : > { %5750 = vst [vmem:[%s9672_s21 + $0xe0] sm:$0xff] %v5718_v49  ;;  %v5720_v36 = vmax.f32 %v5686_v12, 0.0 }
0x10f0   : > { %5751 = vst [vmem:[%s9672_s21 + $0xe8] sm:$0xff] %v5719_v10  ;;  %v5721_v50 = vmax.f32 %v5688_v35, 0.0 }
0x10f1   : > { %5752 = vst [vmem:[%s9672_s21 + $0xf0] sm:$0xff] %v5720_v36 }
0x10f2   : > { %5753 = vst [vmem:[%s9672_s21 + $0xf8] sm:$0xff] %v5721_v50 }
0x10f3   : > { %7544 = shalt.err (!%p7541_p7)
}
0x10f4   : > { %s7545_s14 = scalar_lea.hbm %s9736_s17, 4096  ;;  %s7549_s21 = scalar_lea.hbm %s9869_s25, 12288 }
0x10f5   : > { %p7546_p5 = scmp.ne.s32.totalorder %s9736_s17, %s7545_s14  ;;  %p7550_p3 = scmp.lt.u32.totalorder %s9736_s17, %s9869_s25 }
0x10f6   : > { %p7551_p0 = scmp.lt.u32.totalorder %s7549_s21, %s7545_s14  ;;  %p7553_p2 = scmp.lt.u32.totalorder %s7545_s14, %s9736_s17 }
0x10f7   : > { %p7547_p8 = pnand %p7546_p5, %p9870_p6 }
0x10f8   : > { %p7552_p4 = por %p7551_p0, %p7550_p3 }
0x10f9   : > { %p7548_p9 = pneg %p7547_p8 }
0x10fa   : > { %p7554_p10 = por %p7553_p2, %p7552_p4 }
0x10fc   : > { %p7555_p1 = pnand %p7554_p10, %p7548_p9 }
0x10fe   : > { %7558 = shalt.err (!%p7555_p1)
}
0x10ff   : > { %s7625_s29 = smov 256   ;;  %s7626_s16 = smov 16  }
0x1100   : > { %6837 = dma.vmem_to_hbm [thread:$0]  (%p9870_p6), %s9738_s26, 4096, %s9736_s17, %s5755_s15, %s7625_s29, %s7625_s29, %s7626_s16  }
0x1101 PF: > { %p6874_p11 = scmp.ge.s32.totalorder %s7609_s12, 2  ;;  %s5784_s20 = sand.u32 1, %s7597_s30  }
0x1102   : > { %p9871_p12 = scmp.ne.s32.totalorder %s9831_s9, 0  ;;  %s5785_s18 = scalar_lea.sflag [#allocation4], %s5784_s20 }
0x1104   : > { %p6860_p13 = pnand %p6874_p11, %p9871_p12 }
0x1106   : > { %7592 = dma.done.wait (!%p6860_p13), %s5785_s18, 4096  }
0x1107   : > { %7594 = vsyncadd (!%p6860_p13), %s5785_s18, 4294963200  ;;  %p25_p7 = scmp.ge.s32.totalorder %s7839_s27, 5   ;;  %s9872_s30 = smov %s7601_s10 }
0x1108   : > { %s9873_s10 = smov %s7605_s11  ;;  %s9874_s11 = smov %s7851_s4 }
0x1109   : > { %s9875_s12 = smov %s7839_s27  ;;  %27 = sbr.rel (!%p25_p7) target bundleno = 12 (0xc), region = 149 }
0x1110   :  { %5790 = vsyncpa [#allocation3], 1 }
0x1111   :  { %5792 = vsyncpa [#allocation3 + $0x1], 1 }
0x1112   :  { %5793 = vsyncpa [#allocation6], 1 }
0x1113   :  { %5794 = vsyncpa [#allocation9], 1 }
0x1114   :  { %5795 = vsyncpa [#allocation12], 1 }
0x1115   :  { %5796 = vsyncpa [#allocation4], 1 }
0x1116   :  { %5798 = vsyncpa [#allocation4 + $0x1], 1 }

</bundles_post_ra>
